<compile_context>
chip_gen: v7x
topology: tpu7x:2x2x1
jax: 0.10.0
libtpu: 0.0.40
codegen_flags: <defaults>
</compile_context>

<pallas_src>
import functools

import jax
import jax.numpy as jnp
from jax import lax
from jax.experimental import pallas as pl
from jax.experimental.pallas import tpu as pltpu

LRELU_SLOPE = 0.1
PERIODS = (2, 3, 5, 7, 11)
COMPUTE_DTYPE = jnp.bfloat16   # MXU-native dtype; accumulation stays f32
TILE_M = 512                   # max output rows per kernel block


def get_padding(kernel_size, dilation=1):
    return (kernel_size * dilation - dilation) // 2


def _round_up(x, m):
    return ((x + m - 1) // m) * m


# ---------------------------------------------------------------------------
# Pallas kernel: one (row-tile, Co-tile) block of  X @ W + b  (+ LeakyReLU).
# X is the im2col-packed activation block, W the im2col-packed weights.
# ---------------------------------------------------------------------------
def _matmul_bias_act_kernel(x_ref, w_ref, b_ref, o_ref, *, slope, apply_act):
    # Single MXU matmul per block; accumulate into a local value and write the
    # output exactly once (review: no per-tap o_ref read-modify-write).
    acc = jnp.dot(x_ref[...], w_ref[...], preferred_element_type=jnp.float32)
    acc = acc + b_ref[...]
    if apply_act:
        acc = jnp.where(acc >= 0, acc, slope * acc)
    o_ref[...] = acc.astype(o_ref.dtype)


def _fused_matmul(x2, w, b, *, apply_act):
    """x2: (rows, K) bf16, w: (K, Co) bf16, b: (1, Co) f32 -> (rows, Co) bf16."""
    rows, kdim = x2.shape
    kdim_w, co = w.shape
    assert kdim == kdim_w and b.shape == (1, co)

    # Co tiles: 256 feeds the 2x256^2 MXUs on v6e/v7x; 128 for 128-multiples;
    # small Co keeps a full-width (masked) tile so downstream K stays small.
    if co % 256 == 0:
        tile_co = 256
    elif co % 128 == 0:
        tile_co = 128
    else:
        tile_co = co

    # Row tiles: bound VMEM per block and feed both v7x TensorCores. Rows are
    # padded to a sublane multiple so all blocks are aligned (padded rows are
    # zero inputs and get sliced off after the call).
    grid_m = -(-rows // TILE_M)
    tile_m = _round_up(-(-rows // grid_m), 16)
    rows_pad = tile_m * grid_m
    if rows_pad != rows:
        x2 = jnp.pad(x2, ((0, rows_pad - rows), (0, 0)))

    kernel = functools.partial(_matmul_bias_act_kernel,
                               slope=LRELU_SLOPE, apply_act=apply_act)
    out = pl.pallas_call(
        kernel,
        out_shape=jax.ShapeDtypeStruct((rows_pad, co), COMPUTE_DTYPE),
        grid=(grid_m, co // tile_co),
        in_specs=[
            pl.BlockSpec((tile_m, kdim), lambda i, j: (i, 0)),
            pl.BlockSpec((kdim, tile_co), lambda i, j: (0, j)),
            pl.BlockSpec((1, tile_co), lambda i, j: (0, j)),
        ],
        out_specs=pl.BlockSpec((tile_m, tile_co), lambda i, j: (i, j)),
        compiler_params=pltpu.CompilerParams(
            dimension_semantics=("parallel", "parallel")),
        cost_estimate=pl.CostEstimate(
            flops=2 * rows_pad * kdim * co,
            transcendentals=0,
            bytes_accessed=2 * (rows_pad * kdim + kdim * co + rows_pad * co)
                           + 4 * co),
    )(x2, w, b)
    return out[:rows]


# ---------------------------------------------------------------------------
# One Conv2d((k,1), stride (s,1), pad (p,0)) layer on [N, H, Cin] sequences.
# ---------------------------------------------------------------------------
def _conv_kx1(x_seq, layer, hout):
    """im2col along the lane axis: every output row's full receptive field
    (k taps x cin channels) is packed into K, so the kernel is one aligned
    matmul per block and row tiling needs no tap-overlap handling."""
    n, h, cin = x_seq.shape
    s, p, k = layer["stride"], layer["pad"], layer["k"]
    xp = jnp.pad(x_seq, ((0, 0), (p, p), (0, 0)))
    # hout = (h + 2p - k)//s + 1  =>  (hout-1)*s + k <= h + 2p, so every strided
    # slice below stays inside this sequence's padded extent (no cross-sequence
    # reads by construction).
    cols = [lax.slice(xp, (0, tap, 0), (n, tap + (hout - 1) * s + 1, cin),
                      (1, s, 1)) for tap in range(k)]
    x2 = jnp.stack(cols, axis=2).reshape(n * hout, k * cin)
    out = _fused_matmul(x2.astype(COMPUTE_DTYPE), layer["w"], layer["b"],
                        apply_act=layer["act"])
    # TODO(synk): have the kernel emit the next layer's im2col layout directly
    # to remove the inter-layer pad/slice/stack HBM glue passes.
    return out.reshape(n, hout, layer["co_pad"])


# ---------------------------------------------------------------------------
# Parameter construction (weight-norm reparam + im2col/lane packing, once).
# ---------------------------------------------------------------------------
def make_discriminator_p_params(key, period, channels=(32, 128, 512, 1024, 1024),
                                kernel_size=5, stride=3):
    cfgs = []
    cin = 1
    for i, co in enumerate(channels):
        s = stride if i + 1 < len(channels) else 1       # last conv has stride 1
        cfgs.append(dict(cin=cin, co=co, k=kernel_size, stride=s,
                         pad=get_padding(kernel_size, 1), act=True))
        cin = co
    cfgs.append(dict(cin=cin, co=1, k=3, stride=1, pad=1, act=False))  # conv_post

    convs = []
    cin_pad = 1                                          # raw audio: 1 channel
    for cfg, kk in zip(cfgs, jax.random.split(key, len(cfgs))):
        kv, kg, kb = jax.random.split(kk, 3)
        co, ci, k = cfg["co"], cfg["cin"], cfg["k"]
        v = jax.random.normal(kv, (co, ci, k, 1), jnp.float32) / (ci * k) ** 0.5
        g = jax.random.uniform(kg, (co, 1, 1, 1), jnp.float32,
                               minval=0.5, maxval=1.5)
        bias = 0.1 * jax.random.normal(kb, (co,), jnp.float32)
        # weight_norm forward: w = g * v / ||v||  (rsqrt, hoisted out of kernels)
        w_eff = g * v * lax.rsqrt(jnp.sum(v * v, axis=(1, 2, 3), keepdims=True))
        # Small Co only padded to a multiple of 8 (keeps downstream K small);
        # Co >= 128 padded to a 128 multiple for lane-dense tiles.
        co_pad = _round_up(co, 8) if co < 128 else _round_up(co, 128)
        # im2col weight pack: (co, ci, k) -> rows tap*cin_pad + ci, cols co_pad
        w3 = jnp.pad(w_eff[..., 0],
                     ((0, co_pad - co), (0, cin_pad - ci), (0, 0)))
        w_packed = (w3.transpose(2, 1, 0)
                      .reshape(k * cin_pad, co_pad)
                      .astype(COMPUTE_DTYPE))
        b_packed = jnp.pad(bias, (0, co_pad - co)).reshape(1, co_pad)
        convs.append(dict(cfg, w=w_packed, b=b_packed, w_eff=w_eff, bias=bias,
                          co_pad=co_pad, cin_pad=cin_pad))
        cin_pad = co_pad
    return dict(period=period, convs=convs)


# ---------------------------------------------------------------------------
# DiscriminatorP / MultiPeriodDiscriminator forward.
# ---------------------------------------------------------------------------
def discriminator_p_forward(params, x):
    """x: [B, 1, T] -> (flattened logits [B, F], fmap list of [B, C, H', P])."""
    period = params["period"]
    b, c, t = x.shape
    if t % period != 0:
        n_pad = period - (t % period)
        x = jnp.pad(x, ((0, 0), (0, 0), (0, n_pad)), mode="reflect")
        t = t + n_pad
    h = t // period
    # kernel width is 1 -> each period column is an independent 1-D conv sharing
    # weights: fold (batch, column) into the matmul M axis.
    seq = (x.reshape(b, 1, h, period).transpose(0, 3, 2, 1)
            .reshape(b * period, h, 1).astype(COMPUTE_DTYPE))

    # TODO(synk): fuse the small tail layers into a single pallas_call
    # (pltpu.emit_pipeline) to amortize launch/HBM overhead at small sizes.
    fmap = []
    cur, cur_h = seq, h
    for layer in params["convs"]:
        hout = (cur_h + 2 * layer["pad"] - layer["k"]) // layer["stride"] + 1
        cur = _conv_kx1(cur, layer, hout)
        cur_h = hout
        # Kept in PyTorch NCHW layout to preserve the module's output semantics
        # (the review suggests keeping the natural [.., H, Co] layout instead).
        fmap.append(cur[..., :layer["co"]]
                    .reshape(b, period, cur_h, layer["co"])
                    .transpose(0, 3, 2, 1).astype(jnp.float32))
    out = (cur[..., :1].reshape(b, period, cur_h)
           .transpose(0, 2, 1).reshape(b, cur_h * period)
           .astype(jnp.float32))                 # torch.flatten(x, 1, -1)
    return out, fmap


def multi_period_discriminator(params_list, y, y_hat):
    """Matches MultiPeriodDiscriminator.forward: (y_d_rs, y_d_gs, fmap_rs, fmap_gs)."""
    b = y.shape[0]
    yy = jnp.concatenate([y, y_hat], axis=0)  # run real/generated together per period
    y_d_rs, y_d_gs, fmap_rs, fmap_gs = [], [], [], []
    for params in params_list:
        out, fmap = discriminator_p_forward(params, yy)
        y_d_rs.append(out[:b])
        y_d_gs.append(out[b:])
        fmap_rs.append([f[:b] for f in fmap])
        fmap_gs.append([f[b:] for f in fmap])
    return y_d_rs, y_d_gs, fmap_rs, fmap_gs


# ---------------------------------------------------------------------------
# Pure-JAX f32 reference (XLA convs) for validation.
# ---------------------------------------------------------------------------
def _ref_discriminator_p(params, x):
    period = params["period"]
    b, c, t = x.shape
    if t % period != 0:
        n_pad = period - (t % period)
        x = jnp.pad(x, ((0, 0), (0, 0), (0, n_pad)), mode="reflect")
        t = t + n_pad
    x = x.reshape(b, c, t // period, period)
    fmap = []
    for layer in params["convs"]:
        x = lax.conv_general_dilated(
            x, layer["w_eff"], window_strides=(layer["stride"], 1),
            padding=((layer["pad"], layer["pad"]), (0, 0)),
            dimension_numbers=("NCHW", "OIHW", "NCHW"),
            precision=lax.Precision.HIGHEST)
        x = x + layer["bias"].reshape(1, -1, 1, 1)
        if layer["act"]:
            x = jnp.where(x >= 0, x, LRELU_SLOPE * x)
        fmap.append(x)
    return x.reshape(b, -1), fmap


if __name__ == "__main__":
    batch = 2
    t_len = 240
    # Scaled-down channel widths for the small demo (HiFi-GAN uses
    # (32, 128, 512, 1024, 1024)); kernels/strides/padding/weight-norm/LeakyReLU
    # and the per-period structure are unchanged.
    channels = (8, 16, 32, 64, 64)

    key = jax.random.PRNGKey(0)
    k_y, k_g, k_params = jax.random.split(key, 3)
    y = jax.random.normal(k_y, (batch, 1, t_len), jnp.float32)
    y_hat = jax.random.normal(k_g, (batch, 1, t_len), jnp.float32)

    params_list = [
        make_discriminator_p_params(k, p, channels=channels)
        for k, p in zip(jax.random.split(k_params, len(PERIODS)), PERIODS)
    ]

    mpd = jax.jit(functools.partial(multi_period_discriminator, params_list))
    y_d_rs, y_d_gs, fmap_rs, fmap_gs = jax.block_until_ready(mpd(y, y_hat))

    # Validate against the pure-JAX f32 reference of the same module.
    # Tolerance loosened for bf16 inputs/weights (accumulation is still f32).
    ATOL = RTOL = 5e-2
    for params, ydr, ydg, fr, fg in zip(params_list, y_d_rs, y_d_gs,
                                        fmap_rs, fmap_gs):
        ref_r, ref_fr = _ref_discriminator_p(params, y)
        ref_g, ref_fg = _ref_discriminator_p(params, y_hat)
        assert ydr.shape == ref_r.shape and ydg.shape == ref_g.shape
        assert jnp.allclose(ydr, ref_r, atol=ATOL, rtol=RTOL), "y_d_r mismatch"
        assert jnp.allclose(ydg, ref_g, atol=ATOL, rtol=RTOL), "y_d_g mismatch"
        for a, r in zip(fr, ref_fr):
            assert a.shape == r.shape
            assert jnp.allclose(a, r, atol=ATOL, rtol=RTOL), "fmap_r mismatch"
        for a, r in zip(fg, ref_fg):
            assert a.shape == r.shape
            assert jnp.allclose(a, r, atol=ATOL, rtol=RTOL), "fmap_g mismatch"

    print("KERNEL_OK")
</pallas_src>

<mosaic_0001>
module attributes {stable_mosaic.version = 11 : i64} {
  func.func @_matmul_bias_act_kernel(%arg0: i32, %arg1: i32, %arg2: memref<320x5xbf16, #tpu.memory_space<vmem>>, %arg3: memref<5x8xbf16, #tpu.memory_space<vmem>>, %arg4: memref<1x8xf32, #tpu.memory_space<vmem>>, %arg5: memref<320x8xbf16, #tpu.memory_space<vmem>>) attributes {dimension_semantics = [#tpu.dimension_semantics<parallel>, #tpu.dimension_semantics<parallel>], iteration_bounds = array<i64: 1, 1>, scalar_prefetch = 0 : i64, scratch_operands = 0 : i64, tpu.core_type = #tpu.core_type<tc>, window_params = [{transform_indices = @transform_0, window_bounds = array<i64: 320, 5>}, {transform_indices = @transform_1, window_bounds = array<i64: 5, 8>}, {transform_indices = @transform_2, window_bounds = array<i64: 1, 8>}, {transform_indices = @transform_3, window_bounds = array<i64: 320, 8>}]} {
    %c0 = arith.constant 0 : index
    %c0_0 = arith.constant 0 : index
    %0 = vector.load %arg2[%c0, %c0_0] : memref<320x5xbf16, #tpu.memory_space<vmem>>, vector<320x5xbf16>
    %c0_1 = arith.constant 0 : index
    %c0_2 = arith.constant 0 : index
    %1 = vector.load %arg3[%c0_1, %c0_2] : memref<5x8xbf16, #tpu.memory_space<vmem>>, vector<5x8xbf16>
    %cst = arith.constant dense<0.000000e+00> : vector<320x8xf32>
    %2 = tpu.matmul %0, %1, %cst {dimension_numbers = #tpu.dot_dimension_numbers<[1], [0], [0], [1], [0, 0, 1, 1], [], []>} : vector<320x5xbf16>, vector<5x8xbf16>, vector<320x8xf32> -> vector<320x8xf32>
    %c0_3 = arith.constant 0 : index
    %c0_4 = arith.constant 0 : index
    %3 = vector.load %arg4[%c0_3, %c0_4] : memref<1x8xf32, #tpu.memory_space<vmem>>, vector<1x8xf32>
    %4 = vector.broadcast %3 : vector<1x8xf32> to vector<320x8xf32>
    %5 = arith.addf %2, %4 : vector<320x8xf32>
    %cst_5 = arith.constant 0.000000e+00 : f32
    %6 = vector.broadcast %cst_5 : f32 to vector<320x8xf32>
    %7 = arith.cmpf oge, %5, %6 : vector<320x8xf32>
    %cst_6 = arith.constant 1.000000e-01 : f32
    %8 = vector.broadcast %cst_6 : f32 to vector<320x8xf32>
    %9 = arith.mulf %8, %5 : vector<320x8xf32>
    %10 = arith.select %7, %5, %9 : vector<320x8xi1>, vector<320x8xf32>
    %11 = arith.truncf %10 : vector<320x8xf32> to vector<320x8xbf16>
    %c0_7 = arith.constant 0 : index
    %c0_8 = arith.constant 0 : index
    %12 = vector.load %arg5[%c0_7, %c0_8] : memref<320x8xbf16, #tpu.memory_space<vmem>>, vector<320x8xbf16>
    tpu.vector_store %arg5[%c0_7, %c0_8], %11 {strides = array<i32>} : memref<320x8xbf16, #tpu.memory_space<vmem>>, vector<320x8xbf16>,
    return
  }
  func.func @transform_0(%arg0: i32, %arg1: i32) -> (i32, i32) {
    %c0_i32 = arith.constant 0 : i32
    %c0_i32_0 = arith.constant 0 : i32
    return %arg0, %c0_i32 : i32, i32
  }
  func.func @transform_1(%arg0: i32, %arg1: i32) -> (i32, i32) {
    %c0_i32 = arith.constant 0 : i32
    %c0_i32_0 = arith.constant 0 : i32
    return %c0_i32, %arg1 : i32, i32
  }
  func.func @transform_2(%arg0: i32, %arg1: i32) -> (i32, i32) {
    %c0_i32 = arith.constant 0 : i32
    %c0_i32_0 = arith.constant 0 : i32
    return %c0_i32, %arg1 : i32, i32
  }
  func.func @transform_3(%arg0: i32, %arg1: i32) -> (i32, i32) {
    %c0_i32 = arith.constant 0 : i32
    return %arg0, %arg1 : i32, i32
  }
}

module attributes {stable_mosaic.version = 11 : i64} {
  func.func @_matmul_bias_act_kernel(%arg0: i32, %arg1: i32, %arg2: memref<112x40xbf16, #tpu.memory_space<vmem>>, %arg3: memref<40x16xbf16, #tpu.memory_space<vmem>>, %arg4: memref<1x16xf32, #tpu.memory_space<vmem>>, %arg5: memref<112x16xbf16, #tpu.memory_space<vmem>>) attributes {dimension_semantics = [#tpu.dimension_semantics<parallel>, #tpu.dimension_semantics<parallel>], iteration_bounds = array<i64: 1, 1>, scalar_prefetch = 0 : i64, scratch_operands = 0 : i64, tpu.core_type = #tpu.core_type<tc>, window_params = [{transform_indices = @transform_0, window_bounds = array<i64: 112, 40>}, {transform_indices = @transform_1, window_bounds = array<i64: 40, 16>}, {transform_indices = @transform_2, window_bounds = array<i64: 1, 16>}, {transform_indices = @transform_3, window_bounds = array<i64: 112, 16>}]} {
    %c0 = arith.constant 0 : index
    %c0_0 = arith.constant 0 : index
    %0 = vector.load %arg2[%c0, %c0_0] : memref<112x40xbf16, #tpu.memory_space<vmem>>, vector<112x40xbf16>
    %c0_1 = arith.constant 0 : index
    %c0_2 = arith.constant 0 : index
    %1 = vector.load %arg3[%c0_1, %c0_2] : memref<40x16xbf16, #tpu.memory_space<vmem>>, vector<40x16xbf16>
    %cst = arith.constant dense<0.000000e+00> : vector<112x16xf32>
    %2 = tpu.matmul %0, %1, %cst {dimension_numbers = #tpu.dot_dimension_numbers<[1], [0], [0], [1], [0, 0, 1, 1], [], []>} : vector<112x40xbf16>, vector<40x16xbf16>, vector<112x16xf32> -> vector<112x16xf32>
    %c0_3 = arith.constant 0 : index
    %c0_4 = arith.constant 0 : index
    %3 = vector.load %arg4[%c0_3, %c0_4] : memref<1x16xf32, #tpu.memory_space<vmem>>, vector<1x16xf32>
    %4 = vector.broadcast %3 : vector<1x16xf32> to vector<112x16xf32>
    %5 = arith.addf %2, %4 : vector<112x16xf32>
    %cst_5 = arith.constant 0.000000e+00 : f32
    %6 = vector.broadcast %cst_5 : f32 to vector<112x16xf32>
    %7 = arith.cmpf oge, %5, %6 : vector<112x16xf32>
    %cst_6 = arith.constant 1.000000e-01 : f32
    %8 = vector.broadcast %cst_6 : f32 to vector<112x16xf32>
    %9 = arith.mulf %8, %5 : vector<112x16xf32>
    %10 = arith.select %7, %5, %9 : vector<112x16xi1>, vector<112x16xf32>
    %11 = arith.truncf %10 : vector<112x16xf32> to vector<112x16xbf16>
    %c0_7 = arith.constant 0 : index
    %c0_8 = arith.constant 0 : index
    %12 = vector.load %arg5[%c0_7, %c0_8] : memref<112x16xbf16, #tpu.memory_space<vmem>>, vector<112x16xbf16>
    tpu.vector_store %arg5[%c0_7, %c0_8], %11 {strides = array<i32>} : memref<112x16xbf16, #tpu.memory_space<vmem>>, vector<112x16xbf16>,
    return
  }
  func.func @transform_0(%arg0: i32, %arg1: i32) -> (i32, i32) {
    %c0_i32 = arith.constant 0 : i32
    %c0_i32_0 = arith.constant 0 : i32
    return %arg0, %c0_i32 : i32, i32
  }
  func.func @transform_1(%arg0: i32, %arg1: i32) -> (i32, i32) {
    %c0_i32 = arith.constant 0 : i32
    %c0_i32_0 = arith.constant 0 : i32
    return %c0_i32, %arg1 : i32, i32
  }
  func.func @transform_2(%arg0: i32, %arg1: i32) -> (i32, i32) {
    %c0_i32 = arith.constant 0 : i32
    %c0_i32_0 = arith.constant 0 : i32
    return %c0_i32, %arg1 : i32, i32
  }
  func.func @transform_3(%arg0: i32, %arg1: i32) -> (i32, i32) {
    %c0_i32 = arith.constant 0 : i32
    return %arg0, %arg1 : i32, i32
  }
}

module attributes {stable_mosaic.version = 11 : i64} {
  func.func @_matmul_bias_act_kernel(%arg0: i32, %arg1: i32, %arg2: memref<48x80xbf16, #tpu.memory_space<vmem>>, %arg3: memref<80x32xbf16, #tpu.memory_space<vmem>>, %arg4: memref<1x32xf32, #tpu.memory_space<vmem>>, %arg5: memref<48x32xbf16, #tpu.memory_space<vmem>>) attributes {dimension_semantics = [#tpu.dimension_semantics<parallel>, #tpu.dimension_semantics<parallel>], iteration_bounds = array<i64: 1, 1>, scalar_prefetch = 0 : i64, scratch_operands = 0 : i64, tpu.core_type = #tpu.core_type<tc>, window_params = [{transform_indices = @transform_0, window_bounds = array<i64: 48, 80>}, {transform_indices = @transform_1, window_bounds = array<i64: 80, 32>}, {transform_indices = @transform_2, window_bounds = array<i64: 1, 32>}, {transform_indices = @transform_3, window_bounds = array<i64: 48, 32>}]} {
    %c0 = arith.constant 0 : index
    %c0_0 = arith.constant 0 : index
    %0 = vector.load %arg2[%c0, %c0_0] : memref<48x80xbf16, #tpu.memory_space<vmem>>, vector<48x80xbf16>
    %c0_1 = arith.constant 0 : index
    %c0_2 = arith.constant 0 : index
    %1 = vector.load %arg3[%c0_1, %c0_2] : memref<80x32xbf16, #tpu.memory_space<vmem>>, vector<80x32xbf16>
    %cst = arith.constant dense<0.000000e+00> : vector<48x32xf32>
    %2 = tpu.matmul %0, %1, %cst {dimension_numbers = #tpu.dot_dimension_numbers<[1], [0], [0], [1], [0, 0, 1, 1], [], []>} : vector<48x80xbf16>, vector<80x32xbf16>, vector<48x32xf32> -> vector<48x32xf32>
    %c0_3 = arith.constant 0 : index
    %c0_4 = arith.constant 0 : index
    %3 = vector.load %arg4[%c0_3, %c0_4] : memref<1x32xf32, #tpu.memory_space<vmem>>, vector<1x32xf32>
    %4 = vector.broadcast %3 : vector<1x32xf32> to vector<48x32xf32>
    %5 = arith.addf %2, %4 : vector<48x32xf32>
    %cst_5 = arith.constant 0.000000e+00 : f32
    %6 = vector.broadcast %cst_5 : f32 to vector<48x32xf32>
    %7 = arith.cmpf oge, %5, %6 : vector<48x32xf32>
    %cst_6 = arith.constant 1.000000e-01 : f32
    %8 = vector.broadcast %cst_6 : f32 to vector<48x32xf32>
    %9 = arith.mulf %8, %5 : vector<48x32xf32>
    %10 = arith.select %7, %5, %9 : vector<48x32xi1>, vector<48x32xf32>
    %11 = arith.truncf %10 : vector<48x32xf32> to vector<48x32xbf16>
    %c0_7 = arith.constant 0 : index
    %c0_8 = arith.constant 0 : index
    %12 = vector.load %arg5[%c0_7, %c0_8] : memref<48x32xbf16, #tpu.memory_space<vmem>>, vector<48x32xbf16>
    tpu.vector_store %arg5[%c0_7, %c0_8], %11 {strides = array<i32>} : memref<48x32xbf16, #tpu.memory_space<vmem>>, vector<48x32xbf16>,
    return
  }
  func.func @transform_0(%arg0: i32, %arg1: i32) -> (i32, i32) {
    %c0_i32 = arith.constant 0 : i32
    %c0_i32_0 = arith.constant 0 : i32
    return %arg0, %c0_i32 : i32, i32
  }
  func.func @transform_1(%arg0: i32, %arg1: i32) -> (i32, i32) {
    %c0_i32 = arith.constant 0 : i32
    %c0_i32_0 = arith.constant 0 : i32
    return %c0_i32, %arg1 : i32, i32
  }
  func.func @transform_2(%arg0: i32, %arg1: i32) -> (i32, i32) {
    %c0_i32 = arith.constant 0 : i32
    %c0_i32_0 = arith.constant 0 : i32
    return %c0_i32, %arg1 : i32, i32
  }
  func.func @transform_3(%arg0: i32, %arg1: i32) -> (i32, i32) {
    %c0_i32 = arith.constant 0 : i32
    return %arg0, %arg1 : i32, i32
  }
}

module attributes {stable_mosaic.version = 11 : i64} {
  func.func @_matmul_bias_act_kernel(%arg0: i32, %arg1: i32, %arg2: memref<16x160xbf16, #tpu.memory_space<vmem>>, %arg3: memref<160x64xbf16, #tpu.memory_space<vmem>>, %arg4: memref<1x64xf32, #tpu.memory_space<vmem>>, %arg5: memref<16x64xbf16, #tpu.memory_space<vmem>>) attributes {dimension_semantics = [#tpu.dimension_semantics<parallel>, #tpu.dimension_semantics<parallel>], iteration_bounds = array<i64: 1, 1>, scalar_prefetch = 0 : i64, scratch_operands = 0 : i64, tpu.core_type = #tpu.core_type<tc>, window_params = [{transform_indices = @transform_0, window_bounds = array<i64: 16, 160>}, {transform_indices = @transform_1, window_bounds = array<i64: 160, 64>}, {transform_indices = @transform_2, window_bounds = array<i64: 1, 64>}, {transform_indices = @transform_3, window_bounds = array<i64: 16, 64>}]} {
    %c0 = arith.constant 0 : index
    %c0_0 = arith.constant 0 : index
    %0 = vector.load %arg2[%c0, %c0_0] : memref<16x160xbf16, #tpu.memory_space<vmem>>, vector<16x160xbf16>
    %c0_1 = arith.constant 0 : index
    %c0_2 = arith.constant 0 : index
    %1 = vector.load %arg3[%c0_1, %c0_2] : memref<160x64xbf16, #tpu.memory_space<vmem>>, vector<160x64xbf16>
    %cst = arith.constant dense<0.000000e+00> : vector<16x64xf32>
    %2 = tpu.matmul %0, %1, %cst {dimension_numbers = #tpu.dot_dimension_numbers<[1], [0], [0], [1], [0, 0, 1, 1], [], []>} : vector<16x160xbf16>, vector<160x64xbf16>, vector<16x64xf32> -> vector<16x64xf32>
    %c0_3 = arith.constant 0 : index
    %c0_4 = arith.constant 0 : index
    %3 = vector.load %arg4[%c0_3, %c0_4] : memref<1x64xf32, #tpu.memory_space<vmem>>, vector<1x64xf32>
    %4 = vector.broadcast %3 : vector<1x64xf32> to vector<16x64xf32>
    %5 = arith.addf %2, %4 : vector<16x64xf32>
    %cst_5 = arith.constant 0.000000e+00 : f32
    %6 = vector.broadcast %cst_5 : f32 to vector<16x64xf32>
    %7 = arith.cmpf oge, %5, %6 : vector<16x64xf32>
    %cst_6 = arith.constant 1.000000e-01 : f32
    %8 = vector.broadcast %cst_6 : f32 to vector<16x64xf32>
    %9 = arith.mulf %8, %5 : vector<16x64xf32>
    %10 = arith.select %7, %5, %9 : vector<16x64xi1>, vector<16x64xf32>
    %11 = arith.truncf %10 : vector<16x64xf32> to vector<16x64xbf16>
    %c0_7 = arith.constant 0 : index
    %c0_8 = arith.constant 0 : index
    %12 = vector.load %arg5[%c0_7, %c0_8] : memref<16x64xbf16, #tpu.memory_space<vmem>>, vector<16x64xbf16>
    tpu.vector_store %arg5[%c0_7, %c0_8], %11 {strides = array<i32>} : memref<16x64xbf16, #tpu.memory_space<vmem>>, vector<16x64xbf16>,
    return
  }
  func.func @transform_0(%arg0: i32, %arg1: i32) -> (i32, i32) {
    %c0_i32 = arith.constant 0 : i32
    %c0_i32_0 = arith.constant 0 : i32
    return %arg0, %c0_i32 : i32, i32
  }
  func.func @transform_1(%arg0: i32, %arg1: i32) -> (i32, i32) {
    %c0_i32 = arith.constant 0 : i32
    %c0_i32_0 = arith.constant 0 : i32
    return %c0_i32, %arg1 : i32, i32
  }
  func.func @transform_2(%arg0: i32, %arg1: i32) -> (i32, i32) {
    %c0_i32 = arith.constant 0 : i32
    %c0_i32_0 = arith.constant 0 : i32
    return %c0_i32, %arg1 : i32, i32
  }
  func.func @transform_3(%arg0: i32, %arg1: i32) -> (i32, i32) {
    %c0_i32 = arith.constant 0 : i32
    return %arg0, %arg1 : i32, i32
  }
}

module attributes {stable_mosaic.version = 11 : i64} {
  func.func @_matmul_bias_act_kernel(%arg0: i32, %arg1: i32, %arg2: memref<16x320xbf16, #tpu.memory_space<vmem>>, %arg3: memref<320x64xbf16, #tpu.memory_space<vmem>>, %arg4: memref<1x64xf32, #tpu.memory_space<vmem>>, %arg5: memref<16x64xbf16, #tpu.memory_space<vmem>>) attributes {dimension_semantics = [#tpu.dimension_semantics<parallel>, #tpu.dimension_semantics<parallel>], iteration_bounds = array<i64: 1, 1>, scalar_prefetch = 0 : i64, scratch_operands = 0 : i64, tpu.core_type = #tpu.core_type<tc>, window_params = [{transform_indices = @transform_0, window_bounds = array<i64: 16, 320>}, {transform_indices = @transform_1, window_bounds = array<i64: 320, 64>}, {transform_indices = @transform_2, window_bounds = array<i64: 1, 64>}, {transform_indices = @transform_3, window_bounds = array<i64: 16, 64>}]} {
    %c0 = arith.constant 0 : index
    %c0_0 = arith.constant 0 : index
    %0 = vector.load %arg2[%c0, %c0_0] : memref<16x320xbf16, #tpu.memory_space<vmem>>, vector<16x320xbf16>
    %c0_1 = arith.constant 0 : index
    %c0_2 = arith.constant 0 : index
    %1 = vector.load %arg3[%c0_1, %c0_2] : memref<320x64xbf16, #tpu.memory_space<vmem>>, vector<320x64xbf16>
    %cst = arith.constant dense<0.000000e+00> : vector<16x64xf32>
    %2 = tpu.matmul %0, %1, %cst {dimension_numbers = #tpu.dot_dimension_numbers<[1], [0], [0], [1], [0, 0, 1, 1], [], []>} : vector<16x320xbf16>, vector<320x64xbf16>, vector<16x64xf32> -> vector<16x64xf32>
    %c0_3 = arith.constant 0 : index
    %c0_4 = arith.constant 0 : index
    %3 = vector.load %arg4[%c0_3, %c0_4] : memref<1x64xf32, #tpu.memory_space<vmem>>, vector<1x64xf32>
    %4 = vector.broadcast %3 : vector<1x64xf32> to vector<16x64xf32>
    %5 = arith.addf %2, %4 : vector<16x64xf32>
    %cst_5 = arith.constant 0.000000e+00 : f32
    %6 = vector.broadcast %cst_5 : f32 to vector<16x64xf32>
    %7 = arith.cmpf oge, %5, %6 : vector<16x64xf32>
    %cst_6 = arith.constant 1.000000e-01 : f32
    %8 = vector.broadcast %cst_6 : f32 to vector<16x64xf32>
    %9 = arith.mulf %8, %5 : vector<16x64xf32>
    %10 = arith.select %7, %5, %9 : vector<16x64xi1>, vector<16x64xf32>
    %11 = arith.truncf %10 : vector<16x64xf32> to vector<16x64xbf16>
    %c0_7 = arith.constant 0 : index
    %c0_8 = arith.constant 0 : index
    %12 = vector.load %arg5[%c0_7, %c0_8] : memref<16x64xbf16, #tpu.memory_space<vmem>>, vector<16x64xbf16>
    tpu.vector_store %arg5[%c0_7, %c0_8], %11 {strides = array<i32>} : memref<16x64xbf16, #tpu.memory_space<vmem>>, vector<16x64xbf16>,
    return
  }
  func.func @transform_0(%arg0: i32, %arg1: i32) -> (i32, i32) {
    %c0_i32 = arith.constant 0 : i32
    %c0_i32_0 = arith.constant 0 : i32
    return %arg0, %c0_i32 : i32, i32
  }
  func.func @transform_1(%arg0: i32, %arg1: i32) -> (i32, i32) {
    %c0_i32 = arith.constant 0 : i32
    %c0_i32_0 = arith.constant 0 : i32
    return %c0_i32, %arg1 : i32, i32
  }
  func.func @transform_2(%arg0: i32, %arg1: i32) -> (i32, i32) {
    %c0_i32 = arith.constant 0 : i32
    %c0_i32_0 = arith.constant 0 : i32
    return %c0_i32, %arg1 : i32, i32
  }
  func.func @transform_3(%arg0: i32, %arg1: i32) -> (i32, i32) {
    %c0_i32 = arith.constant 0 : i32
    return %arg0, %arg1 : i32, i32
  }
}

module attributes {stable_mosaic.version = 11 : i64} {
  func.func @_matmul_bias_act_kernel(%arg0: i32, %arg1: i32, %arg2: memref<16x192xbf16, #tpu.memory_space<vmem>>, %arg3: memref<192x8xbf16, #tpu.memory_space<vmem>>, %arg4: memref<1x8xf32, #tpu.memory_space<vmem>>, %arg5: memref<16x8xbf16, #tpu.memory_space<vmem>>) attributes {dimension_semantics = [#tpu.dimension_semantics<parallel>, #tpu.dimension_semantics<parallel>], iteration_bounds = array<i64: 1, 1>, scalar_prefetch = 0 : i64, scratch_operands = 0 : i64, tpu.core_type = #tpu.core_type<tc>, window_params = [{transform_indices = @transform_0, window_bounds = array<i64: 16, 192>}, {transform_indices = @transform_1, window_bounds = array<i64: 192, 8>}, {transform_indices = @transform_2, window_bounds = array<i64: 1, 8>}, {transform_indices = @transform_3, window_bounds = array<i64: 16, 8>}]} {
    %c0 = arith.constant 0 : index
    %c0_0 = arith.constant 0 : index
    %0 = vector.load %arg2[%c0, %c0_0] : memref<16x192xbf16, #tpu.memory_space<vmem>>, vector<16x192xbf16>
    %c0_1 = arith.constant 0 : index
    %c0_2 = arith.constant 0 : index
    %1 = vector.load %arg3[%c0_1, %c0_2] : memref<192x8xbf16, #tpu.memory_space<vmem>>, vector<192x8xbf16>
    %cst = arith.constant dense<0.000000e+00> : vector<16x8xf32>
    %2 = tpu.matmul %0, %1, %cst {dimension_numbers = #tpu.dot_dimension_numbers<[1], [0], [0], [1], [0, 0, 1, 1], [], []>} : vector<16x192xbf16>, vector<192x8xbf16>, vector<16x8xf32> -> vector<16x8xf32>
    %c0_3 = arith.constant 0 : index
    %c0_4 = arith.constant 0 : index
    %3 = vector.load %arg4[%c0_3, %c0_4] : memref<1x8xf32, #tpu.memory_space<vmem>>, vector<1x8xf32>
    %4 = vector.broadcast %3 : vector<1x8xf32> to vector<16x8xf32>
    %5 = arith.addf %2, %4 : vector<16x8xf32>
    %6 = arith.truncf %5 : vector<16x8xf32> to vector<16x8xbf16>
    %c0_5 = arith.constant 0 : index
    %c0_6 = arith.constant 0 : index
    %7 = vector.load %arg5[%c0_5, %c0_6] : memref<16x8xbf16, #tpu.memory_space<vmem>>, vector<16x8xbf16>
    tpu.vector_store %arg5[%c0_5, %c0_6], %6 {strides = array<i32>} : memref<16x8xbf16, #tpu.memory_space<vmem>>, vector<16x8xbf16>,
    return
  }
  func.func @transform_0(%arg0: i32, %arg1: i32) -> (i32, i32) {
    %c0_i32 = arith.constant 0 : i32
    %c0_i32_0 = arith.constant 0 : i32
    return %arg0, %c0_i32 : i32, i32
  }
  func.func @transform_1(%arg0: i32, %arg1: i32) -> (i32, i32) {
    %c0_i32 = arith.constant 0 : i32
    %c0_i32_0 = arith.constant 0 : i32
    return %c0_i32, %arg1 : i32, i32
  }
  func.func @transform_2(%arg0: i32, %arg1: i32) -> (i32, i32) {
    %c0_i32 = arith.constant 0 : i32
    %c0_i32_0 = arith.constant 0 : i32
    return %c0_i32, %arg1 : i32, i32
  }
  func.func @transform_3(%arg0: i32, %arg1: i32) -> (i32, i32) {
    %c0_i32 = arith.constant 0 : i32
    return %arg0, %arg1 : i32, i32
  }
}

module attributes {stable_mosaic.version = 11 : i64} {
  func.func @_matmul_bias_act_kernel(%arg0: i32, %arg1: i32, %arg2: memref<336x5xbf16, #tpu.memory_space<vmem>>, %arg3: memref<5x8xbf16, #tpu.memory_space<vmem>>, %arg4: memref<1x8xf32, #tpu.memory_space<vmem>>, %arg5: memref<336x8xbf16, #tpu.memory_space<vmem>>) attributes {dimension_semantics = [#tpu.dimension_semantics<parallel>, #tpu.dimension_semantics<parallel>], iteration_bounds = array<i64: 1, 1>, scalar_prefetch = 0 : i64, scratch_operands = 0 : i64, tpu.core_type = #tpu.core_type<tc>, window_params = [{transform_indices = @transform_0, window_bounds = array<i64: 336, 5>}, {transform_indices = @transform_1, window_bounds = array<i64: 5, 8>}, {transform_indices = @transform_2, window_bounds = array<i64: 1, 8>}, {transform_indices = @transform_3, window_bounds = array<i64: 336, 8>}]} {
    %c0 = arith.constant 0 : index
    %c0_0 = arith.constant 0 : index
    %0 = vector.load %arg2[%c0, %c0_0] : memref<336x5xbf16, #tpu.memory_space<vmem>>, vector<336x5xbf16>
    %c0_1 = arith.constant 0 : index
    %c0_2 = arith.constant 0 : index
    %1 = vector.load %arg3[%c0_1, %c0_2] : memref<5x8xbf16, #tpu.memory_space<vmem>>, vector<5x8xbf16>
    %cst = arith.constant dense<0.000000e+00> : vector<336x8xf32>
    %2 = tpu.matmul %0, %1, %cst {dimension_numbers = #tpu.dot_dimension_numbers<[1], [0], [0], [1], [0, 0, 1, 1], [], []>} : vector<336x5xbf16>, vector<5x8xbf16>, vector<336x8xf32> -> vector<336x8xf32>
    %c0_3 = arith.constant 0 : index
    %c0_4 = arith.constant 0 : index
    %3 = vector.load %arg4[%c0_3, %c0_4] : memref<1x8xf32, #tpu.memory_space<vmem>>, vector<1x8xf32>
    %4 = vector.broadcast %3 : vector<1x8xf32> to vector<336x8xf32>
    %5 = arith.addf %2, %4 : vector<336x8xf32>
    %cst_5 = arith.constant 0.000000e+00 : f32
    %6 = vector.broadcast %cst_5 : f32 to vector<336x8xf32>
    %7 = arith.cmpf oge, %5, %6 : vector<336x8xf32>
    %cst_6 = arith.constant 1.000000e-01 : f32
    %8 = vector.broadcast %cst_6 : f32 to vector<336x8xf32>
    %9 = arith.mulf %8, %5 : vector<336x8xf32>
    %10 = arith.select %7, %5, %9 : vector<336x8xi1>, vector<336x8xf32>
    %11 = arith.truncf %10 : vector<336x8xf32> to vector<336x8xbf16>
    %c0_7 = arith.constant 0 : index
    %c0_8 = arith.constant 0 : index
    %12 = vector.load %arg5[%c0_7, %c0_8] : memref<336x8xbf16, #tpu.memory_space<vmem>>, vector<336x8xbf16>
    tpu.vector_store %arg5[%c0_7, %c0_8], %11 {strides = array<i32>} : memref<336x8xbf16, #tpu.memory_space<vmem>>, vector<336x8xbf16>,
    return
  }
  func.func @transform_0(%arg0: i32, %arg1: i32) -> (i32, i32) {
    %c0_i32 = arith.constant 0 : i32
    %c0_i32_0 = arith.constant 0 : i32
    return %arg0, %c0_i32 : i32, i32
  }
  func.func @transform_1(%arg0: i32, %arg1: i32) -> (i32, i32) {
    %c0_i32 = arith.constant 0 : i32
    %c0_i32_0 = arith.constant 0 : i32
    return %c0_i32, %arg1 : i32, i32
  }
  func.func @transform_2(%arg0: i32, %arg1: i32) -> (i32, i32) {
    %c0_i32 = arith.constant 0 : i32
    %c0_i32_0 = arith.constant 0 : i32
    return %c0_i32, %arg1 : i32, i32
  }
  func.func @transform_3(%arg0: i32, %arg1: i32) -> (i32, i32) {
    %c0_i32 = arith.constant 0 : i32
    return %arg0, %arg1 : i32, i32
  }
}

module attributes {stable_mosaic.version = 11 : i64} {
  func.func @_matmul_bias_act_kernel(%arg0: i32, %arg1: i32, %arg2: memref<128x40xbf16, #tpu.memory_space<vmem>>, %arg3: memref<40x16xbf16, #tpu.memory_space<vmem>>, %arg4: memref<1x16xf32, #tpu.memory_space<vmem>>, %arg5: memref<128x16xbf16, #tpu.memory_space<vmem>>) attributes {dimension_semantics = [#tpu.dimension_semantics<parallel>, #tpu.dimension_semantics<parallel>], iteration_bounds = array<i64: 1, 1>, scalar_prefetch = 0 : i64, scratch_operands = 0 : i64, tpu.core_type = #tpu.core_type<tc>, window_params = [{transform_indices = @transform_0, window_bounds = array<i64: 128, 40>}, {transform_indices = @transform_1, window_bounds = array<i64: 40, 16>}, {transform_indices = @transform_2, window_bounds = array<i64: 1, 16>}, {transform_indices = @transform_3, window_bounds = array<i64: 128, 16>}]} {
    %c0 = arith.constant 0 : index
    %c0_0 = arith.constant 0 : index
    %0 = vector.load %arg2[%c0, %c0_0] : memref<128x40xbf16, #tpu.memory_space<vmem>>, vector<128x40xbf16>
    %c0_1 = arith.constant 0 : index
    %c0_2 = arith.constant 0 : index
    %1 = vector.load %arg3[%c0_1, %c0_2] : memref<40x16xbf16, #tpu.memory_space<vmem>>, vector<40x16xbf16>
    %cst = arith.constant dense<0.000000e+00> : vector<128x16xf32>
    %2 = tpu.matmul %0, %1, %cst {dimension_numbers = #tpu.dot_dimension_numbers<[1], [0], [0], [1], [0, 0, 1, 1], [], []>} : vector<128x40xbf16>, vector<40x16xbf16>, vector<128x16xf32> -> vector<128x16xf32>
    %c0_3 = arith.constant 0 : index
    %c0_4 = arith.constant 0 : index
    %3 = vector.load %arg4[%c0_3, %c0_4] : memref<1x16xf32, #tpu.memory_space<vmem>>, vector<1x16xf32>
    %4 = vector.broadcast %3 : vector<1x16xf32> to vector<128x16xf32>
    %5 = arith.addf %2, %4 : vector<128x16xf32>
    %cst_5 = arith.constant 0.000000e+00 : f32
    %6 = vector.broadcast %cst_5 : f32 to vector<128x16xf32>
    %7 = arith.cmpf oge, %5, %6 : vector<128x16xf32>
    %cst_6 = arith.constant 1.000000e-01 : f32
    %8 = vector.broadcast %cst_6 : f32 to vector<128x16xf32>
    %9 = arith.mulf %8, %5 : vector<128x16xf32>
    %10 = arith.select %7, %5, %9 : vector<128x16xi1>, vector<128x16xf32>
    %11 = arith.truncf %10 : vector<128x16xf32> to vector<128x16xbf16>
    %c0_7 = arith.constant 0 : index
    %c0_8 = arith.constant 0 : index
    %12 = vector.load %arg5[%c0_7, %c0_8] : memref<128x16xbf16, #tpu.memory_space<vmem>>, vector<128x16xbf16>
    tpu.vector_store %arg5[%c0_7, %c0_8], %11 {strides = array<i32>} : memref<128x16xbf16, #tpu.memory_space<vmem>>, vector<128x16xbf16>,
    return
  }
  func.func @transform_0(%arg0: i32, %arg1: i32) -> (i32, i32) {
    %c0_i32 = arith.constant 0 : i32
    %c0_i32_0 = arith.constant 0 : i32
    return %arg0, %c0_i32 : i32, i32
  }
  func.func @transform_1(%arg0: i32, %arg1: i32) -> (i32, i32) {
    %c0_i32 = arith.constant 0 : i32
    %c0_i32_0 = arith.constant 0 : i32
    return %c0_i32, %arg1 : i32, i32
  }
  func.func @transform_2(%arg0: i32, %arg1: i32) -> (i32, i32) {
    %c0_i32 = arith.constant 0 : i32
    %c0_i32_0 = arith.constant 0 : i32
    return %c0_i32, %arg1 : i32, i32
  }
  func.func @transform_3(%arg0: i32, %arg1: i32) -> (i32, i32) {
    %c0_i32 = arith.constant 0 : i32
    return %arg0, %arg1 : i32, i32
  }
}

module attributes {stable_mosaic.version = 11 : i64} {
  func.func @_matmul_bias_act_kernel(%arg0: i32, %arg1: i32, %arg2: memref<32x160xbf16, #tpu.memory_space<vmem>>, %arg3: memref<160x64xbf16, #tpu.memory_space<vmem>>, %arg4: memref<1x64xf32, #tpu.memory_space<vmem>>, %arg5: memref<32x64xbf16, #tpu.memory_space<vmem>>) attributes {dimension_semantics = [#tpu.dimension_semantics<parallel>, #tpu.dimension_semantics<parallel>], iteration_bounds = array<i64: 1, 1>, scalar_prefetch = 0 : i64, scratch_operands = 0 : i64, tpu.core_type = #tpu.core_type<tc>, window_params = [{transform_indices = @transform_0, window_bounds = array<i64: 32, 160>}, {transform_indices = @transform_1, window_bounds = array<i64: 160, 64>}, {transform_indices = @transform_2, window_bounds = array<i64: 1, 64>}, {transform_indices = @transform_3, window_bounds = array<i64: 32, 64>}]} {
    %c0 = arith.constant 0 : index
    %c0_0 = arith.constant 0 : index
    %0 = vector.load %arg2[%c0, %c0_0] : memref<32x160xbf16, #tpu.memory_space<vmem>>, vector<32x160xbf16>
    %c0_1 = arith.constant 0 : index
    %c0_2 = arith.constant 0 : index
    %1 = vector.load %arg3[%c0_1, %c0_2] : memref<160x64xbf16, #tpu.memory_space<vmem>>, vector<160x64xbf16>
    %cst = arith.constant dense<0.000000e+00> : vector<32x64xf32>
    %2 = tpu.matmul %0, %1, %cst {dimension_numbers = #tpu.dot_dimension_numbers<[1], [0], [0], [1], [0, 0, 1, 1], [], []>} : vector<32x160xbf16>, vector<160x64xbf16>, vector<32x64xf32> -> vector<32x64xf32>
    %c0_3 = arith.constant 0 : index
    %c0_4 = arith.constant 0 : index
    %3 = vector.load %arg4[%c0_3, %c0_4] : memref<1x64xf32, #tpu.memory_space<vmem>>, vector<1x64xf32>
    %4 = vector.broadcast %3 : vector<1x64xf32> to vector<32x64xf32>
    %5 = arith.addf %2, %4 : vector<32x64xf32>
    %cst_5 = arith.constant 0.000000e+00 : f32
    %6 = vector.broadcast %cst_5 : f32 to vector<32x64xf32>
    %7 = arith.cmpf oge, %5, %6 : vector<32x64xf32>
    %cst_6 = arith.constant 1.000000e-01 : f32
    %8 = vector.broadcast %cst_6 : f32 to vector<32x64xf32>
    %9 = arith.mulf %8, %5 : vector<32x64xf32>
    %10 = arith.select %7, %5, %9 : vector<32x64xi1>, vector<32x64xf32>
    %11 = arith.truncf %10 : vector<32x64xf32> to vector<32x64xbf16>
    %c0_7 = arith.constant 0 : index
    %c0_8 = arith.constant 0 : index
    %12 = vector.load %arg5[%c0_7, %c0_8] : memref<32x64xbf16, #tpu.memory_space<vmem>>, vector<32x64xbf16>
    tpu.vector_store %arg5[%c0_7, %c0_8], %11 {strides = array<i32>} : memref<32x64xbf16, #tpu.memory_space<vmem>>, vector<32x64xbf16>,
    return
  }
  func.func @transform_0(%arg0: i32, %arg1: i32) -> (i32, i32) {
    %c0_i32 = arith.constant 0 : i32
    %c0_i32_0 = arith.constant 0 : i32
    return %arg0, %c0_i32 : i32, i32
  }
  func.func @transform_1(%arg0: i32, %arg1: i32) -> (i32, i32) {
    %c0_i32 = arith.constant 0 : i32
    %c0_i32_0 = arith.constant 0 : i32
    return %c0_i32, %arg1 : i32, i32
  }
  func.func @transform_2(%arg0: i32, %arg1: i32) -> (i32, i32) {
    %c0_i32 = arith.constant 0 : i32
    %c0_i32_0 = arith.constant 0 : i32
    return %c0_i32, %arg1 : i32, i32
  }
  func.func @transform_3(%arg0: i32, %arg1: i32) -> (i32, i32) {
    %c0_i32 = arith.constant 0 : i32
    return %arg0, %arg1 : i32, i32
  }
}

module attributes {stable_mosaic.version = 11 : i64} {
  func.func @_matmul_bias_act_kernel(%arg0: i32, %arg1: i32, %arg2: memref<32x320xbf16, #tpu.memory_space<vmem>>, %arg3: memref<320x64xbf16, #tpu.memory_space<vmem>>, %arg4: memref<1x64xf32, #tpu.memory_space<vmem>>, %arg5: memref<32x64xbf16, #tpu.memory_space<vmem>>) attributes {dimension_semantics = [#tpu.dimension_semantics<parallel>, #tpu.dimension_semantics<parallel>], iteration_bounds = array<i64: 1, 1>, scalar_prefetch = 0 : i64, scratch_operands = 0 : i64, tpu.core_type = #tpu.core_type<tc>, window_params = [{transform_indices = @transform_0, window_bounds = array<i64: 32, 320>}, {transform_indices = @transform_1, window_bounds = array<i64: 320, 64>}, {transform_indices = @transform_2, window_bounds = array<i64: 1, 64>}, {transform_indices = @transform_3, window_bounds = array<i64: 32, 64>}]} {
    %c0 = arith.constant 0 : index
    %c0_0 = arith.constant 0 : index
    %0 = vector.load %arg2[%c0, %c0_0] : memref<32x320xbf16, #tpu.memory_space<vmem>>, vector<32x320xbf16>
    %c0_1 = arith.constant 0 : index
    %c0_2 = arith.constant 0 : index
    %1 = vector.load %arg3[%c0_1, %c0_2] : memref<320x64xbf16, #tpu.memory_space<vmem>>, vector<320x64xbf16>
    %cst = arith.constant dense<0.000000e+00> : vector<32x64xf32>
    %2 = tpu.matmul %0, %1, %cst {dimension_numbers = #tpu.dot_dimension_numbers<[1], [0], [0], [1], [0, 0, 1, 1], [], []>} : vector<32x320xbf16>, vector<320x64xbf16>, vector<32x64xf32> -> vector<32x64xf32>
    %c0_3 = arith.constant 0 : index
    %c0_4 = arith.constant 0 : index
    %3 = vector.load %arg4[%c0_3, %c0_4] : memref<1x64xf32, #tpu.memory_space<vmem>>, vector<1x64xf32>
    %4 = vector.broadcast %3 : vector<1x64xf32> to vector<32x64xf32>
    %5 = arith.addf %2, %4 : vector<32x64xf32>
    %cst_5 = arith.constant 0.000000e+00 : f32
    %6 = vector.broadcast %cst_5 : f32 to vector<32x64xf32>
    %7 = arith.cmpf oge, %5, %6 : vector<32x64xf32>
    %cst_6 = arith.constant 1.000000e-01 : f32
    %8 = vector.broadcast %cst_6 : f32 to vector<32x64xf32>
    %9 = arith.mulf %8, %5 : vector<32x64xf32>
    %10 = arith.select %7, %5, %9 : vector<32x64xi1>, vector<32x64xf32>
    %11 = arith.truncf %10 : vector<32x64xf32> to vector<32x64xbf16>
    %c0_7 = arith.constant 0 : index
    %c0_8 = arith.constant 0 : index
    %12 = vector.load %arg5[%c0_7, %c0_8] : memref<32x64xbf16, #tpu.memory_space<vmem>>, vector<32x64xbf16>
    tpu.vector_store %arg5[%c0_7, %c0_8], %11 {strides = array<i32>} : memref<32x64xbf16, #tpu.memory_space<vmem>>, vector<32x64xbf16>,
    return
  }
  func.func @transform_0(%arg0: i32, %arg1: i32) -> (i32, i32) {
    %c0_i32 = arith.constant 0 : i32
    %c0_i32_0 = arith.constant 0 : i32
    return %arg0, %c0_i32 : i32, i32
  }
  func.func @transform_1(%arg0: i32, %arg1: i32) -> (i32, i32) {
    %c0_i32 = arith.constant 0 : i32
    %c0_i32_0 = arith.constant 0 : i32
    return %c0_i32, %arg1 : i32, i32
  }
  func.func @transform_2(%arg0: i32, %arg1: i32) -> (i32, i32) {
    %c0_i32 = arith.constant 0 : i32
    %c0_i32_0 = arith.constant 0 : i32
    return %c0_i32, %arg1 : i32, i32
  }
  func.func @transform_3(%arg0: i32, %arg1: i32) -> (i32, i32) {
    %c0_i32 = arith.constant 0 : i32
    return %arg0, %arg1 : i32, i32
  }
}

module attributes {stable_mosaic.version = 11 : i64} {
  func.func @_matmul_bias_act_kernel(%arg0: i32, %arg1: i32, %arg2: memref<32x192xbf16, #tpu.memory_space<vmem>>, %arg3: memref<192x8xbf16, #tpu.memory_space<vmem>>, %arg4: memref<1x8xf32, #tpu.memory_space<vmem>>, %arg5: memref<32x8xbf16, #tpu.memory_space<vmem>>) attributes {dimension_semantics = [#tpu.dimension_semantics<parallel>, #tpu.dimension_semantics<parallel>], iteration_bounds = array<i64: 1, 1>, scalar_prefetch = 0 : i64, scratch_operands = 0 : i64, tpu.core_type = #tpu.core_type<tc>, window_params = [{transform_indices = @transform_0, window_bounds = array<i64: 32, 192>}, {transform_indices = @transform_1, window_bounds = array<i64: 192, 8>}, {transform_indices = @transform_2, window_bounds = array<i64: 1, 8>}, {transform_indices = @transform_3, window_bounds = array<i64: 32, 8>}]} {
    %c0 = arith.constant 0 : index
    %c0_0 = arith.constant 0 : index
    %0 = vector.load %arg2[%c0, %c0_0] : memref<32x192xbf16, #tpu.memory_space<vmem>>, vector<32x192xbf16>
    %c0_1 = arith.constant 0 : index
    %c0_2 = arith.constant 0 : index
    %1 = vector.load %arg3[%c0_1, %c0_2] : memref<192x8xbf16, #tpu.memory_space<vmem>>, vector<192x8xbf16>
    %cst = arith.constant dense<0.000000e+00> : vector<32x8xf32>
    %2 = tpu.matmul %0, %1, %cst {dimension_numbers = #tpu.dot_dimension_numbers<[1], [0], [0], [1], [0, 0, 1, 1], [], []>} : vector<32x192xbf16>, vector<192x8xbf16>, vector<32x8xf32> -> vector<32x8xf32>
    %c0_3 = arith.constant 0 : index
    %c0_4 = arith.constant 0 : index
    %3 = vector.load %arg4[%c0_3, %c0_4] : memref<1x8xf32, #tpu.memory_space<vmem>>, vector<1x8xf32>
    %4 = vector.broadcast %3 : vector<1x8xf32> to vector<32x8xf32>
    %5 = arith.addf %2, %4 : vector<32x8xf32>
    %6 = arith.truncf %5 : vector<32x8xf32> to vector<32x8xbf16>
    %c0_5 = arith.constant 0 : index
    %c0_6 = arith.constant 0 : index
    %7 = vector.load %arg5[%c0_5, %c0_6] : memref<32x8xbf16, #tpu.memory_space<vmem>>, vector<32x8xbf16>
    tpu.vector_store %arg5[%c0_5, %c0_6], %6 {strides = array<i32>} : memref<32x8xbf16, #tpu.memory_space<vmem>>, vector<32x8xbf16>,
    return
  }
  func.func @transform_0(%arg0: i32, %arg1: i32) -> (i32, i32) {
    %c0_i32 = arith.constant 0 : i32
    %c0_i32_0 = arith.constant 0 : i32
    return %arg0, %c0_i32 : i32, i32
  }
  func.func @transform_1(%arg0: i32, %arg1: i32) -> (i32, i32) {
    %c0_i32 = arith.constant 0 : i32
    %c0_i32_0 = arith.constant 0 : i32
    return %c0_i32, %arg1 : i32, i32
  }
  func.func @transform_2(%arg0: i32, %arg1: i32) -> (i32, i32) {
    %c0_i32 = arith.constant 0 : i32
    %c0_i32_0 = arith.constant 0 : i32
    return %c0_i32, %arg1 : i32, i32
  }
  func.func @transform_3(%arg0: i32, %arg1: i32) -> (i32, i32) {
    %c0_i32 = arith.constant 0 : i32
    return %arg0, %arg1 : i32, i32
  }
}

module attributes {stable_mosaic.version = 11 : i64} {
  func.func @_matmul_bias_act_kernel(%arg0: i32, %arg1: i32, %arg2: memref<64x80xbf16, #tpu.memory_space<vmem>>, %arg3: memref<80x32xbf16, #tpu.memory_space<vmem>>, %arg4: memref<1x32xf32, #tpu.memory_space<vmem>>, %arg5: memref<64x32xbf16, #tpu.memory_space<vmem>>) attributes {dimension_semantics = [#tpu.dimension_semantics<parallel>, #tpu.dimension_semantics<parallel>], iteration_bounds = array<i64: 1, 1>, scalar_prefetch = 0 : i64, scratch_operands = 0 : i64, tpu.core_type = #tpu.core_type<tc>, window_params = [{transform_indices = @transform_0, window_bounds = array<i64: 64, 80>}, {transform_indices = @transform_1, window_bounds = array<i64: 80, 32>}, {transform_indices = @transform_2, window_bounds = array<i64: 1, 32>}, {transform_indices = @transform_3, window_bounds = array<i64: 64, 32>}]} {
    %c0 = arith.constant 0 : index
    %c0_0 = arith.constant 0 : index
    %0 = vector.load %arg2[%c0, %c0_0] : memref<64x80xbf16, #tpu.memory_space<vmem>>, vector<64x80xbf16>
    %c0_1 = arith.constant 0 : index
    %c0_2 = arith.constant 0 : index
    %1 = vector.load %arg3[%c0_1, %c0_2] : memref<80x32xbf16, #tpu.memory_space<vmem>>, vector<80x32xbf16>
    %cst = arith.constant dense<0.000000e+00> : vector<64x32xf32>
    %2 = tpu.matmul %0, %1, %cst {dimension_numbers = #tpu.dot_dimension_numbers<[1], [0], [0], [1], [0, 0, 1, 1], [], []>} : vector<64x80xbf16>, vector<80x32xbf16>, vector<64x32xf32> -> vector<64x32xf32>
    %c0_3 = arith.constant 0 : index
    %c0_4 = arith.constant 0 : index
    %3 = vector.load %arg4[%c0_3, %c0_4] : memref<1x32xf32, #tpu.memory_space<vmem>>, vector<1x32xf32>
    %4 = vector.broadcast %3 : vector<1x32xf32> to vector<64x32xf32>
    %5 = arith.addf %2, %4 : vector<64x32xf32>
    %cst_5 = arith.constant 0.000000e+00 : f32
    %6 = vector.broadcast %cst_5 : f32 to vector<64x32xf32>
    %7 = arith.cmpf oge, %5, %6 : vector<64x32xf32>
    %cst_6 = arith.constant 1.000000e-01 : f32
    %8 = vector.broadcast %cst_6 : f32 to vector<64x32xf32>
    %9 = arith.mulf %8, %5 : vector<64x32xf32>
    %10 = arith.select %7, %5, %9 : vector<64x32xi1>, vector<64x32xf32>
    %11 = arith.truncf %10 : vector<64x32xf32> to vector<64x32xbf16>
    %c0_7 = arith.constant 0 : index
    %c0_8 = arith.constant 0 : index
    %12 = vector.load %arg5[%c0_7, %c0_8] : memref<64x32xbf16, #tpu.memory_space<vmem>>, vector<64x32xbf16>
    tpu.vector_store %arg5[%c0_7, %c0_8], %11 {strides = array<i32>} : memref<64x32xbf16, #tpu.memory_space<vmem>>, vector<64x32xbf16>,
    return
  }
  func.func @transform_0(%arg0: i32, %arg1: i32) -> (i32, i32) {
    %c0_i32 = arith.constant 0 : i32
    %c0_i32_0 = arith.constant 0 : i32
    return %arg0, %c0_i32 : i32, i32
  }
  func.func @transform_1(%arg0: i32, %arg1: i32) -> (i32, i32) {
    %c0_i32 = arith.constant 0 : i32
    %c0_i32_0 = arith.constant 0 : i32
    return %c0_i32, %arg1 : i32, i32
  }
  func.func @transform_2(%arg0: i32, %arg1: i32) -> (i32, i32) {
    %c0_i32 = arith.constant 0 : i32
    %c0_i32_0 = arith.constant 0 : i32
    return %c0_i32, %arg1 : i32, i32
  }
  func.func @transform_3(%arg0: i32, %arg1: i32) -> (i32, i32) {
    %c0_i32 = arith.constant 0 : i32
    return %arg0, %arg1 : i32, i32
  }
}

module attributes {stable_mosaic.version = 11 : i64} {
  func.func @_matmul_bias_act_kernel(%arg0: i32, %arg1: i32, %arg2: memref<352x5xbf16, #tpu.memory_space<vmem>>, %arg3: memref<5x8xbf16, #tpu.memory_space<vmem>>, %arg4: memref<1x8xf32, #tpu.memory_space<vmem>>, %arg5: memref<352x8xbf16, #tpu.memory_space<vmem>>) attributes {dimension_semantics = [#tpu.dimension_semantics<parallel>, #tpu.dimension_semantics<parallel>], iteration_bounds = array<i64: 1, 1>, scalar_prefetch = 0 : i64, scratch_operands = 0 : i64, tpu.core_type = #tpu.core_type<tc>, window_params = [{transform_indices = @transform_0, window_bounds = array<i64: 352, 5>}, {transform_indices = @transform_1, window_bounds = array<i64: 5, 8>}, {transform_indices = @transform_2, window_bounds = array<i64: 1, 8>}, {transform_indices = @transform_3, window_bounds = array<i64: 352, 8>}]} {
    %c0 = arith.constant 0 : index
    %c0_0 = arith.constant 0 : index
    %0 = vector.load %arg2[%c0, %c0_0] : memref<352x5xbf16, #tpu.memory_space<vmem>>, vector<352x5xbf16>
    %c0_1 = arith.constant 0 : index
    %c0_2 = arith.constant 0 : index
    %1 = vector.load %arg3[%c0_1, %c0_2] : memref<5x8xbf16, #tpu.memory_space<vmem>>, vector<5x8xbf16>
    %cst = arith.constant dense<0.000000e+00> : vector<352x8xf32>
    %2 = tpu.matmul %0, %1, %cst {dimension_numbers = #tpu.dot_dimension_numbers<[1], [0], [0], [1], [0, 0, 1, 1], [], []>} : vector<352x5xbf16>, vector<5x8xbf16>, vector<352x8xf32> -> vector<352x8xf32>
    %c0_3 = arith.constant 0 : index
    %c0_4 = arith.constant 0 : index
    %3 = vector.load %arg4[%c0_3, %c0_4] : memref<1x8xf32, #tpu.memory_space<vmem>>, vector<1x8xf32>
    %4 = vector.broadcast %3 : vector<1x8xf32> to vector<352x8xf32>
    %5 = arith.addf %2, %4 : vector<352x8xf32>
    %cst_5 = arith.constant 0.000000e+00 : f32
    %6 = vector.broadcast %cst_5 : f32 to vector<352x8xf32>
    %7 = arith.cmpf oge, %5, %6 : vector<352x8xf32>
    %cst_6 = arith.constant 1.000000e-01 : f32
    %8 = vector.broadcast %cst_6 : f32 to vector<352x8xf32>
    %9 = arith.mulf %8, %5 : vector<352x8xf32>
    %10 = arith.select %7, %5, %9 : vector<352x8xi1>, vector<352x8xf32>
    %11 = arith.truncf %10 : vector<352x8xf32> to vector<352x8xbf16>
    %c0_7 = arith.constant 0 : index
    %c0_8 = arith.constant 0 : index
    %12 = vector.load %arg5[%c0_7, %c0_8] : memref<352x8xbf16, #tpu.memory_space<vmem>>, vector<352x8xbf16>
    tpu.vector_store %arg5[%c0_7, %c0_8], %11 {strides = array<i32>} : memref<352x8xbf16, #tpu.memory_space<vmem>>, vector<352x8xbf16>,
    return
  }
  func.func @transform_0(%arg0: i32, %arg1: i32) -> (i32, i32) {
    %c0_i32 = arith.constant 0 : i32
    %c0_i32_0 = arith.constant 0 : i32
    return %arg0, %c0_i32 : i32, i32
  }
  func.func @transform_1(%arg0: i32, %arg1: i32) -> (i32, i32) {
    %c0_i32 = arith.constant 0 : i32
    %c0_i32_0 = arith.constant 0 : i32
    return %c0_i32, %arg1 : i32, i32
  }
  func.func @transform_2(%arg0: i32, %arg1: i32) -> (i32, i32) {
    %c0_i32 = arith.constant 0 : i32
    %c0_i32_0 = arith.constant 0 : i32
    return %c0_i32, %arg1 : i32, i32
  }
  func.func @transform_3(%arg0: i32, %arg1: i32) -> (i32, i32) {
    %c0_i32 = arith.constant 0 : i32
    return %arg0, %arg1 : i32, i32
  }
}

module attributes {stable_mosaic.version = 11 : i64} {
  func.func @_matmul_bias_act_kernel(%arg0: i32, %arg1: i32, %arg2: memref<144x40xbf16, #tpu.memory_space<vmem>>, %arg3: memref<40x16xbf16, #tpu.memory_space<vmem>>, %arg4: memref<1x16xf32, #tpu.memory_space<vmem>>, %arg5: memref<144x16xbf16, #tpu.memory_space<vmem>>) attributes {dimension_semantics = [#tpu.dimension_semantics<parallel>, #tpu.dimension_semantics<parallel>], iteration_bounds = array<i64: 1, 1>, scalar_prefetch = 0 : i64, scratch_operands = 0 : i64, tpu.core_type = #tpu.core_type<tc>, window_params = [{transform_indices = @transform_0, window_bounds = array<i64: 144, 40>}, {transform_indices = @transform_1, window_bounds = array<i64: 40, 16>}, {transform_indices = @transform_2, window_bounds = array<i64: 1, 16>}, {transform_indices = @transform_3, window_bounds = array<i64: 144, 16>}]} {
    %c0 = arith.constant 0 : index
    %c0_0 = arith.constant 0 : index
    %0 = vector.load %arg2[%c0, %c0_0] : memref<144x40xbf16, #tpu.memory_space<vmem>>, vector<144x40xbf16>
    %c0_1 = arith.constant 0 : index
    %c0_2 = arith.constant 0 : index
    %1 = vector.load %arg3[%c0_1, %c0_2] : memref<40x16xbf16, #tpu.memory_space<vmem>>, vector<40x16xbf16>
    %cst = arith.constant dense<0.000000e+00> : vector<144x16xf32>
    %2 = tpu.matmul %0, %1, %cst {dimension_numbers = #tpu.dot_dimension_numbers<[1], [0], [0], [1], [0, 0, 1, 1], [], []>} : vector<144x40xbf16>, vector<40x16xbf16>, vector<144x16xf32> -> vector<144x16xf32>
    %c0_3 = arith.constant 0 : index
    %c0_4 = arith.constant 0 : index
    %3 = vector.load %arg4[%c0_3, %c0_4] : memref<1x16xf32, #tpu.memory_space<vmem>>, vector<1x16xf32>
    %4 = vector.broadcast %3 : vector<1x16xf32> to vector<144x16xf32>
    %5 = arith.addf %2, %4 : vector<144x16xf32>
    %cst_5 = arith.constant 0.000000e+00 : f32
    %6 = vector.broadcast %cst_5 : f32 to vector<144x16xf32>
    %7 = arith.cmpf oge, %5, %6 : vector<144x16xf32>
    %cst_6 = arith.constant 1.000000e-01 : f32
    %8 = vector.broadcast %cst_6 : f32 to vector<144x16xf32>
    %9 = arith.mulf %8, %5 : vector<144x16xf32>
    %10 = arith.select %7, %5, %9 : vector<144x16xi1>, vector<144x16xf32>
    %11 = arith.truncf %10 : vector<144x16xf32> to vector<144x16xbf16>
    %c0_7 = arith.constant 0 : index
    %c0_8 = arith.constant 0 : index
    %12 = vector.load %arg5[%c0_7, %c0_8] : memref<144x16xbf16, #tpu.memory_space<vmem>>, vector<144x16xbf16>
    tpu.vector_store %arg5[%c0_7, %c0_8], %11 {strides = array<i32>} : memref<144x16xbf16, #tpu.memory_space<vmem>>, vector<144x16xbf16>,
    return
  }
  func.func @transform_0(%arg0: i32, %arg1: i32) -> (i32, i32) {
    %c0_i32 = arith.constant 0 : i32
    %c0_i32_0 = arith.constant 0 : i32
    return %arg0, %c0_i32 : i32, i32
  }
  func.func @transform_1(%arg0: i32, %arg1: i32) -> (i32, i32) {
    %c0_i32 = arith.constant 0 : i32
    %c0_i32_0 = arith.constant 0 : i32
    return %c0_i32, %arg1 : i32, i32
  }
  func.func @transform_2(%arg0: i32, %arg1: i32) -> (i32, i32) {
    %c0_i32 = arith.constant 0 : i32
    %c0_i32_0 = arith.constant 0 : i32
    return %c0_i32, %arg1 : i32, i32
  }
  func.func @transform_3(%arg0: i32, %arg1: i32) -> (i32, i32) {
    %c0_i32 = arith.constant 0 : i32
    return %arg0, %arg1 : i32, i32
  }
}

module attributes {stable_mosaic.version = 11 : i64} {
  func.func @_matmul_bias_act_kernel(%arg0: i32, %arg1: i32, %arg2: memref<48x160xbf16, #tpu.memory_space<vmem>>, %arg3: memref<160x64xbf16, #tpu.memory_space<vmem>>, %arg4: memref<1x64xf32, #tpu.memory_space<vmem>>, %arg5: memref<48x64xbf16, #tpu.memory_space<vmem>>) attributes {dimension_semantics = [#tpu.dimension_semantics<parallel>, #tpu.dimension_semantics<parallel>], iteration_bounds = array<i64: 1, 1>, scalar_prefetch = 0 : i64, scratch_operands = 0 : i64, tpu.core_type = #tpu.core_type<tc>, window_params = [{transform_indices = @transform_0, window_bounds = array<i64: 48, 160>}, {transform_indices = @transform_1, window_bounds = array<i64: 160, 64>}, {transform_indices = @transform_2, window_bounds = array<i64: 1, 64>}, {transform_indices = @transform_3, window_bounds = array<i64: 48, 64>}]} {
    %c0 = arith.constant 0 : index
    %c0_0 = arith.constant 0 : index
    %0 = vector.load %arg2[%c0, %c0_0] : memref<48x160xbf16, #tpu.memory_space<vmem>>, vector<48x160xbf16>
    %c0_1 = arith.constant 0 : index
    %c0_2 = arith.constant 0 : index
    %1 = vector.load %arg3[%c0_1, %c0_2] : memref<160x64xbf16, #tpu.memory_space<vmem>>, vector<160x64xbf16>
    %cst = arith.constant dense<0.000000e+00> : vector<48x64xf32>
    %2 = tpu.matmul %0, %1, %cst {dimension_numbers = #tpu.dot_dimension_numbers<[1], [0], [0], [1], [0, 0, 1, 1], [], []>} : vector<48x160xbf16>, vector<160x64xbf16>, vector<48x64xf32> -> vector<48x64xf32>
    %c0_3 = arith.constant 0 : index
    %c0_4 = arith.constant 0 : index
    %3 = vector.load %arg4[%c0_3, %c0_4] : memref<1x64xf32, #tpu.memory_space<vmem>>, vector<1x64xf32>
    %4 = vector.broadcast %3 : vector<1x64xf32> to vector<48x64xf32>
    %5 = arith.addf %2, %4 : vector<48x64xf32>
    %cst_5 = arith.constant 0.000000e+00 : f32
    %6 = vector.broadcast %cst_5 : f32 to vector<48x64xf32>
    %7 = arith.cmpf oge, %5, %6 : vector<48x64xf32>
    %cst_6 = arith.constant 1.000000e-01 : f32
    %8 = vector.broadcast %cst_6 : f32 to vector<48x64xf32>
    %9 = arith.mulf %8, %5 : vector<48x64xf32>
    %10 = arith.select %7, %5, %9 : vector<48x64xi1>, vector<48x64xf32>
    %11 = arith.truncf %10 : vector<48x64xf32> to vector<48x64xbf16>
    %c0_7 = arith.constant 0 : index
    %c0_8 = arith.constant 0 : index
    %12 = vector.load %arg5[%c0_7, %c0_8] : memref<48x64xbf16, #tpu.memory_space<vmem>>, vector<48x64xbf16>
    tpu.vector_store %arg5[%c0_7, %c0_8], %11 {strides = array<i32>} : memref<48x64xbf16, #tpu.memory_space<vmem>>, vector<48x64xbf16>,
    return
  }
  func.func @transform_0(%arg0: i32, %arg1: i32) -> (i32, i32) {
    %c0_i32 = arith.constant 0 : i32
    %c0_i32_0 = arith.constant 0 : i32
    return %arg0, %c0_i32 : i32, i32
  }
  func.func @transform_1(%arg0: i32, %arg1: i32) -> (i32, i32) {
    %c0_i32 = arith.constant 0 : i32
    %c0_i32_0 = arith.constant 0 : i32
    return %c0_i32, %arg1 : i32, i32
  }
  func.func @transform_2(%arg0: i32, %arg1: i32) -> (i32, i32) {
    %c0_i32 = arith.constant 0 : i32
    %c0_i32_0 = arith.constant 0 : i32
    return %c0_i32, %arg1 : i32, i32
  }
  func.func @transform_3(%arg0: i32, %arg1: i32) -> (i32, i32) {
    %c0_i32 = arith.constant 0 : i32
    return %arg0, %arg1 : i32, i32
  }
}

module attributes {stable_mosaic.version = 11 : i64} {
  func.func @_matmul_bias_act_kernel(%arg0: i32, %arg1: i32, %arg2: memref<48x320xbf16, #tpu.memory_space<vmem>>, %arg3: memref<320x64xbf16, #tpu.memory_space<vmem>>, %arg4: memref<1x64xf32, #tpu.memory_space<vmem>>, %arg5: memref<48x64xbf16, #tpu.memory_space<vmem>>) attributes {dimension_semantics = [#tpu.dimension_semantics<parallel>, #tpu.dimension_semantics<parallel>], iteration_bounds = array<i64: 1, 1>, scalar_prefetch = 0 : i64, scratch_operands = 0 : i64, tpu.core_type = #tpu.core_type<tc>, window_params = [{transform_indices = @transform_0, window_bounds = array<i64: 48, 320>}, {transform_indices = @transform_1, window_bounds = array<i64: 320, 64>}, {transform_indices = @transform_2, window_bounds = array<i64: 1, 64>}, {transform_indices = @transform_3, window_bounds = array<i64: 48, 64>}]} {
    %c0 = arith.constant 0 : index
    %c0_0 = arith.constant 0 : index
    %0 = vector.load %arg2[%c0, %c0_0] : memref<48x320xbf16, #tpu.memory_space<vmem>>, vector<48x320xbf16>
    %c0_1 = arith.constant 0 : index
    %c0_2 = arith.constant 0 : index
    %1 = vector.load %arg3[%c0_1, %c0_2] : memref<320x64xbf16, #tpu.memory_space<vmem>>, vector<320x64xbf16>
    %cst = arith.constant dense<0.000000e+00> : vector<48x64xf32>
    %2 = tpu.matmul %0, %1, %cst {dimension_numbers = #tpu.dot_dimension_numbers<[1], [0], [0], [1], [0, 0, 1, 1], [], []>} : vector<48x320xbf16>, vector<320x64xbf16>, vector<48x64xf32> -> vector<48x64xf32>
    %c0_3 = arith.constant 0 : index
    %c0_4 = arith.constant 0 : index
    %3 = vector.load %arg4[%c0_3, %c0_4] : memref<1x64xf32, #tpu.memory_space<vmem>>, vector<1x64xf32>
    %4 = vector.broadcast %3 : vector<1x64xf32> to vector<48x64xf32>
    %5 = arith.addf %2, %4 : vector<48x64xf32>
    %cst_5 = arith.constant 0.000000e+00 : f32
    %6 = vector.broadcast %cst_5 : f32 to vector<48x64xf32>
    %7 = arith.cmpf oge, %5, %6 : vector<48x64xf32>
    %cst_6 = arith.constant 1.000000e-01 : f32
    %8 = vector.broadcast %cst_6 : f32 to vector<48x64xf32>
    %9 = arith.mulf %8, %5 : vector<48x64xf32>
    %10 = arith.select %7, %5, %9 : vector<48x64xi1>, vector<48x64xf32>
    %11 = arith.truncf %10 : vector<48x64xf32> to vector<48x64xbf16>
    %c0_7 = arith.constant 0 : index
    %c0_8 = arith.constant 0 : index
    %12 = vector.load %arg5[%c0_7, %c0_8] : memref<48x64xbf16, #tpu.memory_space<vmem>>, vector<48x64xbf16>
    tpu.vector_store %arg5[%c0_7, %c0_8], %11 {strides = array<i32>} : memref<48x64xbf16, #tpu.memory_space<vmem>>, vector<48x64xbf16>,
    return
  }
  func.func @transform_0(%arg0: i32, %arg1: i32) -> (i32, i32) {
    %c0_i32 = arith.constant 0 : i32
    %c0_i32_0 = arith.constant 0 : i32
    return %arg0, %c0_i32 : i32, i32
  }
  func.func @transform_1(%arg0: i32, %arg1: i32) -> (i32, i32) {
    %c0_i32 = arith.constant 0 : i32
    %c0_i32_0 = arith.constant 0 : i32
    return %c0_i32, %arg1 : i32, i32
  }
  func.func @transform_2(%arg0: i32, %arg1: i32) -> (i32, i32) {
    %c0_i32 = arith.constant 0 : i32
    %c0_i32_0 = arith.constant 0 : i32
    return %c0_i32, %arg1 : i32, i32
  }
  func.func @transform_3(%arg0: i32, %arg1: i32) -> (i32, i32) {
    %c0_i32 = arith.constant 0 : i32
    return %arg0, %arg1 : i32, i32
  }
}

module attributes {stable_mosaic.version = 11 : i64} {
  func.func @_matmul_bias_act_kernel(%arg0: i32, %arg1: i32, %arg2: memref<48x192xbf16, #tpu.memory_space<vmem>>, %arg3: memref<192x8xbf16, #tpu.memory_space<vmem>>, %arg4: memref<1x8xf32, #tpu.memory_space<vmem>>, %arg5: memref<48x8xbf16, #tpu.memory_space<vmem>>) attributes {dimension_semantics = [#tpu.dimension_semantics<parallel>, #tpu.dimension_semantics<parallel>], iteration_bounds = array<i64: 1, 1>, scalar_prefetch = 0 : i64, scratch_operands = 0 : i64, tpu.core_type = #tpu.core_type<tc>, window_params = [{transform_indices = @transform_0, window_bounds = array<i64: 48, 192>}, {transform_indices = @transform_1, window_bounds = array<i64: 192, 8>}, {transform_indices = @transform_2, window_bounds = array<i64: 1, 8>}, {transform_indices = @transform_3, window_bounds = array<i64: 48, 8>}]} {
    %c0 = arith.constant 0 : index
    %c0_0 = arith.constant 0 : index
    %0 = vector.load %arg2[%c0, %c0_0] : memref<48x192xbf16, #tpu.memory_space<vmem>>, vector<48x192xbf16>
    %c0_1 = arith.constant 0 : index
    %c0_2 = arith.constant 0 : index
    %1 = vector.load %arg3[%c0_1, %c0_2] : memref<192x8xbf16, #tpu.memory_space<vmem>>, vector<192x8xbf16>
    %cst = arith.constant dense<0.000000e+00> : vector<48x8xf32>
    %2 = tpu.matmul %0, %1, %cst {dimension_numbers = #tpu.dot_dimension_numbers<[1], [0], [0], [1], [0, 0, 1, 1], [], []>} : vector<48x192xbf16>, vector<192x8xbf16>, vector<48x8xf32> -> vector<48x8xf32>
    %c0_3 = arith.constant 0 : index
    %c0_4 = arith.constant 0 : index
    %3 = vector.load %arg4[%c0_3, %c0_4] : memref<1x8xf32, #tpu.memory_space<vmem>>, vector<1x8xf32>
    %4 = vector.broadcast %3 : vector<1x8xf32> to vector<48x8xf32>
    %5 = arith.addf %2, %4 : vector<48x8xf32>
    %6 = arith.truncf %5 : vector<48x8xf32> to vector<48x8xbf16>
    %c0_5 = arith.constant 0 : index
    %c0_6 = arith.constant 0 : index
    %7 = vector.load %arg5[%c0_5, %c0_6] : memref<48x8xbf16, #tpu.memory_space<vmem>>, vector<48x8xbf16>
    tpu.vector_store %arg5[%c0_5, %c0_6], %6 {strides = array<i32>} : memref<48x8xbf16, #tpu.memory_space<vmem>>, vector<48x8xbf16>,
    return
  }
  func.func @transform_0(%arg0: i32, %arg1: i32) -> (i32, i32) {
    %c0_i32 = arith.constant 0 : i32
    %c0_i32_0 = arith.constant 0 : i32
    return %arg0, %c0_i32 : i32, i32
  }
  func.func @transform_1(%arg0: i32, %arg1: i32) -> (i32, i32) {
    %c0_i32 = arith.constant 0 : i32
    %c0_i32_0 = arith.constant 0 : i32
    return %c0_i32, %arg1 : i32, i32
  }
  func.func @transform_2(%arg0: i32, %arg1: i32) -> (i32, i32) {
    %c0_i32 = arith.constant 0 : i32
    %c0_i32_0 = arith.constant 0 : i32
    return %c0_i32, %arg1 : i32, i32
  }
  func.func @transform_3(%arg0: i32, %arg1: i32) -> (i32, i32) {
    %c0_i32 = arith.constant 0 : i32
    return %arg0, %arg1 : i32, i32
  }
}

</mosaic_0001>

<bundles_post_ra>
// kernel: multi_period_discriminator.30
= control target key start
LH: loop header
LB: loop body
LE: loop exit
PB: predicated region body
PF: predicated region fallthrough
CT: control target
= control target key end

     0   :  { %vm224_vm0 = vcmask 1041408   ;;  %vm225_vm1 = vcmask 1042432   ;;  %vm163_vm2 = vcmask 39936   ;;  %v956_v1 = vmov 65535   ;;  %s1267_s1 = inlined_call_operand.vmem [shape: bf16[5,8], index: 1, kind: input, shape index: {}]   ;;  %s1268_s0 = inlined_call_operand.vmem [shape: bf16[320,5], index: 0, kind: input, shape index: {}]   ;;  %s1269_s2 = inlined_call_operand.vmem [shape: f32[1,8], index: 2, kind: input, shape index: {}]   ;;  %s1270_s3 = inlined_call_operand.vmem [shape: bf16[320,8], index: 3, kind: output, shape index: {}]  }
   0x1   :  { %v55_v0 = vld [vmem:[%s1267_s1] sm:$0x7]  ;;  %v226_v2 = vsel %vm224_vm0, 4294967295, %v956_v1  ;;  %v937_v5 = vld [vmem:[%s1268_s0 + $0x50] sm:$0xff]   ;;  %v938_v7 = vld [vmem:[%s1268_s0 + $0x8] sm:$0xff]   ;;  %vm704_vm3 = vcmask 60416  }
   0x2   :  { %v936_v3 = vld [vmem:[%s1268_s0] sm:$0xff]   ;;  %v227_v4 = vsel %vm225_vm1, %v226_v2, 0  ;;  %913 = vmatprep.mubr.msk.bf16.mxu1 %vm163_vm2, %v937_v5  ;;  %v939_v8 = vld [vmem:[%s1268_s0 + $0x58] sm:$0xff]   ;;  %v940_v9 = vld [vmem:[%s1268_s0 + $0x10] sm:$0xff]  }
   0x3   :  { %v229_v6 = vand.u32 %v227_v4, %v55_v0  ;;  %893 = vmatprep.mubr.msk.bf16.mxu0 %vm163_vm2, %v936_v3  ;;  %v941_v10 = vld [vmem:[%s1268_s0 + $0x60] sm:$0xff]   ;;  %v942_v11 = vld [vmem:[%s1268_s0 + $0x18] sm:$0xff]   ;;  %v943_v12 = vld [vmem:[%s1268_s0 + $0x68] sm:$0xff]  }
   0x4   :  { %v944_v13 = vld [vmem:[%s1268_s0 + $0x20] sm:$0xff]   ;;  %v945_v14 = vld [vmem:[%s1268_s0 + $0x70] sm:$0xff]   ;;  %v946_v15 = vld [vmem:[%s1268_s0 + $0x28] sm:$0xff]  }
   0x5   :  { %891 = vmatprep.subr.bf16.mxu0 %v229_v6  ;;  %933 = vmatprep.subr.bf16.mxu1 %v229_v6  ;;  %v947_v16 = vld [vmem:[%s1268_s0 + $0x78] sm:$0xff]   ;;  %v948_v17 = vld [vmem:[%s1268_s0 + $0x30] sm:$0xff]   ;;  %v949_v18 = vld [vmem:[%s1268_s0 + $0x80] sm:$0xff]  }
   0x6   :  { %892 = vmatpush3.bf16.msra.mxu0 %v229_v6  ;;  %934 = vmatpush3.bf16.msra.mxu1 %v229_v6  ;;  %v950_v19 = vld [vmem:[%s1268_s0 + $0x38] sm:$0xff]   ;;  %v951_v20 = vld [vmem:[%s1268_s0 + $0x88] sm:$0xff]   ;;  %v952_v21 = vld [vmem:[%s1268_s0 + $0x40] sm:$0xff]  }
   0x7   :  { %v953_v22 = vld [vmem:[%s1268_s0 + $0x90] sm:$0xff]   ;;  %v954_v23 = vld [vmem:[%s1268_s0 + $0x48] sm:$0xff]   ;;  %v955_v24 = vld [vmem:[%s1268_s0 + $0x98] sm:$0xff]  }
   0x8   :  { %v1063_v25 = vld [vmem:[%s1269_s2] ss:$0 sm:$0xff] }
   0x9   :  { %894 = vmatmul.mubr.msk.bf16.vlgmr.msra.gmra.mrb[0].mxu0 %vm163_vm2, %v938_v7  ;;  %914 = vmatmul.mubr.msk.bf16.vlgmr.msra.gmra.mrb[0].mxu1 %vm163_vm2, %v939_v8 }
   0xa   :  { %897 = vmatprep.mubr.msk.bf16.mxu0 %vm163_vm2, %v940_v9  ;;  %917 = vmatprep.mubr.msk.bf16.mxu1 %vm163_vm2, %v941_v10 }
  0x11   :  { %898 = vmatmul.mubr.msk.bf16.gmra.mrb[4].mxu0 %vm163_vm2, %v942_v11  ;;  %918 = vmatmul.mubr.msk.bf16.gmra.mrb[4].mxu1 %vm163_vm2, %v943_v12 }
  0x12   :  { %901 = vmatprep.mubr.msk.bf16.mxu0 %vm163_vm2, %v944_v13  ;;  %921 = vmatprep.mubr.msk.bf16.mxu1 %vm163_vm2, %v945_v14 }
  0x19   :  { %902 = vmatmul.mubr.msk.bf16.gmra.mrb[8].mxu0 %vm163_vm2, %v946_v15  ;;  %922 = vmatmul.mubr.msk.bf16.gmra.mrb[8].mxu1 %vm163_vm2, %v947_v16 }
  0x1a   :  { %905 = vmatprep.mubr.msk.bf16.mxu0 %vm163_vm2, %v948_v17  ;;  %925 = vmatprep.mubr.msk.bf16.mxu1 %vm163_vm2, %v949_v18 }
  0x21   :  { %906 = vmatmul.mubr.msk.bf16.gmra.mrb[12].mxu0 %vm163_vm2, %v950_v19  ;;  %926 = vmatmul.mubr.msk.bf16.gmra.mrb[12].mxu1 %vm163_vm2, %v951_v20 }
  0x22   :  { %909 = vmatprep.mubr.msk.bf16.mxu0 %vm163_vm2, %v952_v21  ;;  %929 = vmatprep.mubr.msk.bf16.mxu1 %vm163_vm2, %v953_v22 }
  0x29   :  { %910 = vmatmul.mubr.msk.bf16.gmra.mrb[16].mxu0 %vm163_vm2, %v954_v23  ;;  %930 = vmatmul.mubr.msk.bf16.gmra.mrb[16].mxu1 %vm163_vm2, %v955_v24 }
  0xdc   :  { %v895_v26 = vpop.f32.mrb[0].mxu0  ;;  %v915_v27 = vpop.f32.mrb[0].mxu1 }
  0xdd   :  { %v274_v28 = vadd.f32 %v895_v26, %v1063_v25  ;;  %v354_v29 = vadd.f32 %v915_v27, %v1063_v25  ;;  %v265_v30 = vpop.f32.mrb[1].mxu0  ;;  %v345_v31 = vpop.f32.mrb[1].mxu1 }
  0xde   :  { %v266_v32 = vadd.f32 %v1063_v25, %v265_v30  ;;  %v346_v33 = vadd.f32 %v1063_v25, %v345_v31  ;;  %v896_v34 = vpop.f32.mrb[2].mxu0  ;;  %v916_v35 = vpop.f32.mrb[2].mxu1 }
  0xdf   :  { %vm426_vm4 = vcmp.ge.f32.partialorder %v274_v28, 0.0  ;;  %v466_v36 = vmul.f32 0.1, %v274_v28  ;;  %vm446_vm5 = vcmp.ge.f32.partialorder %v354_v29, 0.0  ;;  %v486_v37 = vmul.f32 0.1, %v354_v29 }
  0xe0   :  { %vm424_vm6 = vcmp.ge.f32.partialorder %v266_v32, 0.0  ;;  %v464_v38 = vmul.f32 0.1, %v266_v32  ;;  %vm444_vm7 = vcmp.ge.f32.partialorder %v346_v33, 0.0  ;;  %v484_v39 = vmul.f32 0.1, %v346_v33 }
  0xe1   :  { %v506_v40 = vsel %vm426_vm4, %v274_v28, %v466_v36  ;;  %v526_v41 = vsel %vm446_vm5, %v354_v29, %v486_v37  ;;  %v277_v42 = vadd.f32 %v896_v34, %v1063_v25  ;;  %v357_v43 = vadd.f32 %v916_v35, %v1063_v25  ;;  %v268_v44 = vpop.f32.mrb[3].mxu0  ;;  %v348_v45 = vpop.f32.mrb[3].mxu1 }
  0xe2   :  { %v832_v46 = vpack.c.bf16 %v506_v40, %v506_v40  ;;  %v852_v47 = vpack.c.bf16 %v526_v41, %v526_v41  ;;  %v504_v48 = vsel %vm424_vm6, %v266_v32, %v464_v38  ;;  %v524_v49 = vsel %vm444_vm7, %v346_v33, %v484_v39 }
  0xe3   :  { %v830_v50 = vpack.c.bf16 %v504_v48, %v504_v48  ;;  %v850_v51 = vpack.c.bf16 %v524_v49, %v524_v49  ;;  %vm427_vm8 = vcmp.ge.f32.partialorder %v277_v42, 0.0  ;;  %v467_v52 = vmul.f32 0.1, %v277_v42 }
  0xe4   :  { %707 = vst.msk [vmem:[%s1270_s3 + $0x8] sm:$0xf] %vm704_vm3, %v832_v46  ;;  %727 = vst.msk [vmem:[%s1270_s3 + $0x58] sm:$0xf] %vm704_vm3, %v852_v47  ;;  %vm447_vm9 = vcmp.ge.f32.partialorder %v357_v43, 0.0  ;;  %v269_v54 = vadd.f32 %v1063_v25, %v268_v44  ;;  %v349_v55 = vadd.f32 %v1063_v25, %v348_v45  ;;  %v899_v56 = vpop.f32.mrb[4].mxu0 }
  0xe5   :  { %v487_v53 = vmul.f32 0.1, %v357_v43  ;;  %v919_v57 = vpop.f32.mrb[4].mxu1  ;;  %705 = vst.msk [vmem:[%s1270_s3] sm:$0xf] %vm704_vm3, %v830_v50  ;;  %v507_v58 = vsel %vm427_vm8, %v277_v42, %v467_v52  ;;  %v290_v59 = vadd.f32 %v899_v56, %v1063_v25  ;;  %v281_v61 = vpop.f32.mrb[5].mxu0 }
  0xe6   :  { %725 = vst.msk [vmem:[%s1270_s3 + $0x50] sm:$0xf] %vm704_vm3, %v850_v51  ;;  %v370_v60 = vadd.f32 %v919_v57, %v1063_v25  ;;  %v361_v62 = vpop.f32.mrb[5].mxu1  ;;  %v833_v63 = vpack.c.bf16 %v507_v58, %v507_v58  ;;  %vm425_vm10 = vcmp.ge.f32.partialorder %v269_v54, 0.0  ;;  %v465_v1 = vmul.f32 0.1, %v269_v54 }
  0xe7   :  { %v527_v0 = vsel %vm447_vm9, %v357_v43, %v487_v53  ;;  %v900_v2 = vpop.f32.mrb[6].mxu0  ;;  %v920_v3 = vpop.f32.mrb[6].mxu1  ;;  %vm445_vm11 = vcmp.ge.f32.partialorder %v349_v55, 0.0  ;;  %v485_v5 = vmul.f32 0.1, %v349_v55  ;;  %vm430_vm12 = vcmp.ge.f32.partialorder %v290_v59, 0.0 }
  0xe8   :  { %v853_v4 = vpack.c.bf16 %v527_v0, %v527_v0  ;;  %v284_v6 = vpop.f32.mrb[7].mxu0  ;;  %v364_v7 = vpop.f32.mrb[7].mxu1  ;;  %708 = vst.msk [vmem:[%s1270_s3 + $0xc] sm:$0xf] %vm704_vm3, %v833_v63  ;;  %v505_v8 = vsel %vm425_vm10, %v269_v54, %v465_v1  ;;  %v470_v9 = vmul.f32 0.1, %v290_v59  ;;  %v282_v13 = vadd.f32 %v1063_v25, %v281_v61 }
  0xe9   :  { %vm450_vm13 = vcmp.ge.f32.partialorder %v370_v60, 0.0  ;;  %v490_v10 = vmul.f32 0.1, %v370_v60  ;;  %v831_v11 = vpack.c.bf16 %v505_v8, %v505_v8  ;;  %v525_v12 = vsel %vm445_vm11, %v349_v55, %v485_v5 }
  0xea   :  { %728 = vst.msk [vmem:[%s1270_s3 + $0x5c] sm:$0xf] %vm704_vm3, %v853_v4  ;;  %v362_v14 = vadd.f32 %v1063_v25, %v361_v62  ;;  %v851_v15 = vpack.c.bf16 %v525_v12, %v525_v12  ;;  %v510_v16 = vsel %vm430_vm12, %v290_v59, %v470_v9  ;;  %v293_v18 = vadd.f32 %v900_v2, %v1063_v25 }
  0xeb   :  { %v530_v17 = vsel %vm450_vm13, %v370_v60, %v490_v10  ;;  %706 = vst.msk [vmem:[%s1270_s3 + $0x4] sm:$0xf] %vm704_vm3, %v831_v11  ;;  %v836_v19 = vpack.c.bf16 %v510_v16, %v510_v16  ;;  %vm428_vm14 = vcmp.ge.f32.partialorder %v282_v13, 0.0  ;;  %v468_v21 = vmul.f32 0.1, %v282_v13 }
  0xec   :  { %v856_v20 = vpack.c.bf16 %v530_v17, %v530_v17  ;;  %726 = vst.msk [vmem:[%s1270_s3 + $0x54] sm:$0xf] %vm704_vm3, %v851_v15  ;;  %vm448_vm15 = vcmp.ge.f32.partialorder %v362_v14, 0.0  ;;  %v488_v22 = vmul.f32 0.1, %v362_v14  ;;  %vm431_vm0 = vcmp.ge.f32.partialorder %v293_v18, 0.0 }
  0xed   :  { %v471_v23 = vmul.f32 0.1, %v293_v18  ;;  %711 = vst.msk [vmem:[%s1270_s3 + $0x18] sm:$0xf] %vm704_vm3, %v836_v19  ;;  %v508_v24 = vsel %vm428_vm14, %v282_v13, %v468_v21  ;;  %v373_v26 = vadd.f32 %v920_v3, %v1063_v25  ;;  %v285_v27 = vadd.f32 %v1063_v25, %v284_v6  ;;  %v903_v29 = vpop.f32.mrb[8].mxu0  ;;  %v923_v30 = vpop.f32.mrb[8].mxu1 }
  0xee   :  { %731 = vst.msk [vmem:[%s1270_s3 + $0x68] sm:$0xf] %vm704_vm3, %v856_v20  ;;  %v365_v28 = vadd.f32 %v1063_v25, %v364_v7  ;;  %v834_v31 = vpack.c.bf16 %v508_v24, %v508_v24  ;;  %v528_v32 = vsel %vm448_vm15, %v362_v14, %v488_v22  ;;  %v306_v34 = vadd.f32 %v903_v29, %v1063_v25  ;;  %v297_v35 = vpop.f32.mrb[9].mxu0  ;;  %v377_v36 = vpop.f32.mrb[9].mxu1 }
  0xef   :  { %v511_v33 = vsel %vm431_vm0, %v293_v18, %v471_v23  ;;  %v854_v37 = vpack.c.bf16 %v528_v32, %v528_v32  ;;  %vm451_vm1 = vcmp.ge.f32.partialorder %v373_v26, 0.0  ;;  %v491_v39 = vmul.f32 0.1, %v373_v26  ;;  %v904_v40 = vpop.f32.mrb[10].mxu0  ;;  %v924_v41 = vpop.f32.mrb[10].mxu1 }
  0xf0   :  { %v837_v38 = vpack.c.bf16 %v511_v33, %v511_v33  ;;  %709 = vst.msk [vmem:[%s1270_s3 + $0x10] sm:$0xf] %vm704_vm3, %v834_v31  ;;  %vm429_vm2 = vcmp.ge.f32.partialorder %v285_v27, 0.0  ;;  %v469_v42 = vmul.f32 0.1, %v285_v27  ;;  %vm449_vm4 = vcmp.ge.f32.partialorder %v365_v28, 0.0 }
  0xf1   :  { %v489_v43 = vmul.f32 0.1, %v365_v28  ;;  %729 = vst.msk [vmem:[%s1270_s3 + $0x60] sm:$0xf] %vm704_vm3, %v854_v37  ;;  %v531_v44 = vsel %vm451_vm1, %v373_v26, %v491_v39  ;;  %vm434_vm5 = vcmp.ge.f32.partialorder %v306_v34, 0.0  ;;  %v386_v46 = vadd.f32 %v923_v30, %v1063_v25  ;;  %v300_v47 = vpop.f32.mrb[11].mxu0 }
  0xf2   :  { %712 = vst.msk [vmem:[%s1270_s3 + $0x1c] sm:$0xf] %vm704_vm3, %v837_v38  ;;  %v474_v45 = vmul.f32 0.1, %v306_v34  ;;  %v380_v48 = vpop.f32.mrb[11].mxu1  ;;  %v857_v49 = vpack.c.bf16 %v531_v44, %v531_v44  ;;  %v509_v50 = vsel %vm429_vm2, %v285_v27, %v469_v42  ;;  %v298_v52 = vadd.f32 %v1063_v25, %v297_v35 }
  0xf3   :  { %v529_v51 = vsel %vm449_vm4, %v365_v28, %v489_v43  ;;  %v835_v53 = vpack.c.bf16 %v509_v50, %v509_v50  ;;  %vm454_vm6 = vcmp.ge.f32.partialorder %v386_v46, 0.0  ;;  %v494_v57 = vmul.f32 0.1, %v386_v46 }
  0xf4   :  { %v855_v54 = vpack.c.bf16 %v529_v51, %v529_v51  ;;  %v514_v55 = vsel %vm434_vm5, %v306_v34, %v474_v45  ;;  %732 = vst.msk [vmem:[%s1270_s3 + $0x6c] sm:$0xf] %vm704_vm3, %v857_v49  ;;  %vm432_vm7 = vcmp.ge.f32.partialorder %v298_v52, 0.0  ;;  %v472_v58 = vmul.f32 0.1, %v298_v52  ;;  %v907_v59 = vpop.f32.mrb[12].mxu0 }
  0xf5   :  { %v840_v56 = vpack.c.bf16 %v514_v55, %v514_v55  ;;  %710 = vst.msk [vmem:[%s1270_s3 + $0x14] sm:$0xf] %vm704_vm3, %v835_v53  ;;  %v378_v60 = vadd.f32 %v1063_v25, %v377_v36  ;;  %v309_v61 = vadd.f32 %v904_v40, %v1063_v25  ;;  %v389_v62 = vadd.f32 %v924_v41, %v1063_v25  ;;  %v927_v0 = vpop.f32.mrb[12].mxu1  ;;  %v313_v1 = vpop.f32.mrb[13].mxu0 }
  0xf6   :  { %730 = vst.msk [vmem:[%s1270_s3 + $0x64] sm:$0xf] %vm704_vm3, %v855_v54  ;;  %v301_v63 = vadd.f32 %v1063_v25, %v300_v47  ;;  %v534_v2 = vsel %vm454_vm6, %v386_v46, %v494_v57  ;;  %v512_v3 = vsel %vm432_vm7, %v298_v52, %v472_v58  ;;  %v381_v4 = vadd.f32 %v1063_v25, %v380_v48  ;;  %v393_v6 = vpop.f32.mrb[13].mxu1  ;;  %v908_v7 = vpop.f32.mrb[14].mxu0 }
  0xf7   :  { %715 = vst.msk [vmem:[%s1270_s3 + $0x28] sm:$0xf] %vm704_vm3, %v840_v56  ;;  %v322_v5 = vadd.f32 %v907_v59, %v1063_v25  ;;  %v860_v8 = vpack.c.bf16 %v534_v2, %v534_v2  ;;  %v838_v9 = vpack.c.bf16 %v512_v3, %v512_v3  ;;  %vm452_vm8 = vcmp.ge.f32.partialorder %v378_v60, 0.0  ;;  %v928_v11 = vpop.f32.mrb[14].mxu1  ;;  %v316_v12 = vpop.f32.mrb[15].mxu0 }
  0xf8   :  { %v492_v10 = vmul.f32 0.1, %v378_v60  ;;  %vm435_vm9 = vcmp.ge.f32.partialorder %v309_v61, 0.0  ;;  %v475_v13 = vmul.f32 0.1, %v309_v61  ;;  %vm455_vm10 = vcmp.ge.f32.partialorder %v389_v62, 0.0 }
  0xf9   :  { %v495_v14 = vmul.f32 0.1, %v389_v62  ;;  %735 = vst.msk [vmem:[%s1270_s3 + $0x78] sm:$0xf] %vm704_vm3, %v860_v8  ;;  %713 = vst.msk [vmem:[%s1270_s3 + $0x20] sm:$0xf] %vm704_vm3, %v838_v9  ;;  %v402_v29 = vadd.f32 %v927_v0, %v1063_v25  ;;  %v314_v33 = vadd.f32 %v1063_v25, %v313_v1  ;;  %v394_v34 = vadd.f32 %v1063_v25, %v393_v6 }
  0xfa   :  { %v532_v15 = vsel %vm452_vm8, %v378_v60, %v492_v10  ;;  %vm433_vm11 = vcmp.ge.f32.partialorder %v301_v63, 0.0  ;;  %v473_v16 = vmul.f32 0.1, %v301_v63  ;;  %vm453_vm12 = vcmp.ge.f32.partialorder %v381_v4, 0.0  ;;  %v396_v17 = vpop.f32.mrb[15].mxu1 }
  0xfb   :  { %v858_v18 = vpack.c.bf16 %v532_v15, %v532_v15  ;;  %v515_v19 = vsel %vm435_vm9, %v309_v61, %v475_v13  ;;  %v535_v20 = vsel %vm455_vm10, %v389_v62, %v495_v14  ;;  %v493_v21 = vmul.f32 0.1, %v381_v4 }
  0xfc   :  { %v841_v22 = vpack.c.bf16 %v515_v19, %v515_v19  ;;  %v861_v23 = vpack.c.bf16 %v535_v20, %v535_v20  ;;  %v513_v24 = vsel %vm433_vm11, %v301_v63, %v473_v16  ;;  %vm438_vm13 = vcmp.ge.f32.partialorder %v322_v5, 0.0  ;;  %v911_v30 = vpop.f32.mrb[16].mxu0  ;;  %v931_v31 = vpop.f32.mrb[16].mxu1 }
  0xfd   :  { %733 = vst.msk [vmem:[%s1270_s3 + $0x70] sm:$0xf] %vm704_vm3, %v858_v18  ;;  %v839_v26 = vpack.c.bf16 %v513_v24, %v513_v24  ;;  %v533_v27 = vsel %vm453_vm12, %v381_v4, %v493_v21  ;;  %v478_v28 = vmul.f32 0.1, %v322_v5  ;;  %v325_v35 = vadd.f32 %v908_v7, %v1063_v25  ;;  %v329_v36 = vpop.f32.mrb[17].mxu0  ;;  %v409_v37 = vpop.f32.mrb[17].mxu1 }
  0xfe   :  { %716 = vst.msk [vmem:[%s1270_s3 + $0x2c] sm:$0xf] %vm704_vm3, %v841_v22  ;;  %736 = vst.msk [vmem:[%s1270_s3 + $0x7c] sm:$0xf] %vm704_vm3, %v861_v23  ;;  %v859_v32 = vpack.c.bf16 %v533_v27, %v533_v27  ;;  %vm458_vm14 = vcmp.ge.f32.partialorder %v402_v29, 0.0  ;;  %v405_v40 = vadd.f32 %v928_v11, %v1063_v25  ;;  %v912_v41 = vpop.f32.mrb[18].mxu0  ;;  %v317_v56 = vadd.f32 %v1063_v25, %v316_v12 }
  0xff   :  { %714 = vst.msk [vmem:[%s1270_s3 + $0x24] sm:$0xf] %vm704_vm3, %v839_v26  ;;  %v518_v38 = vsel %vm438_vm13, %v322_v5, %v478_v28  ;;  %v498_v39 = vmul.f32 0.1, %v402_v29  ;;  %v932_v42 = vpop.f32.mrb[18].mxu1  ;;  %vm436_vm15 = vcmp.ge.f32.partialorder %v314_v33, 0.0  ;;  %v397_v60 = vadd.f32 %v1063_v25, %v396_v17 }
 0x100   :  { %734 = vst.msk [vmem:[%s1270_s3 + $0x74] sm:$0xf] %vm704_vm3, %v859_v32  ;;  %v844_v43 = vpack.c.bf16 %v518_v38, %v518_v38  ;;  %v476_v44 = vmul.f32 0.1, %v314_v33  ;;  %vm456_vm0 = vcmp.ge.f32.partialorder %v394_v34, 0.0  ;;  %v332_v45 = vpop.f32.mrb[19].mxu0  ;;  %v338_v63 = vadd.f32 %v911_v30, %v1063_v25 }
 0x101   :  { %v412_v46 = vpop.f32.mrb[19].mxu1  ;;  %v538_v47 = vsel %vm458_vm14, %v402_v29, %v498_v39  ;;  %v496_v48 = vmul.f32 0.1, %v394_v34  ;;  %vm439_vm1 = vcmp.ge.f32.partialorder %v325_v35, 0.0  ;;  %v479_v49 = vmul.f32 0.1, %v325_v35 }
 0x102   :  { %719 = vst.msk [vmem:[%s1270_s3 + $0x38] sm:$0xf] %vm704_vm3, %v844_v43  ;;  %v864_v50 = vpack.c.bf16 %v538_v47, %v538_v47  ;;  %v516_v51 = vsel %vm436_vm15, %v314_v33, %v476_v44  ;;  %vm459_vm2 = vcmp.ge.f32.partialorder %v405_v40, 0.0  ;;  %v499_v52 = vmul.f32 0.1, %v405_v40 }
 0x103   :  { %v842_v53 = vpack.c.bf16 %v516_v51, %v516_v51  ;;  %v536_v54 = vsel %vm456_vm0, %v394_v34, %v496_v48  ;;  %v519_v55 = vsel %vm439_vm1, %v325_v35, %v479_v49  ;;  %vm437_vm4 = vcmp.ge.f32.partialorder %v317_v56, 0.0 }
 0x104   :  { %739 = vst.msk [vmem:[%s1270_s3 + $0x88] sm:$0xf] %vm704_vm3, %v864_v50  ;;  %v862_v57 = vpack.c.bf16 %v536_v54, %v536_v54  ;;  %v845_v58 = vpack.c.bf16 %v519_v55, %v519_v55  ;;  %v539_v59 = vsel %vm459_vm2, %v405_v40, %v499_v52  ;;  %v477_v62 = vmul.f32 0.1, %v317_v56 }
 0x105   :  { %717 = vst.msk [vmem:[%s1270_s3 + $0x30] sm:$0xf] %vm704_vm3, %v842_v53  ;;  %v865_v61 = vpack.c.bf16 %v539_v59, %v539_v59  ;;  %vm457_vm5 = vcmp.ge.f32.partialorder %v397_v60, 0.0  ;;  %v497_v0 = vmul.f32 0.1, %v397_v60  ;;  %v418_v1 = vadd.f32 %v931_v31, %v1063_v25 }
 0x106   :  { %737 = vst.msk [vmem:[%s1270_s3 + $0x80] sm:$0xf] %vm704_vm3, %v862_v57  ;;  %720 = vst.msk [vmem:[%s1270_s3 + $0x3c] sm:$0xf] %vm704_vm3, %v845_v58  ;;  %v330_v2 = vadd.f32 %v1063_v25, %v329_v36  ;;  %v517_v3 = vsel %vm437_vm4, %v317_v56, %v477_v62  ;;  %vm442_vm6 = vcmp.ge.f32.partialorder %v338_v63, 0.0  ;;  %v410_v5 = vadd.f32 %v1063_v25, %v409_v37 }
 0x107   :  { %740 = vst.msk [vmem:[%s1270_s3 + $0x8c] sm:$0xf] %vm704_vm3, %v865_v61  ;;  %v482_v4 = vmul.f32 0.1, %v338_v63  ;;  %v843_v6 = vpack.c.bf16 %v517_v3, %v517_v3  ;;  %v537_v7 = vsel %vm457_vm5, %v397_v60, %v497_v0  ;;  %vm462_vm7 = vcmp.ge.f32.partialorder %v418_v1, 0.0 }
 0x108   :  { %v502_v8 = vmul.f32 0.1, %v418_v1  ;;  %v863_v9 = vpack.c.bf16 %v537_v7, %v537_v7  ;;  %vm440_vm8 = vcmp.ge.f32.partialorder %v330_v2, 0.0  ;;  %v480_v11 = vmul.f32 0.1, %v330_v2 }
 0x109   :  { %v522_v10 = vsel %vm442_vm6, %v338_v63, %v482_v4  ;;  %718 = vst.msk [vmem:[%s1270_s3 + $0x34] sm:$0xf] %vm704_vm3, %v843_v6  ;;  %vm460_vm9 = vcmp.ge.f32.partialorder %v410_v5, 0.0  ;;  %v500_v14 = vmul.f32 0.1, %v410_v5  ;;  %v341_v17 = vadd.f32 %v912_v41, %v1063_v25 }
 0x10a   :  { %v848_v12 = vpack.c.bf16 %v522_v10, %v522_v10  ;;  %v542_v13 = vsel %vm462_vm7, %v418_v1, %v502_v8  ;;  %738 = vst.msk [vmem:[%s1270_s3 + $0x84] sm:$0xf] %vm704_vm3, %v863_v9  ;;  %v520_v16 = vsel %vm440_vm8, %v330_v2, %v480_v11  ;;  %v421_v18 = vadd.f32 %v932_v42, %v1063_v25 }
 0x10b   :  { %v868_v15 = vpack.c.bf16 %v542_v13, %v542_v13  ;;  %v846_v19 = vpack.c.bf16 %v520_v16, %v520_v16  ;;  %v540_v20 = vsel %vm460_vm9, %v410_v5, %v500_v14  ;;  %v333_v21 = vadd.f32 %v1063_v25, %v332_v45 }
 0x10c   :  { %723 = vst.msk [vmem:[%s1270_s3 + $0x48] sm:$0xf] %vm704_vm3, %v848_v12  ;;  %v413_v22 = vadd.f32 %v1063_v25, %v412_v46  ;;  %v866_v23 = vpack.c.bf16 %v540_v20, %v540_v20  ;;  %vm443_vm10 = vcmp.ge.f32.partialorder %v341_v17, 0.0  ;;  %v483_v24 = vmul.f32 0.1, %v341_v17 }
 0x10d   :  { %743 = vst.msk [vmem:[%s1270_s3 + $0x98] sm:$0xf] %vm704_vm3, %v868_v15  ;;  %vm463_vm11 = vcmp.ge.f32.partialorder %v421_v18, 0.0  ;;  %721 = vst.msk [vmem:[%s1270_s3 + $0x40] sm:$0xf] %vm704_vm3, %v846_v19  ;;  %vm441_vm12 = vcmp.ge.f32.partialorder %v333_v21, 0.0 }
 0x10e   :  { %v503_v26 = vmul.f32 0.1, %v421_v18  ;;  %v481_v27 = vmul.f32 0.1, %v333_v21  ;;  %vm461_vm13 = vcmp.ge.f32.partialorder %v413_v22, 0.0  ;;  %v523_v25 = vsel %vm443_vm10, %v341_v17, %v483_v24 }
 0x10f   :  { %741 = vst.msk [vmem:[%s1270_s3 + $0x90] sm:$0xf] %vm704_vm3, %v866_v23  ;;  %v501_v28 = vmul.f32 0.1, %v413_v22  ;;  %v849_v29 = vpack.c.bf16 %v523_v25, %v523_v25 }
 0x110   :  { %v543_v30 = vsel %vm463_vm11, %v421_v18, %v503_v26  ;;  %v521_v31 = vsel %vm441_vm12, %v333_v21, %v481_v27 }
 0x111   :  { %v869_v32 = vpack.c.bf16 %v543_v30, %v543_v30  ;;  %v847_v33 = vpack.c.bf16 %v521_v31, %v521_v31  ;;  %v541_v34 = vsel %vm461_vm13, %v413_v22, %v501_v28  ;;  %724 = vst.msk [vmem:[%s1270_s3 + $0x4c] sm:$0xf] %vm704_vm3, %v849_v29 }
 0x112   :  { %v867_v35 = vpack.c.bf16 %v541_v34, %v541_v34 }
 0x113   :  { %744 = vst.msk [vmem:[%s1270_s3 + $0x9c] sm:$0xf] %vm704_vm3, %v869_v32  ;;  %722 = vst.msk [vmem:[%s1270_s3 + $0x44] sm:$0xf] %vm704_vm3, %v847_v33 }
 0x114   :  { %742 = vst.msk [vmem:[%s1270_s3 + $0x94] sm:$0xf] %vm704_vm3, %v867_v35 }

// kernel: multi_period_discriminator.31
= control target key start
LH: loop header
LB: loop body
LE: loop exit
PB: predicated region body
PF: predicated region fallthrough
CT: control target
= control target key end

     0   :  { %v431_v0 = vmov 0.0   ;;  %vm432_vm0 = vmmov 0   ;;  %vm113_vm1 = vcmask 1043456   ;;  %vm91_vm2 = vcmask 326656   ;;  %s572_s1 = inlined_call_operand.vmem [shape: bf16[40,16], index: 1, kind: input, shape index: {}]   ;;  %s573_s0 = inlined_call_operand.vmem [shape: bf16[112,40], index: 0, kind: input, shape index: {}]   ;;  %s574_s2 = inlined_call_operand.vmem [shape: f32[1,16], index: 2, kind: input, shape index: {}]   ;;  %s575_s3 = inlined_call_operand.vmem [shape: bf16[112,16], index: 3, kind: output, shape index: {}]  }
   0x1   :  { %379 = vmatprep.subr.bf16.mxu0 %v431_v0  ;;  %v421_v1 = vld [vmem:[%s572_s1] sm:$0xff]   ;;  %413 = vmatprep.subr.bf16.mxu1 %v431_v0  ;;  %v422_v2 = vld [vmem:[%s572_s1 + $0x8] sm:$0xff]   ;;  %v423_v3 = vld [vmem:[%s572_s1 + $0x10] ss:$0 sps:$4 sm:$0xff]   ;;  %vm304_vm5 = vcmask 125952  }
   0x2   :  { %385 = vmatprep.mubr.msk.bf16.mxu0 %vm432_vm0, %v431_v0  ;;  %401 = vmatprep.mubr.msk.bf16.mxu1 %vm432_vm0, %v431_v0  ;;  %v115_v4 = vsel %vm113_vm1, %v423_v3, 0  ;;  %v424_v5 = vld [vmem:[%s573_s0] sm:$0xff]   ;;  %v426_v7 = vld [vmem:[%s573_s0 + $0x8] sm:$0xff]   ;;  %v428_v9 = vld [vmem:[%s573_s0 + $0x10] sm:$0xff]  }
   0x3   :  { %380 = vmatpush3.bf16.msra.mxu0 %v421_v1  ;;  %416 = vmatpush3.bf16.msra.mxu1 %v421_v1  ;;  %v425_v6 = vld [vmem:[%s573_s0 + $0x20] sm:$0xff]   ;;  %v427_v8 = vld [vmem:[%s573_s0 + $0x28] sm:$0xff]   ;;  %v429_v10 = vld [vmem:[%s573_s0 + $0x30] sm:$0xff]  }
   0x4   :  { %381 = vmatprep.subr.bf16.mxu0 %v431_v0  ;;  %414 = vmatprep.subr.bf16.mxu1 %v431_v0  ;;  %v430_v11 = vld [vmem:[%s573_s0 + $0x18] sm:$0xff]   ;;  %v500_v12 = vld [vmem:[%s574_s2] ss:$0 sm:$0xff] }
   0x7   :  { %382 = vmatpush3.bf16.msra.mxu0 %v422_v2  ;;  %417 = vmatpush3.bf16.msra.mxu1 %v422_v2 }
   0x8   :  { %383 = vmatprep.subr.bf16.mxu0 %v431_v0  ;;  %415 = vmatprep.subr.bf16.mxu1 %v431_v0 }
   0xb   :  { %384 = vmatpush3.bf16.msra.mxu0 %v115_v4  ;;  %418 = vmatpush3.bf16.msra.mxu1 %v115_v4 }
   0xe   :  { %386 = vmatmul.mubr.msk.bf16.vlgmr.msra.gmra.mrb[0].mxu0 %vm91_vm2, %v424_v5  ;;  %402 = vmatmul.mubr.msk.bf16.vlgmr.msra.gmra.mrb[0].mxu1 %vm91_vm2, %v425_v6 }
   0xf   :  { %389 = vmatprep.mubr.msk.bf16.mxu0 %vm432_vm0, %v431_v0  ;;  %405 = vmatprep.mubr.msk.bf16.mxu1 %vm432_vm0, %v431_v0 }
  0x16   :  { %390 = vmatmul.mubr.msk.bf16.gmra.mrb[4].mxu0 %vm91_vm2, %v426_v7  ;;  %406 = vmatmul.mubr.msk.bf16.gmra.mrb[4].mxu1 %vm91_vm2, %v427_v8 }
  0x17   :  { %393 = vmatprep.mubr.msk.bf16.mxu0 %vm432_vm0, %v431_v0  ;;  %409 = vmatprep.mubr.msk.bf16.mxu1 %vm432_vm0, %v431_v0 }
  0x1e   :  { %394 = vmatmul.mubr.msk.bf16.gmra.mrb[8].mxu0 %vm91_vm2, %v428_v9  ;;  %410 = vmatmul.mubr.msk.bf16.gmra.mrb[8].mxu1 %vm91_vm2, %v429_v10 }
  0x1f   :  { %397 = vmatprep.mubr.msk.bf16.mxu0 %vm432_vm0, %v431_v0 }
  0x26   :  { %398 = vmatmul.mubr.msk.bf16.gmra.mrb[12].mxu0 %vm91_vm2, %v430_v11 }
  0xe1   :  { %v151_v13 = vpop.f32.mrb[0].mxu0  ;;  %v183_v14 = vpop.f32.mrb[0].mxu1 }
  0xe2   :  { %v152_v15 = vadd.f32 %v500_v12, %v151_v13  ;;  %v387_v16 = vpop.f32.mrb[1].mxu0  ;;  %v184_v17 = vadd.f32 %v500_v12, %v183_v14  ;;  %v403_v18 = vpop.f32.mrb[1].mxu1 }
  0xe3   :  { %v154_v19 = vpop.f32.mrb[2].mxu0  ;;  %v186_v20 = vpop.f32.mrb[2].mxu1 }
  0xe4   :  { %vm206_vm3 = vcmp.ge.f32.partialorder %v152_v15, 0.0  ;;  %v220_v21 = vmul.f32 0.1, %v152_v15  ;;  %v155_v22 = vadd.f32 %v500_v12, %v154_v19  ;;  %v388_v23 = vpop.f32.mrb[3].mxu0  ;;  %vm214_vm4 = vcmp.ge.f32.partialorder %v184_v17, 0.0  ;;  %v404_v24 = vpop.f32.mrb[3].mxu1 }
  0xe5   :  { %v228_v25 = vmul.f32 0.1, %v184_v17  ;;  %v187_v26 = vadd.f32 %v500_v12, %v186_v20 }
  0xe6   :  { %v234_v27 = vsel %vm206_vm3, %v152_v15, %v220_v21  ;;  %vm207_vm6 = vcmp.ge.f32.partialorder %v155_v22, 0.0  ;;  %v221_v28 = vmul.f32 0.1, %v155_v22 }
  0xe7   :  { %v355_v29 = vpack.c.bf16 %v234_v27, %v234_v27  ;;  %v242_v30 = vsel %vm214_vm4, %v184_v17, %v228_v25  ;;  %vm215_vm7 = vcmp.ge.f32.partialorder %v187_v26, 0.0  ;;  %v229_v31 = vmul.f32 0.1, %v187_v26 }
  0xe8   :  { %v235_v32 = vsel %vm207_vm6, %v155_v22, %v221_v28  ;;  %v363_v33 = vpack.c.bf16 %v242_v30, %v242_v30 }
  0xe9   :  { %305 = vst.msk [vmem:[%s575_s3] sm:$0xf] %vm304_vm5, %v355_v29  ;;  %v356_v34 = vpack.c.bf16 %v235_v32, %v235_v32  ;;  %v243_v35 = vsel %vm215_vm7, %v187_v26, %v229_v31  ;;  %v159_v36 = vpop.f32.mrb[4].mxu0  ;;  %v191_v37 = vpop.f32.mrb[4].mxu1 }
  0xea   :  { %313 = vst.msk [vmem:[%s575_s3 + $0x20] sm:$0xf] %vm304_vm5, %v363_v33  ;;  %v364_v38 = vpack.c.bf16 %v243_v35, %v243_v35  ;;  %v160_v39 = vadd.f32 %v500_v12, %v159_v36  ;;  %v391_v40 = vpop.f32.mrb[5].mxu0  ;;  %v192_v41 = vadd.f32 %v500_v12, %v191_v37  ;;  %v407_v42 = vpop.f32.mrb[5].mxu1 }
  0xeb   :  { %306 = vst.msk [vmem:[%s575_s3 + $0x4] sm:$0xf] %vm304_vm5, %v356_v34  ;;  %v162_v43 = vpop.f32.mrb[6].mxu0  ;;  %v194_v44 = vpop.f32.mrb[6].mxu1 }
  0xec   :  { %314 = vst.msk [vmem:[%s575_s3 + $0x24] sm:$0xf] %vm304_vm5, %v364_v38  ;;  %vm208_vm8 = vcmp.ge.f32.partialorder %v160_v39, 0.0  ;;  %v222_v45 = vmul.f32 0.1, %v160_v39  ;;  %v163_v46 = vadd.f32 %v500_v12, %v162_v43  ;;  %v392_v47 = vpop.f32.mrb[7].mxu0  ;;  %v195_v50 = vadd.f32 %v500_v12, %v194_v44 }
  0xed   :  { %vm216_vm9 = vcmp.ge.f32.partialorder %v192_v41, 0.0  ;;  %v408_v48 = vpop.f32.mrb[7].mxu1  ;;  %v230_v49 = vmul.f32 0.1, %v192_v41 }
  0xee   :  { %v236_v51 = vsel %vm208_vm8, %v160_v39, %v222_v45  ;;  %vm209_vm10 = vcmp.ge.f32.partialorder %v163_v46, 0.0  ;;  %v223_v52 = vmul.f32 0.1, %v163_v46  ;;  %vm217_vm11 = vcmp.ge.f32.partialorder %v195_v50, 0.0 }
  0xef   :  { %v357_v53 = vpack.c.bf16 %v236_v51, %v236_v51  ;;  %v244_v54 = vsel %vm216_vm9, %v192_v41, %v230_v49  ;;  %v231_v55 = vmul.f32 0.1, %v195_v50 }
  0xf0   :  { %v237_v56 = vsel %vm209_vm10, %v163_v46, %v223_v52  ;;  %v365_v57 = vpack.c.bf16 %v244_v54, %v244_v54 }
  0xf1   :  { %307 = vst.msk [vmem:[%s575_s3 + $0x8] sm:$0xf] %vm304_vm5, %v357_v53  ;;  %v358_v58 = vpack.c.bf16 %v237_v56, %v237_v56  ;;  %v245_v59 = vsel %vm217_vm11, %v195_v50, %v231_v55  ;;  %v167_v60 = vpop.f32.mrb[8].mxu0  ;;  %v199_v61 = vpop.f32.mrb[8].mxu1 }
  0xf2   :  { %315 = vst.msk [vmem:[%s575_s3 + $0x28] sm:$0xf] %vm304_vm5, %v365_v57  ;;  %v366_v62 = vpack.c.bf16 %v245_v59, %v245_v59  ;;  %v168_v63 = vadd.f32 %v500_v12, %v167_v60  ;;  %v395_v0 = vpop.f32.mrb[9].mxu0  ;;  %v200_v1 = vadd.f32 %v500_v12, %v199_v61  ;;  %v411_v2 = vpop.f32.mrb[9].mxu1 }
  0xf3   :  { %308 = vst.msk [vmem:[%s575_s3 + $0xc] sm:$0xf] %vm304_vm5, %v358_v58  ;;  %v170_v3 = vpop.f32.mrb[10].mxu0  ;;  %v202_v4 = vpop.f32.mrb[10].mxu1 }
  0xf4   :  { %316 = vst.msk [vmem:[%s575_s3 + $0x2c] sm:$0xf] %vm304_vm5, %v366_v62  ;;  %vm210_vm12 = vcmp.ge.f32.partialorder %v168_v63, 0.0  ;;  %v224_v5 = vmul.f32 0.1, %v168_v63  ;;  %v171_v6 = vadd.f32 %v500_v12, %v170_v3  ;;  %v396_v7 = vpop.f32.mrb[11].mxu0  ;;  %v203_v10 = vadd.f32 %v500_v12, %v202_v4 }
  0xf5   :  { %vm218_vm13 = vcmp.ge.f32.partialorder %v200_v1, 0.0  ;;  %v412_v8 = vpop.f32.mrb[11].mxu1  ;;  %v232_v9 = vmul.f32 0.1, %v200_v1 }
  0xf6   :  { %v238_v11 = vsel %vm210_vm12, %v168_v63, %v224_v5  ;;  %vm211_vm14 = vcmp.ge.f32.partialorder %v171_v6, 0.0  ;;  %v225_v13 = vmul.f32 0.1, %v171_v6  ;;  %vm219_vm15 = vcmp.ge.f32.partialorder %v203_v10, 0.0 }
  0xf7   :  { %v359_v14 = vpack.c.bf16 %v238_v11, %v238_v11  ;;  %v246_v15 = vsel %vm218_vm13, %v200_v1, %v232_v9  ;;  %v233_v16 = vmul.f32 0.1, %v203_v10 }
  0xf8   :  { %v239_v17 = vsel %vm211_vm14, %v171_v6, %v225_v13  ;;  %v367_v18 = vpack.c.bf16 %v246_v15, %v246_v15 }
  0xf9   :  { %309 = vst.msk [vmem:[%s575_s3 + $0x10] sm:$0xf] %vm304_vm5, %v359_v14  ;;  %v360_v19 = vpack.c.bf16 %v239_v17, %v239_v17  ;;  %v247_v20 = vsel %vm219_vm15, %v203_v10, %v233_v16  ;;  %v175_v21 = vpop.f32.mrb[12].mxu0 }
  0xfa   :  { %317 = vst.msk [vmem:[%s575_s3 + $0x30] sm:$0xf] %vm304_vm5, %v367_v18  ;;  %v368_v22 = vpack.c.bf16 %v247_v20, %v247_v20  ;;  %v176_v23 = vadd.f32 %v500_v12, %v175_v21  ;;  %v399_v24 = vpop.f32.mrb[13].mxu0 }
  0xfb   :  { %310 = vst.msk [vmem:[%s575_s3 + $0x14] sm:$0xf] %vm304_vm5, %v360_v19  ;;  %v178_v25 = vpop.f32.mrb[14].mxu0 }
  0xfc   :  { %318 = vst.msk [vmem:[%s575_s3 + $0x34] sm:$0xf] %vm304_vm5, %v368_v22  ;;  %vm212_vm0 = vcmp.ge.f32.partialorder %v176_v23, 0.0  ;;  %v226_v26 = vmul.f32 0.1, %v176_v23  ;;  %v179_v27 = vadd.f32 %v500_v12, %v178_v25  ;;  %v400_v28 = vpop.f32.mrb[15].mxu0 }
  0xfe   :  { %v240_v29 = vsel %vm212_vm0, %v176_v23, %v226_v26  ;;  %vm213_vm1 = vcmp.ge.f32.partialorder %v179_v27, 0.0  ;;  %v227_v30 = vmul.f32 0.1, %v179_v27 }
  0xff   :  { %v361_v31 = vpack.c.bf16 %v240_v29, %v240_v29 }
 0x100   :  { %v241_v32 = vsel %vm213_vm1, %v179_v27, %v227_v30 }
 0x101   :  { %311 = vst.msk [vmem:[%s575_s3 + $0x18] sm:$0xf] %vm304_vm5, %v361_v31  ;;  %v362_v33 = vpack.c.bf16 %v241_v32, %v241_v32 }
 0x103   :  { %312 = vst.msk [vmem:[%s575_s3 + $0x1c] sm:$0xf] %vm304_vm5, %v362_v33 }

// kernel: multi_period_discriminator.32
= control target key start
LH: loop header
LB: loop body
LE: loop exit
PB: predicated region body
PF: predicated region fallthrough
CT: control target
= control target key end

     0   :  { %v277_v0 = vmov 0.0   ;;  %vm278_vm0 = vmmov 0   ;;  %vm83_vm1 = vcmask 654336   ;;  %vm192_vm4 = vcmask 257024   ;;  %s353_s1 = inlined_call_operand.vmem [shape: bf16[80,32], index: 1, kind: input, shape index: {}]   ;;  %s354_s0 = inlined_call_operand.vmem [shape: bf16[48,80], index: 0, kind: input, shape index: {}]   ;;  %s355_s2 = inlined_call_operand.vmem [shape: f32[1,32], index: 2, kind: input, shape index: {}]   ;;  %s356_s3 = inlined_call_operand.vmem [shape: bf16[48,32], index: 3, kind: output, shape index: {}]  }
   0x1   :  { %257 = vmatprep.subr.bf16.mxu1 %v277_v0  ;;  %v269_v1 = vld [vmem:[%s353_s1] sm:$0xff]   ;;  %235 = vmatprep.subr.bf16.mxu0 %v277_v0  ;;  %v270_v2 = vld [vmem:[%s353_s1 + $0x8] sm:$0xff]   ;;  %v271_v3 = vld [vmem:[%s353_s1 + $0x10] sm:$0xff]  }
   0x2   :  { %249 = vmatprep.mubr.msk.bf16.mxu1 %vm278_vm0, %v277_v0  ;;  %245 = vmatprep.mubr.msk.bf16.mxu0 %vm278_vm0, %v277_v0  ;;  %v272_v4 = vld [vmem:[%s353_s1 + $0x18] sm:$0xff]   ;;  %v273_v5 = vld [vmem:[%s353_s1 + $0x20] sm:$0xff]   ;;  %v274_v6 = vld [vmem:[%s354_s0 + $0x8] sm:$0xff]  }
   0x3   :  { %262 = vmatpush3.bf16.msra.mxu1 %v269_v1  ;;  %236 = vmatpush3.bf16.msra.mxu0 %v269_v1  ;;  %v275_v7 = vld [vmem:[%s354_s0] sm:$0xff]   ;;  %v276_v8 = vld [vmem:[%s354_s0 + $0x10] sm:$0xff]  }
   0x4   :  { %258 = vmatprep.subr.bf16.mxu1 %v277_v0  ;;  %237 = vmatprep.subr.bf16.mxu0 %v277_v0  ;;  %v203_v9 = vld [vmem:[%s355_s2] ss:$0 sm:$0xff] }
   0x7   :  { %263 = vmatpush3.bf16.msra.mxu1 %v270_v2  ;;  %238 = vmatpush3.bf16.msra.mxu0 %v270_v2 }
   0x8   :  { %259 = vmatprep.subr.bf16.mxu1 %v277_v0  ;;  %239 = vmatprep.subr.bf16.mxu0 %v277_v0 }
   0xb   :  { %264 = vmatpush3.bf16.msra.mxu1 %v271_v3  ;;  %240 = vmatpush3.bf16.msra.mxu0 %v271_v3 }
   0xc   :  { %260 = vmatprep.subr.bf16.mxu1 %v277_v0  ;;  %241 = vmatprep.subr.bf16.mxu0 %v277_v0 }
   0xf   :  { %265 = vmatpush3.bf16.msra.mxu1 %v272_v4  ;;  %242 = vmatpush3.bf16.msra.mxu0 %v272_v4 }
  0x10   :  { %261 = vmatprep.subr.bf16.mxu1 %v277_v0  ;;  %243 = vmatprep.subr.bf16.mxu0 %v277_v0 }
  0x13   :  { %266 = vmatpush3.bf16.msra.mxu1 %v273_v5  ;;  %244 = vmatpush3.bf16.msra.mxu0 %v273_v5 }
  0x16   :  { %250 = vmatmul.mubr.msk.bf16.vlgmr.msra.gmra.mrb[0].mxu1 %vm83_vm1, %v274_v6  ;;  %246 = vmatmul.mubr.msk.bf16.vlgmr.msra.gmra.mrb[0].mxu0 %vm83_vm1, %v275_v7 }
  0x17   :  { %253 = vmatprep.mubr.msk.bf16.mxu1 %vm278_vm0, %v277_v0 }
  0x1e   :  { %254 = vmatmul.mubr.msk.bf16.gmra.mrb[4].mxu1 %vm83_vm1, %v276_v8 }
  0xe9   :  { %v135_v10 = vpop.f32.mrb[0].mxu1  ;;  %v127_v11 = vpop.f32.mrb[0].mxu0 }
  0xea   :  { %v136_v12 = vadd.f32 %v203_v9, %v135_v10  ;;  %v251_v13 = vpop.f32.mrb[1].mxu1  ;;  %v128_v14 = vadd.f32 %v203_v9, %v127_v11  ;;  %v247_v15 = vpop.f32.mrb[1].mxu0 }
  0xeb   :  { %v138_v16 = vpop.f32.mrb[2].mxu1  ;;  %v130_v17 = vpop.f32.mrb[2].mxu0 }
  0xec   :  { %vm152_vm2 = vcmp.ge.f32.partialorder %v136_v12, 0.0  ;;  %v158_v18 = vmul.f32 0.1, %v136_v12  ;;  %v139_v19 = vadd.f32 %v203_v9, %v138_v16  ;;  %v252_v20 = vpop.f32.mrb[3].mxu1  ;;  %vm150_vm3 = vcmp.ge.f32.partialorder %v128_v14, 0.0  ;;  %v248_v21 = vpop.f32.mrb[3].mxu0 }
  0xed   :  { %v156_v22 = vmul.f32 0.1, %v128_v14  ;;  %v131_v23 = vadd.f32 %v203_v9, %v130_v17 }
  0xee   :  { %v164_v24 = vsel %vm152_vm2, %v136_v12, %v158_v18  ;;  %vm153_vm5 = vcmp.ge.f32.partialorder %v139_v19, 0.0  ;;  %v159_v25 = vmul.f32 0.1, %v139_v19 }
  0xef   :  { %v223_v26 = vpack.c.bf16 %v164_v24, %v164_v24  ;;  %v162_v27 = vsel %vm150_vm3, %v128_v14, %v156_v22  ;;  %vm151_vm6 = vcmp.ge.f32.partialorder %v131_v23, 0.0  ;;  %v157_v28 = vmul.f32 0.1, %v131_v23 }
  0xf0   :  { %v165_v29 = vsel %vm153_vm5, %v139_v19, %v159_v25  ;;  %v221_v30 = vpack.c.bf16 %v162_v27, %v162_v27 }
  0xf1   :  { %195 = vst.msk [vmem:[%s356_s3 + $0x8] sm:$0xf] %vm192_vm4, %v223_v26  ;;  %v224_v31 = vpack.c.bf16 %v165_v29, %v165_v29  ;;  %v163_v32 = vsel %vm151_vm6, %v131_v23, %v157_v28  ;;  %v143_v33 = vpop.f32.mrb[4].mxu1 }
  0xf2   :  { %193 = vst.msk [vmem:[%s356_s3] sm:$0xf] %vm192_vm4, %v221_v30  ;;  %v222_v34 = vpack.c.bf16 %v163_v32, %v163_v32  ;;  %v144_v35 = vadd.f32 %v203_v9, %v143_v33  ;;  %v255_v36 = vpop.f32.mrb[5].mxu1 }
  0xf3   :  { %196 = vst.msk [vmem:[%s356_s3 + $0xc] sm:$0xf] %vm192_vm4, %v224_v31  ;;  %v146_v37 = vpop.f32.mrb[6].mxu1 }
  0xf4   :  { %194 = vst.msk [vmem:[%s356_s3 + $0x4] sm:$0xf] %vm192_vm4, %v222_v34  ;;  %vm154_vm7 = vcmp.ge.f32.partialorder %v144_v35, 0.0  ;;  %v160_v38 = vmul.f32 0.1, %v144_v35  ;;  %v147_v39 = vadd.f32 %v203_v9, %v146_v37  ;;  %v256_v40 = vpop.f32.mrb[7].mxu1 }
  0xf6   :  { %v166_v41 = vsel %vm154_vm7, %v144_v35, %v160_v38  ;;  %vm155_vm8 = vcmp.ge.f32.partialorder %v147_v39, 0.0  ;;  %v161_v42 = vmul.f32 0.1, %v147_v39 }
  0xf7   :  { %v225_v43 = vpack.c.bf16 %v166_v41, %v166_v41 }
  0xf8   :  { %v167_v44 = vsel %vm155_vm8, %v147_v39, %v161_v42 }
  0xf9   :  { %197 = vst.msk [vmem:[%s356_s3 + $0x10] sm:$0xf] %vm192_vm4, %v225_v43  ;;  %v226_v45 = vpack.c.bf16 %v167_v44, %v167_v44 }
  0xfb   :  { %198 = vst.msk [vmem:[%s356_s3 + $0x14] sm:$0xf] %vm192_vm4, %v226_v45 }

// kernel: multi_period_discriminator.33
= control target key start
LH: loop header
LB: loop body
LE: loop exit
PB: predicated region body
PF: predicated region fallthrough
CT: control target
= control target key end

     0   :  { %v211_v0 = vmov 0   ;;  %vm113_vm0 = vcmask 261120   ;;  %vm172_vm2 = vcmask 519168   ;;  %s277_s1 = inlined_call_operand.vmem [shape: bf16[160,64], index: 1, kind: input, shape index: {}]   ;;  %s278_s0 = inlined_call_operand.vmem [shape: bf16[16,160], index: 0, kind: input, shape index: {}]   ;;  %s279_s2 = inlined_call_operand.vmem [shape: f32[1,64], index: 2, kind: input, shape index: {}]   ;;  %s280_s3 = inlined_call_operand.vmem [shape: bf16[16,64], index: 3, kind: output, shape index: {}]  }
   0x1   :  { %117 = vmatprep.subr.bf16.mxu0 %v211_v0  ;;  %v198_v1 = vld [vmem:[%s277_s1] sm:$0xff]   ;;  %v199_v2 = vld [vmem:[%s277_s1 + $0x8] sm:$0xff]   ;;  %v200_v3 = vld [vmem:[%s277_s1 + $0x10] sm:$0xff]  }
   0x2   :  { %118 = vmatpush1.bf16.msra.mxu0 %v198_v1  ;;  %v201_v4 = vld [vmem:[%s277_s1 + $0x18] sm:$0xff]   ;;  %v210_v5 = vld [vmem:[%s278_s0 + $0x4] ss:$8 sps:$4 sm:$0xff]   ;;  %v204_v8 = vld [vmem:[%s277_s1 + $0x30] sm:$0xff]  }
   0x3   :  { %119 = vmatprep.subr.bf16.mxu0 %v211_v0  ;;  %192 = vmatprep.mubr.msk.bf16.mxu0 %vm113_vm0, %v210_v5  ;;  %v202_v6 = vld [vmem:[%s277_s1 + $0x20] sm:$0xff]   ;;  %v203_v7 = vld [vmem:[%s277_s1 + $0x28] sm:$0xff]   ;;  %v205_v9 = vld [vmem:[%s277_s1 + $0x38] sm:$0xff]  }
   0x4   :  { %v206_v10 = vld [vmem:[%s277_s1 + $0x40] sm:$0xff]   ;;  %v207_v11 = vld [vmem:[%s277_s1 + $0x48] sm:$0xff]  }
   0x5   :  { %v208_v12 = vld [vmem:[%s278_s0] ss:$8 sps:$4 sm:$0xff]  }
   0x6   :  { %120 = vmatpush1.bf16.msra.mxu0 %v199_v2  ;;  %v179_v13 = vld [vmem:[%s279_s2] ss:$0 sm:$0xff] }
   0x7   :  { %121 = vmatprep.subr.bf16.mxu0 %v211_v0 }
   0xa   :  { %122 = vmatpush1.bf16.msra.mxu0 %v200_v3 }
   0xb   :  { %123 = vmatprep.subr.bf16.mxu0 %v211_v0 }
   0xe   :  { %124 = vmatpush1.bf16.msra.mxu0 %v201_v4 }
   0xf   :  { %125 = vmatprep.subr.bf16.mxu0 %v211_v0 }
  0x12   :  { %126 = vmatpush1.bf16.msra.mxu0 %v202_v6 }
  0x13   :  { %127 = vmatprep.subr.bf16.mxu0 %v211_v0 }
  0x16   :  { %128 = vmatpush1.bf16.msra.mxu0 %v203_v7 }
  0x17   :  { %129 = vmatprep.subr.bf16.mxu0 %v211_v0 }
  0x1a   :  { %130 = vmatpush1.bf16.msra.mxu0 %v204_v8 }
  0x1b   :  { %131 = vmatprep.subr.bf16.mxu0 %v211_v0 }
  0x1e   :  { %132 = vmatpush1.bf16.msra.mxu0 %v205_v9 }
  0x1f   :  { %133 = vmatprep.subr.bf16.mxu0 %v211_v0 }
  0x22   :  { %134 = vmatpush1.bf16.msra.mxu0 %v206_v10 }
  0x23   :  { %135 = vmatprep.subr.bf16.mxu0 %v211_v0 }
  0x26   :  { %136 = vmatpush1.bf16.msra.mxu0 %v207_v11 }
  0x29   :  { %150 = vmatmul.mubr.bf16.vlgmr.msra.gmra.mrb[0].mxu0 %v208_v12 }
  0xfc   :  { %v151_v14 = vpop.f32.mrb[0].mxu0 }
  0xfd   :  { %v152_v15 = vadd.f32 %v179_v13, %v151_v14  ;;  %v153_v16 = vpop.f32.mrb[1].mxu0 }
  0xfe   :  { %v154_v17 = vpop.f32.mrb[2].mxu0 }
  0xff   :  { %vm158_vm1 = vcmp.ge.f32.partialorder %v152_v15, 0.0  ;;  %v160_v18 = vmul.f32 0.1, %v152_v15  ;;  %v155_v19 = vadd.f32 %v179_v13, %v154_v17  ;;  %v156_v20 = vpop.f32.mrb[3].mxu0 }
 0x101   :  { %v162_v21 = vsel %vm158_vm1, %v152_v15, %v160_v18  ;;  %vm159_vm3 = vcmp.ge.f32.partialorder %v155_v19, 0.0  ;;  %v161_v22 = vmul.f32 0.1, %v155_v19 }
 0x102   :  { %v195_v23 = vpack.c.bf16 %v162_v21, %v162_v21 }
 0x103   :  { %v163_v24 = vsel %vm159_vm3, %v155_v19, %v161_v22 }
 0x104   :  { %173 = vst.msk [vmem:[%s280_s3] sm:$0xf] %vm172_vm2, %v195_v23  ;;  %v196_v25 = vpack.c.bf16 %v163_v24, %v163_v24 }
 0x106   :  { %174 = vst.msk [vmem:[%s280_s3 + $0x4] sm:$0xf] %vm172_vm2, %v196_v25 }

// kernel: multi_period_discriminator.34
= control target key start
LH: loop header
LB: loop body
LE: loop exit
PB: predicated region body
PF: predicated region fallthrough
CT: control target
= control target key end

     0   :  { %v402_v1 = vmov 0.0   ;;  %vm403_vm0 = vmmov 0   ;;  %vm201_vm1 = vcmask 523264   ;;  %vm301_vm3 = vcmask 519168   ;;  %s502_s1 = inlined_call_operand.vmem [shape: bf16[320,64], index: 1, kind: input, shape index: {}]   ;;  %s503_s0 = inlined_call_operand.vmem [shape: bf16[16,320], index: 0, kind: input, shape index: {}]   ;;  %s504_s2 = inlined_call_operand.vmem [shape: f32[1,64], index: 2, kind: input, shape index: {}]   ;;  %s505_s3 = inlined_call_operand.vmem [shape: bf16[16,64], index: 3, kind: output, shape index: {}]  }
   0x1   :  { %v378_v0 = vld [vmem:[%s502_s1 + $0x40] sm:$0xff]   ;;  %364 = vmatprep.subr.bf16.mxu1 %v402_v1  ;;  %372 = vmatprep.mubr.msk.bf16.mxu1 %vm403_vm0, %v402_v1  ;;  %v380_v3 = vld [vmem:[%s502_s1 + $0x48] sm:$0xff]   ;;  %v382_v5 = vld [vmem:[%s502_s1 + $0x50] sm:$0xff]  }
   0x2   :  { %v379_v2 = vld [vmem:[%s502_s1] sm:$0xff]   ;;  %337 = vmatprep.subr.bf16.mxu0 %v378_v0  ;;  %v381_v4 = vld [vmem:[%s502_s1 + $0x8] sm:$0xff]   ;;  %v383_v6 = vld [vmem:[%s502_s1 + $0x10] sm:$0xff]  }
   0x3   :  { %338 = vmatpush3.bf16.msra.mxu0 %v379_v2  ;;  %v384_v7 = vld [vmem:[%s502_s1 + $0x58] sm:$0xff]   ;;  %v388_v8 = vld [vmem:[%s502_s1 + $0x80] sm:$0xff]   ;;  %v391_v11 = vld [vmem:[%s502_s1 + $0x88] sm:$0xff]  }
   0x4   :  { %339 = vmatprep.subr.bf16.mxu0 %v380_v3  ;;  %v385_v9 = vld [vmem:[%s502_s1 + $0x18] sm:$0xff]   ;;  %v386_v10 = vld [vmem:[%s502_s1 + $0x60] sm:$0xff]   ;;  %365 = vmatpush3.bf16.msra.mxu1 %v388_v8  ;;  %v389_v13 = vld [vmem:[%s502_s1 + $0x68] sm:$0xff]  }
   0x5   :  { %366 = vmatprep.subr.bf16.mxu1 %v402_v1  ;;  %v387_v12 = vld [vmem:[%s502_s1 + $0x20] sm:$0xff]   ;;  %v394_v14 = vld [vmem:[%s502_s1 + $0x90] sm:$0xff]   ;;  %v390_v15 = vld [vmem:[%s502_s1 + $0x28] sm:$0xff]  }
   0x6   :  { %v392_v16 = vld [vmem:[%s502_s1 + $0x70] sm:$0xff]   ;;  %v400_v18 = vld [vmem:[%s502_s1 + $0x98] sm:$0xff]   ;;  %v397_v23 = vld [vmem:[%s503_s0] ss:$12 sps:$4 sm:$0xff]  }
   0x7   :  { %340 = vmatpush3.bf16.msra.mxu0 %v381_v4  ;;  %v399_v17 = vld [vmem:[%s503_s0 + $0x4] ss:$12 sps:$4 sm:$0xff]   ;;  %v401_v20 = vld [vmem:[%s503_s0 + $0x8] ss:$12 sps:$4 sm:$0xff]   ;;  %v395_v21 = vld [vmem:[%s502_s1 + $0x78] sm:$0xff]  }
   0x8   :  { %341 = vmatprep.subr.bf16.mxu0 %v382_v5  ;;  %367 = vmatpush3.bf16.msra.mxu1 %v391_v11  ;;  %v393_v19 = vld [vmem:[%s502_s1 + $0x30] sm:$0xff]   ;;  %v396_v22 = vld [vmem:[%s502_s1 + $0x38] sm:$0xff]   ;;  %v308_v30 = vld [vmem:[%s504_s2] ss:$0 sm:$0xff] }
   0x9   :  { %368 = vmatprep.subr.bf16.mxu1 %v402_v1  ;;  %237 = vmatprep.mubr.bf16.mxu0 %v399_v17 }
   0xb   :  { %342 = vmatpush3.bf16.msra.mxu0 %v383_v6 }
   0xc   :  { %343 = vmatprep.subr.bf16.mxu0 %v384_v7  ;;  %369 = vmatpush3.bf16.msra.mxu1 %v394_v14 }
   0xd   :  { %370 = vmatprep.subr.bf16.mxu1 %v402_v1 }
   0xf   :  { %344 = vmatpush3.bf16.msra.mxu0 %v385_v9 }
  0x10   :  { %345 = vmatprep.subr.bf16.mxu0 %v386_v10  ;;  %371 = vmatpush3.bf16.msra.mxu1 %v400_v18 }
  0x13   :  { %346 = vmatpush3.bf16.msra.mxu0 %v387_v12  ;;  %373 = vmatmul.mubr.msk.bf16.vlgmr.msra.gmra.mrb[0].mxu1 %vm201_vm1, %v401_v20 }
  0x14   :  { %347 = vmatprep.subr.bf16.mxu0 %v389_v13 }
  0x17   :  { %348 = vmatpush3.bf16.msra.mxu0 %v390_v15 }
  0x18   :  { %349 = vmatprep.subr.bf16.mxu0 %v392_v16 }
  0x1b   :  { %350 = vmatpush3.bf16.msra.mxu0 %v393_v19 }
  0x1c   :  { %351 = vmatprep.subr.bf16.mxu0 %v395_v21 }
  0x1f   :  { %352 = vmatpush3.bf16.msra.mxu0 %v396_v22 }
  0x22   :  { %238 = vmatmul.mubr.bf16.vlgmr.msra.gmra.mrb[0].mxu0 %v397_v23 }
  0xe6   :  { %v280_v24 = vpop.f32.mrb[0].mxu1 }
  0xe7   :  { %v374_v25 = vpop.f32.mrb[1].mxu1 }
  0xe8   :  { %v283_v26 = vpop.f32.mrb[2].mxu1 }
  0xe9   :  { %v375_v27 = vpop.f32.mrb[3].mxu1 }
  0xf5   :  { %v353_v28 = vpop.f32.mrb[0].mxu0 }
  0xf6   :  { %v354_v29 = vpop.f32.mrb[1].mxu0 }
  0xf7   :  { %v355_v31 = vadd.f32 %v354_v29, %v353_v28  ;;  %v356_v32 = vpop.f32.mrb[2].mxu0 }
  0xf8   :  { %v357_v33 = vpop.f32.mrb[3].mxu0 }
  0xf9   :  { %v240_v34 = vadd.f32 %v355_v31, %v308_v30  ;;  %v358_v35 = vadd.f32 %v357_v33, %v356_v32 }
  0xfb   :  { %v281_v36 = vadd.f32 %v280_v24, %v240_v34  ;;  %v243_v37 = vadd.f32 %v358_v35, %v308_v30 }
  0xfd   :  { %vm287_vm2 = vcmp.ge.f32.partialorder %v281_v36, 0.0  ;;  %v289_v38 = vmul.f32 0.1, %v281_v36  ;;  %v284_v39 = vadd.f32 %v283_v26, %v243_v37 }
  0xff   :  { %v291_v40 = vsel %vm287_vm2, %v281_v36, %v289_v38  ;;  %vm288_vm4 = vcmp.ge.f32.partialorder %v284_v39, 0.0  ;;  %v290_v41 = vmul.f32 0.1, %v284_v39 }
 0x100   :  { %v335_v42 = vpack.c.bf16 %v291_v40, %v291_v40 }
 0x101   :  { %v292_v43 = vsel %vm288_vm4, %v284_v39, %v290_v41 }
 0x102   :  { %302 = vst.msk [vmem:[%s505_s3] sm:$0xf] %vm301_vm3, %v335_v42  ;;  %v336_v44 = vpack.c.bf16 %v292_v43, %v292_v43 }
 0x104   :  { %303 = vst.msk [vmem:[%s505_s3 + $0x4] sm:$0xf] %vm301_vm3, %v336_v44 }

// kernel: multi_period_discriminator.35
= control target key start
LH: loop header
LB: loop body
LE: loop exit
PB: predicated region body
PF: predicated region fallthrough
CT: control target
= control target key end

     0   :  { %v225_v0 = vmov 0   ;;  %vm129_vm0 = vcmask 523264   ;;  %vm182_vm1 = vcmask 60416   ;;  %s297_s1 = inlined_call_operand.vmem [shape: bf16[192,8], index: 1, kind: input, shape index: {}]   ;;  %s298_s0 = inlined_call_operand.vmem [shape: bf16[16,192], index: 0, kind: input, shape index: {}]   ;;  %s299_s2 = inlined_call_operand.vmem [shape: f32[1,8], index: 2, kind: input, shape index: {}]   ;;  %s300_s3 = inlined_call_operand.vmem [shape: bf16[16,8], index: 3, kind: output, shape index: {}]  }
   0x1   :  { %133 = vmatprep.subr.bf16.mxu0 %v225_v0  ;;  %v210_v1 = vld [vmem:[%s297_s1] sm:$0xff]   ;;  %v211_v2 = vld [vmem:[%s297_s1 + $0x8] sm:$0xff]   ;;  %v212_v3 = vld [vmem:[%s297_s1 + $0x10] sm:$0xff]  }
   0x2   :  { %134 = vmatpush1.bf16.msra.mxu0 %v210_v1  ;;  %v213_v4 = vld [vmem:[%s297_s1 + $0x18] sm:$0xff]   ;;  %v224_v5 = vld [vmem:[%s298_s0 + $0x4] ss:$8 sps:$4 sm:$0xff]   ;;  %v216_v8 = vld [vmem:[%s297_s1 + $0x30] sm:$0xff]  }
   0x3   :  { %135 = vmatprep.subr.bf16.mxu0 %v225_v0  ;;  %v214_v6 = vld [vmem:[%s297_s1 + $0x20] sm:$0xff]   ;;  %204 = vmatprep.mubr.msk.bf16.mxu0 %vm129_vm0, %v224_v5  ;;  %v215_v7 = vld [vmem:[%s297_s1 + $0x28] sm:$0xff]   ;;  %v217_v9 = vld [vmem:[%s297_s1 + $0x38] sm:$0xff]  }
   0x4   :  { %v218_v10 = vld [vmem:[%s297_s1 + $0x40] sm:$0xff]   ;;  %v219_v11 = vld [vmem:[%s297_s1 + $0x48] sm:$0xff]   ;;  %v220_v12 = vld [vmem:[%s297_s1 + $0x50] sm:$0xff]  }
   0x5   :  { %v221_v13 = vld [vmem:[%s297_s1 + $0x58] sm:$0xff]   ;;  %v222_v14 = vld [vmem:[%s298_s0] ss:$8 sps:$4 sm:$0xff]  }
   0x6   :  { %136 = vmatpush1.bf16.msra.mxu0 %v211_v2  ;;  %v189_v15 = vld [vmem:[%s299_s2] ss:$0 sm:$0xff] }
   0x7   :  { %137 = vmatprep.subr.bf16.mxu0 %v225_v0 }
   0xa   :  { %138 = vmatpush1.bf16.msra.mxu0 %v212_v3 }
   0xb   :  { %139 = vmatprep.subr.bf16.mxu0 %v225_v0 }
   0xe   :  { %140 = vmatpush1.bf16.msra.mxu0 %v213_v4 }
   0xf   :  { %141 = vmatprep.subr.bf16.mxu0 %v225_v0 }
  0x12   :  { %142 = vmatpush1.bf16.msra.mxu0 %v214_v6 }
  0x13   :  { %143 = vmatprep.subr.bf16.mxu0 %v225_v0 }
  0x16   :  { %144 = vmatpush1.bf16.msra.mxu0 %v215_v7 }
  0x17   :  { %145 = vmatprep.subr.bf16.mxu0 %v225_v0 }
  0x1a   :  { %146 = vmatpush1.bf16.msra.mxu0 %v216_v8 }
  0x1b   :  { %147 = vmatprep.subr.bf16.mxu0 %v225_v0 }
  0x1e   :  { %148 = vmatpush1.bf16.msra.mxu0 %v217_v9 }
  0x1f   :  { %149 = vmatprep.subr.bf16.mxu0 %v225_v0 }
  0x22   :  { %150 = vmatpush1.bf16.msra.mxu0 %v218_v10 }
  0x23   :  { %151 = vmatprep.subr.bf16.mxu0 %v225_v0 }
  0x26   :  { %152 = vmatpush1.bf16.msra.mxu0 %v219_v11 }
  0x27   :  { %153 = vmatprep.subr.bf16.mxu0 %v225_v0 }
  0x2a   :  { %154 = vmatpush1.bf16.msra.mxu0 %v220_v12 }
  0x2b   :  { %155 = vmatprep.subr.bf16.mxu0 %v225_v0 }
  0x2e   :  { %156 = vmatpush1.bf16.msra.mxu0 %v221_v13 }
  0x31   :  { %166 = vmatmul.mubr.bf16.vlgmr.msra.gmra.mrb[0].mxu0 %v222_v14 }
 0x104   :  { %v167_v16 = vpop.f32.mrb[0].mxu0 }
 0x105   :  { %v168_v17 = vadd.f32 %v189_v15, %v167_v16  ;;  %v169_v18 = vpop.f32.mrb[1].mxu0 }
 0x106   :  { %v170_v19 = vpop.f32.mrb[2].mxu0 }
 0x107   :  { %v207_v20 = vpack.c.bf16 %v168_v17, %v168_v17  ;;  %v171_v21 = vadd.f32 %v189_v15, %v170_v19  ;;  %v172_v22 = vpop.f32.mrb[3].mxu0 }
 0x109   :  { %183 = vst.msk [vmem:[%s300_s3] sm:$0xf] %vm182_vm1, %v207_v20  ;;  %v208_v23 = vpack.c.bf16 %v171_v21, %v171_v21 }
 0x10b   :  { %184 = vst.msk [vmem:[%s300_s3 + $0x4] sm:$0xf] %vm182_vm1, %v208_v23 }

// kernel: multi_period_discriminator.36
= control target key start
LH: loop header
LB: loop body
LE: loop exit
PB: predicated region body
PF: predicated region fallthrough
CT: control target
= control target key end

     0   :  { %vm234_vm0 = vcmask 1041408   ;;  %vm235_vm1 = vcmask 1042432   ;;  %v1044_v0 = vmov 0.0   ;;  %v1045_v2 = vmov 65535   ;;  %s1413_s1 = inlined_call_operand.vmem [shape: bf16[5,8], index: 1, kind: input, shape index: {}]   ;;  %s1414_s0 = inlined_call_operand.vmem [shape: bf16[336,5], index: 0, kind: input, shape index: {}]   ;;  %s1415_s2 = inlined_call_operand.vmem [shape: f32[1,8], index: 2, kind: input, shape index: {}]   ;;  %s1416_s3 = inlined_call_operand.vmem [shape: bf16[336,8], index: 3, kind: output, shape index: {}]  }
   0x1   :  { %932 = vmatprep.subr.bf16.mxu0 %v1044_v0  ;;  %v57_v1 = vld [vmem:[%s1413_s1] sm:$0x7]  ;;  %v236_v3 = vsel %vm234_vm0, 4294967295, %v1045_v2  ;;  %1018 = vmatprep.subr.bf16.mxu1 %v1044_v0  ;;  %vm1046_vm2 = vmmov 0   ;;  %v1024_v7 = vld [vmem:[%s1414_s0 + $0x58] sm:$0xff]   ;;  %vm170_vm3 = vcmask 39936  }
   0x2   :  { %v237_v4 = vsel %vm235_vm1, %v236_v3, 0  ;;  %934 = vmatprep.mubr.msk.bf16.mxu0 %vm1046_vm2, %v1044_v0  ;;  %v1023_v5 = vld [vmem:[%s1414_s0] sm:$0xff]   ;;  %978 = vmatprep.mubr.msk.bf16.mxu1 %vm1046_vm2, %v1044_v0  ;;  %v1025_v8 = vld [vmem:[%s1414_s0 + $0x8] sm:$0xff]   ;;  %v1027_v10 = vld [vmem:[%s1414_s0 + $0x10] sm:$0xff]   ;;  %vm736_vm6 = vcmask 60416  }
   0x3   :  { %v239_v6 = vand.u32 %v237_v4, %v57_v1  ;;  %v1026_v9 = vld [vmem:[%s1414_s0 + $0x60] sm:$0xff]   ;;  %v1028_v11 = vld [vmem:[%s1414_s0 + $0x68] sm:$0xff]   ;;  %v1029_v12 = vld [vmem:[%s1414_s0 + $0x18] sm:$0xff]  }
   0x4   :  { %v1030_v13 = vld [vmem:[%s1414_s0 + $0x70] sm:$0xff]   ;;  %v1031_v14 = vld [vmem:[%s1414_s0 + $0x20] sm:$0xff]   ;;  %v1032_v15 = vld [vmem:[%s1414_s0 + $0x78] sm:$0xff]  }
   0x5   :  { %933 = vmatpush3.bf16.msra.mxu0 %v239_v6  ;;  %1019 = vmatpush3.bf16.msra.mxu1 %v239_v6  ;;  %v1033_v16 = vld [vmem:[%s1414_s0 + $0x28] sm:$0xff]   ;;  %v1034_v17 = vld [vmem:[%s1414_s0 + $0x80] sm:$0xff]   ;;  %v1035_v18 = vld [vmem:[%s1414_s0 + $0x30] sm:$0xff]  }
   0x6   :  { %v1036_v19 = vld [vmem:[%s1414_s0 + $0x88] sm:$0xff]   ;;  %v1037_v20 = vld [vmem:[%s1414_s0 + $0x38] sm:$0xff]   ;;  %v1038_v21 = vld [vmem:[%s1414_s0 + $0x90] sm:$0xff]  }
   0x7   :  { %v1039_v22 = vld [vmem:[%s1414_s0 + $0x40] sm:$0xff]   ;;  %v1040_v23 = vld [vmem:[%s1414_s0 + $0x98] sm:$0xff]   ;;  %v1041_v24 = vld [vmem:[%s1414_s0 + $0x48] sm:$0xff]  }
   0x8   :  { %935 = vmatmul.mubr.msk.bf16.vlgmr.msra.gmra.mrb[0].mxu0 %vm170_vm3, %v1023_v5  ;;  %979 = vmatmul.mubr.msk.bf16.vlgmr.msra.gmra.mrb[0].mxu1 %vm170_vm3, %v1024_v7  ;;  %v1042_v25 = vld [vmem:[%s1414_s0 + $0xa0] sm:$0xff]   ;;  %v1043_v26 = vld [vmem:[%s1414_s0 + $0x50] sm:$0xff]  }
   0x9   :  { %938 = vmatprep.mubr.msk.bf16.mxu0 %vm1046_vm2, %v1044_v0  ;;  %982 = vmatprep.mubr.msk.bf16.mxu1 %vm1046_vm2, %v1044_v0  ;;  %v1201_v27 = vld [vmem:[%s1415_s2] ss:$0 sm:$0xff] }
  0x10   :  { %939 = vmatmul.mubr.msk.bf16.gmra.mrb[4].mxu0 %vm170_vm3, %v1025_v8  ;;  %983 = vmatmul.mubr.msk.bf16.gmra.mrb[4].mxu1 %vm170_vm3, %v1026_v9 }
  0x11   :  { %942 = vmatprep.mubr.msk.bf16.mxu0 %vm1046_vm2, %v1044_v0  ;;  %986 = vmatprep.mubr.msk.bf16.mxu1 %vm1046_vm2, %v1044_v0 }
  0x18   :  { %943 = vmatmul.mubr.msk.bf16.gmra.mrb[8].mxu0 %vm170_vm3, %v1027_v10  ;;  %987 = vmatmul.mubr.msk.bf16.gmra.mrb[8].mxu1 %vm170_vm3, %v1028_v11 }
  0x19   :  { %946 = vmatprep.mubr.msk.bf16.mxu0 %vm1046_vm2, %v1044_v0  ;;  %990 = vmatprep.mubr.msk.bf16.mxu1 %vm1046_vm2, %v1044_v0 }
  0x20   :  { %947 = vmatmul.mubr.msk.bf16.gmra.mrb[12].mxu0 %vm170_vm3, %v1029_v12  ;;  %991 = vmatmul.mubr.msk.bf16.gmra.mrb[12].mxu1 %vm170_vm3, %v1030_v13 }
  0x21   :  { %950 = vmatprep.mubr.msk.bf16.mxu0 %vm1046_vm2, %v1044_v0  ;;  %994 = vmatprep.mubr.msk.bf16.mxu1 %vm1046_vm2, %v1044_v0 }
  0x28   :  { %951 = vmatmul.mubr.msk.bf16.gmra.mrb[16].mxu0 %vm170_vm3, %v1031_v14  ;;  %995 = vmatmul.mubr.msk.bf16.gmra.mrb[16].mxu1 %vm170_vm3, %v1032_v15 }
  0x29   :  { %954 = vmatprep.mubr.msk.bf16.mxu0 %vm1046_vm2, %v1044_v0  ;;  %998 = vmatprep.mubr.msk.bf16.mxu1 %vm1046_vm2, %v1044_v0 }
  0x30   :  { %955 = vmatmul.mubr.msk.bf16.gmra.mrb[20].mxu0 %vm170_vm3, %v1033_v16  ;;  %999 = vmatmul.mubr.msk.bf16.gmra.mrb[20].mxu1 %vm170_vm3, %v1034_v17 }
  0x31   :  { %958 = vmatprep.mubr.msk.bf16.mxu0 %vm1046_vm2, %v1044_v0  ;;  %1002 = vmatprep.mubr.msk.bf16.mxu1 %vm1046_vm2, %v1044_v0 }
  0x38   :  { %959 = vmatmul.mubr.msk.bf16.gmra.mrb[24].mxu0 %vm170_vm3, %v1035_v18  ;;  %1003 = vmatmul.mubr.msk.bf16.gmra.mrb[24].mxu1 %vm170_vm3, %v1036_v19 }
  0x39   :  { %962 = vmatprep.mubr.msk.bf16.mxu0 %vm1046_vm2, %v1044_v0  ;;  %1006 = vmatprep.mubr.msk.bf16.mxu1 %vm1046_vm2, %v1044_v0 }
  0x40   :  { %963 = vmatmul.mubr.msk.bf16.gmra.mrb[28].mxu0 %vm170_vm3, %v1037_v20  ;;  %1007 = vmatmul.mubr.msk.bf16.gmra.mrb[28].mxu1 %vm170_vm3, %v1038_v21 }
  0x41   :  { %966 = vmatprep.mubr.msk.bf16.mxu0 %vm1046_vm2, %v1044_v0  ;;  %1010 = vmatprep.mubr.msk.bf16.mxu1 %vm1046_vm2, %v1044_v0 }
  0x48   :  { %967 = vmatmul.mubr.msk.bf16.gmra.mrb[32].mxu0 %vm170_vm3, %v1039_v22  ;;  %1011 = vmatmul.mubr.msk.bf16.gmra.mrb[32].mxu1 %vm170_vm3, %v1040_v23 }
  0x49   :  { %970 = vmatprep.mubr.msk.bf16.mxu0 %vm1046_vm2, %v1044_v0  ;;  %1014 = vmatprep.mubr.msk.bf16.mxu1 %vm1046_vm2, %v1044_v0 }
  0x50   :  { %971 = vmatmul.mubr.msk.bf16.gmra.mrb[36].mxu0 %vm170_vm3, %v1041_v24  ;;  %1015 = vmatmul.mubr.msk.bf16.gmra.mrb[36].mxu1 %vm170_vm3, %v1042_v25 }
  0x51   :  { %974 = vmatprep.mubr.msk.bf16.mxu0 %vm1046_vm2, %v1044_v0 }
  0x58   :  { %975 = vmatmul.mubr.msk.bf16.gmra.mrb[40].mxu0 %vm170_vm3, %v1043_v26 }
  0xdb   :  { %v275_v28 = vpop.f32.mrb[0].mxu0  ;;  %v363_v29 = vpop.f32.mrb[0].mxu1 }
  0xdc   :  { %v276_v30 = vadd.f32 %v1201_v27, %v275_v28  ;;  %v936_v31 = vpop.f32.mrb[1].mxu0  ;;  %v364_v32 = vadd.f32 %v1201_v27, %v363_v29  ;;  %v980_v33 = vpop.f32.mrb[1].mxu1 }
  0xdd   :  { %v278_v34 = vpop.f32.mrb[2].mxu0  ;;  %v366_v35 = vpop.f32.mrb[2].mxu1 }
  0xde   :  { %vm442_vm4 = vcmp.ge.f32.partialorder %v276_v30, 0.0  ;;  %v484_v36 = vmul.f32 0.1, %v276_v30  ;;  %v279_v37 = vadd.f32 %v1201_v27, %v278_v34  ;;  %v937_v38 = vpop.f32.mrb[3].mxu0  ;;  %vm464_vm5 = vcmp.ge.f32.partialorder %v364_v32, 0.0  ;;  %v981_v39 = vpop.f32.mrb[3].mxu1 }
  0xdf   :  { %v506_v40 = vmul.f32 0.1, %v364_v32  ;;  %v367_v41 = vadd.f32 %v1201_v27, %v366_v35 }
  0xe0   :  { %v526_v42 = vsel %vm442_vm4, %v276_v30, %v484_v36  ;;  %vm443_vm7 = vcmp.ge.f32.partialorder %v279_v37, 0.0  ;;  %v485_v43 = vmul.f32 0.1, %v279_v37 }
  0xe1   :  { %v868_v44 = vpack.c.bf16 %v526_v42, %v526_v42  ;;  %v548_v45 = vsel %vm464_vm5, %v364_v32, %v506_v40  ;;  %vm465_vm8 = vcmp.ge.f32.partialorder %v367_v41, 0.0  ;;  %v507_v46 = vmul.f32 0.1, %v367_v41 }
  0xe2   :  { %v527_v47 = vsel %vm443_vm7, %v279_v37, %v485_v43  ;;  %v890_v48 = vpack.c.bf16 %v548_v45, %v548_v45 }
  0xe3   :  { %737 = vst.msk [vmem:[%s1416_s3] sm:$0xf] %vm736_vm6, %v868_v44  ;;  %v869_v49 = vpack.c.bf16 %v527_v47, %v527_v47  ;;  %v549_v50 = vsel %vm465_vm8, %v367_v41, %v507_v46  ;;  %v283_v51 = vpop.f32.mrb[4].mxu0  ;;  %v371_v52 = vpop.f32.mrb[4].mxu1 }
  0xe4   :  { %759 = vst.msk [vmem:[%s1416_s3 + $0x58] sm:$0xf] %vm736_vm6, %v890_v48  ;;  %v891_v53 = vpack.c.bf16 %v549_v50, %v549_v50  ;;  %v284_v54 = vadd.f32 %v1201_v27, %v283_v51  ;;  %v940_v55 = vpop.f32.mrb[5].mxu0  ;;  %v372_v56 = vadd.f32 %v1201_v27, %v371_v52  ;;  %v984_v57 = vpop.f32.mrb[5].mxu1 }
  0xe5   :  { %738 = vst.msk [vmem:[%s1416_s3 + $0x4] sm:$0xf] %vm736_vm6, %v869_v49  ;;  %v286_v58 = vpop.f32.mrb[6].mxu0  ;;  %v374_v59 = vpop.f32.mrb[6].mxu1 }
  0xe6   :  { %760 = vst.msk [vmem:[%s1416_s3 + $0x5c] sm:$0xf] %vm736_vm6, %v891_v53  ;;  %vm444_vm9 = vcmp.ge.f32.partialorder %v284_v54, 0.0  ;;  %v486_v60 = vmul.f32 0.1, %v284_v54  ;;  %v287_v61 = vadd.f32 %v1201_v27, %v286_v58  ;;  %v941_v62 = vpop.f32.mrb[7].mxu0  ;;  %v375_v1 = vadd.f32 %v1201_v27, %v374_v59 }
  0xe7   :  { %vm466_vm10 = vcmp.ge.f32.partialorder %v372_v56, 0.0  ;;  %v985_v63 = vpop.f32.mrb[7].mxu1  ;;  %v508_v0 = vmul.f32 0.1, %v372_v56 }
  0xe8   :  { %v528_v2 = vsel %vm444_vm9, %v284_v54, %v486_v60  ;;  %vm445_vm11 = vcmp.ge.f32.partialorder %v287_v61, 0.0  ;;  %v487_v3 = vmul.f32 0.1, %v287_v61  ;;  %vm467_vm12 = vcmp.ge.f32.partialorder %v375_v1, 0.0 }
  0xe9   :  { %v870_v4 = vpack.c.bf16 %v528_v2, %v528_v2  ;;  %v550_v5 = vsel %vm466_vm10, %v372_v56, %v508_v0  ;;  %v509_v6 = vmul.f32 0.1, %v375_v1 }
  0xea   :  { %v529_v7 = vsel %vm445_vm11, %v287_v61, %v487_v3  ;;  %v892_v8 = vpack.c.bf16 %v550_v5, %v550_v5 }
  0xeb   :  { %739 = vst.msk [vmem:[%s1416_s3 + $0x8] sm:$0xf] %vm736_vm6, %v870_v4  ;;  %v871_v9 = vpack.c.bf16 %v529_v7, %v529_v7  ;;  %v551_v10 = vsel %vm467_vm12, %v375_v1, %v509_v6  ;;  %v291_v11 = vpop.f32.mrb[8].mxu0  ;;  %v379_v12 = vpop.f32.mrb[8].mxu1 }
  0xec   :  { %761 = vst.msk [vmem:[%s1416_s3 + $0x60] sm:$0xf] %vm736_vm6, %v892_v8  ;;  %v893_v13 = vpack.c.bf16 %v551_v10, %v551_v10  ;;  %v292_v14 = vadd.f32 %v1201_v27, %v291_v11  ;;  %v944_v15 = vpop.f32.mrb[9].mxu0  ;;  %v380_v16 = vadd.f32 %v1201_v27, %v379_v12  ;;  %v988_v17 = vpop.f32.mrb[9].mxu1 }
  0xed   :  { %740 = vst.msk [vmem:[%s1416_s3 + $0xc] sm:$0xf] %vm736_vm6, %v871_v9  ;;  %v294_v18 = vpop.f32.mrb[10].mxu0  ;;  %v382_v19 = vpop.f32.mrb[10].mxu1 }
  0xee   :  { %762 = vst.msk [vmem:[%s1416_s3 + $0x64] sm:$0xf] %vm736_vm6, %v893_v13  ;;  %vm446_vm13 = vcmp.ge.f32.partialorder %v292_v14, 0.0  ;;  %v488_v20 = vmul.f32 0.1, %v292_v14  ;;  %v295_v21 = vadd.f32 %v1201_v27, %v294_v18  ;;  %v945_v22 = vpop.f32.mrb[11].mxu0  ;;  %v383_v25 = vadd.f32 %v1201_v27, %v382_v19 }
  0xef   :  { %vm468_vm14 = vcmp.ge.f32.partialorder %v380_v16, 0.0  ;;  %v989_v23 = vpop.f32.mrb[11].mxu1  ;;  %v510_v24 = vmul.f32 0.1, %v380_v16 }
  0xf0   :  { %v530_v26 = vsel %vm446_vm13, %v292_v14, %v488_v20  ;;  %vm447_vm15 = vcmp.ge.f32.partialorder %v295_v21, 0.0  ;;  %v489_v28 = vmul.f32 0.1, %v295_v21  ;;  %vm469_vm0 = vcmp.ge.f32.partialorder %v383_v25, 0.0 }
  0xf1   :  { %v872_v29 = vpack.c.bf16 %v530_v26, %v530_v26  ;;  %v552_v30 = vsel %vm468_vm14, %v380_v16, %v510_v24  ;;  %v511_v31 = vmul.f32 0.1, %v383_v25 }
  0xf2   :  { %v531_v32 = vsel %vm447_vm15, %v295_v21, %v489_v28  ;;  %v894_v33 = vpack.c.bf16 %v552_v30, %v552_v30 }
  0xf3   :  { %741 = vst.msk [vmem:[%s1416_s3 + $0x10] sm:$0xf] %vm736_vm6, %v872_v29  ;;  %v873_v34 = vpack.c.bf16 %v531_v32, %v531_v32  ;;  %v553_v35 = vsel %vm469_vm0, %v383_v25, %v511_v31  ;;  %v299_v36 = vpop.f32.mrb[12].mxu0  ;;  %v387_v37 = vpop.f32.mrb[12].mxu1 }
  0xf4   :  { %763 = vst.msk [vmem:[%s1416_s3 + $0x68] sm:$0xf] %vm736_vm6, %v894_v33  ;;  %v895_v38 = vpack.c.bf16 %v553_v35, %v553_v35  ;;  %v300_v39 = vadd.f32 %v1201_v27, %v299_v36  ;;  %v948_v40 = vpop.f32.mrb[13].mxu0  ;;  %v388_v41 = vadd.f32 %v1201_v27, %v387_v37  ;;  %v992_v42 = vpop.f32.mrb[13].mxu1 }
  0xf5   :  { %742 = vst.msk [vmem:[%s1416_s3 + $0x14] sm:$0xf] %vm736_vm6, %v873_v34  ;;  %v302_v43 = vpop.f32.mrb[14].mxu0  ;;  %v390_v44 = vpop.f32.mrb[14].mxu1 }
  0xf6   :  { %764 = vst.msk [vmem:[%s1416_s3 + $0x6c] sm:$0xf] %vm736_vm6, %v895_v38  ;;  %vm448_vm1 = vcmp.ge.f32.partialorder %v300_v39, 0.0  ;;  %v490_v45 = vmul.f32 0.1, %v300_v39  ;;  %v303_v46 = vadd.f32 %v1201_v27, %v302_v43  ;;  %v949_v47 = vpop.f32.mrb[15].mxu0  ;;  %v391_v50 = vadd.f32 %v1201_v27, %v390_v44 }
  0xf7   :  { %vm470_vm2 = vcmp.ge.f32.partialorder %v388_v41, 0.0  ;;  %v993_v48 = vpop.f32.mrb[15].mxu1  ;;  %v512_v49 = vmul.f32 0.1, %v388_v41 }
  0xf8   :  { %v532_v51 = vsel %vm448_vm1, %v300_v39, %v490_v45  ;;  %vm449_vm3 = vcmp.ge.f32.partialorder %v303_v46, 0.0  ;;  %v491_v52 = vmul.f32 0.1, %v303_v46  ;;  %vm471_vm4 = vcmp.ge.f32.partialorder %v391_v50, 0.0 }
  0xf9   :  { %v874_v53 = vpack.c.bf16 %v532_v51, %v532_v51  ;;  %v554_v54 = vsel %vm470_vm2, %v388_v41, %v512_v49  ;;  %v513_v55 = vmul.f32 0.1, %v391_v50 }
  0xfa   :  { %v533_v56 = vsel %vm449_vm3, %v303_v46, %v491_v52  ;;  %v896_v57 = vpack.c.bf16 %v554_v54, %v554_v54 }
  0xfb   :  { %743 = vst.msk [vmem:[%s1416_s3 + $0x18] sm:$0xf] %vm736_vm6, %v874_v53  ;;  %v875_v58 = vpack.c.bf16 %v533_v56, %v533_v56  ;;  %v555_v59 = vsel %vm471_vm4, %v391_v50, %v513_v55  ;;  %v307_v60 = vpop.f32.mrb[16].mxu0  ;;  %v395_v61 = vpop.f32.mrb[16].mxu1 }
  0xfc   :  { %765 = vst.msk [vmem:[%s1416_s3 + $0x70] sm:$0xf] %vm736_vm6, %v896_v57  ;;  %v897_v62 = vpack.c.bf16 %v555_v59, %v555_v59  ;;  %v308_v63 = vadd.f32 %v1201_v27, %v307_v60  ;;  %v952_v0 = vpop.f32.mrb[17].mxu0  ;;  %v396_v1 = vadd.f32 %v1201_v27, %v395_v61  ;;  %v996_v2 = vpop.f32.mrb[17].mxu1 }
  0xfd   :  { %744 = vst.msk [vmem:[%s1416_s3 + $0x1c] sm:$0xf] %vm736_vm6, %v875_v58  ;;  %v310_v3 = vpop.f32.mrb[18].mxu0  ;;  %v398_v4 = vpop.f32.mrb[18].mxu1 }
  0xfe   :  { %766 = vst.msk [vmem:[%s1416_s3 + $0x74] sm:$0xf] %vm736_vm6, %v897_v62  ;;  %vm450_vm5 = vcmp.ge.f32.partialorder %v308_v63, 0.0  ;;  %v492_v5 = vmul.f32 0.1, %v308_v63  ;;  %v311_v6 = vadd.f32 %v1201_v27, %v310_v3  ;;  %v953_v7 = vpop.f32.mrb[19].mxu0  ;;  %v399_v10 = vadd.f32 %v1201_v27, %v398_v4 }
  0xff   :  { %vm472_vm7 = vcmp.ge.f32.partialorder %v396_v1, 0.0  ;;  %v997_v8 = vpop.f32.mrb[19].mxu1  ;;  %v514_v9 = vmul.f32 0.1, %v396_v1 }
 0x100   :  { %v534_v11 = vsel %vm450_vm5, %v308_v63, %v492_v5  ;;  %vm451_vm8 = vcmp.ge.f32.partialorder %v311_v6, 0.0  ;;  %v493_v12 = vmul.f32 0.1, %v311_v6  ;;  %vm473_vm9 = vcmp.ge.f32.partialorder %v399_v10, 0.0 }
 0x101   :  { %v876_v13 = vpack.c.bf16 %v534_v11, %v534_v11  ;;  %v556_v14 = vsel %vm472_vm7, %v396_v1, %v514_v9  ;;  %v515_v15 = vmul.f32 0.1, %v399_v10 }
 0x102   :  { %v535_v16 = vsel %vm451_vm8, %v311_v6, %v493_v12  ;;  %v898_v17 = vpack.c.bf16 %v556_v14, %v556_v14 }
 0x103   :  { %745 = vst.msk [vmem:[%s1416_s3 + $0x20] sm:$0xf] %vm736_vm6, %v876_v13  ;;  %v877_v18 = vpack.c.bf16 %v535_v16, %v535_v16  ;;  %v557_v19 = vsel %vm473_vm9, %v399_v10, %v515_v15  ;;  %v315_v20 = vpop.f32.mrb[20].mxu0  ;;  %v403_v21 = vpop.f32.mrb[20].mxu1 }
 0x104   :  { %767 = vst.msk [vmem:[%s1416_s3 + $0x78] sm:$0xf] %vm736_vm6, %v898_v17  ;;  %v899_v22 = vpack.c.bf16 %v557_v19, %v557_v19  ;;  %v316_v23 = vadd.f32 %v1201_v27, %v315_v20  ;;  %v956_v24 = vpop.f32.mrb[21].mxu0  ;;  %v404_v25 = vadd.f32 %v1201_v27, %v403_v21  ;;  %v1000_v26 = vpop.f32.mrb[21].mxu1 }
 0x105   :  { %746 = vst.msk [vmem:[%s1416_s3 + $0x24] sm:$0xf] %vm736_vm6, %v877_v18  ;;  %v318_v28 = vpop.f32.mrb[22].mxu0  ;;  %v406_v29 = vpop.f32.mrb[22].mxu1 }
 0x106   :  { %768 = vst.msk [vmem:[%s1416_s3 + $0x7c] sm:$0xf] %vm736_vm6, %v899_v22  ;;  %vm452_vm10 = vcmp.ge.f32.partialorder %v316_v23, 0.0  ;;  %v494_v30 = vmul.f32 0.1, %v316_v23  ;;  %v319_v31 = vadd.f32 %v1201_v27, %v318_v28  ;;  %v957_v32 = vpop.f32.mrb[23].mxu0  ;;  %v407_v35 = vadd.f32 %v1201_v27, %v406_v29 }
 0x107   :  { %vm474_vm11 = vcmp.ge.f32.partialorder %v404_v25, 0.0  ;;  %v1001_v33 = vpop.f32.mrb[23].mxu1  ;;  %v516_v34 = vmul.f32 0.1, %v404_v25 }
 0x108   :  { %v536_v36 = vsel %vm452_vm10, %v316_v23, %v494_v30  ;;  %vm453_vm12 = vcmp.ge.f32.partialorder %v319_v31, 0.0  ;;  %v495_v37 = vmul.f32 0.1, %v319_v31  ;;  %vm475_vm13 = vcmp.ge.f32.partialorder %v407_v35, 0.0 }
 0x109   :  { %v878_v38 = vpack.c.bf16 %v536_v36, %v536_v36  ;;  %v558_v39 = vsel %vm474_vm11, %v404_v25, %v516_v34  ;;  %v517_v40 = vmul.f32 0.1, %v407_v35 }
 0x10a   :  { %v537_v41 = vsel %vm453_vm12, %v319_v31, %v495_v37  ;;  %v900_v42 = vpack.c.bf16 %v558_v39, %v558_v39 }
 0x10b   :  { %747 = vst.msk [vmem:[%s1416_s3 + $0x28] sm:$0xf] %vm736_vm6, %v878_v38  ;;  %v879_v43 = vpack.c.bf16 %v537_v41, %v537_v41  ;;  %v559_v44 = vsel %vm475_vm13, %v407_v35, %v517_v40  ;;  %v323_v45 = vpop.f32.mrb[24].mxu0  ;;  %v411_v46 = vpop.f32.mrb[24].mxu1 }
 0x10c   :  { %769 = vst.msk [vmem:[%s1416_s3 + $0x80] sm:$0xf] %vm736_vm6, %v900_v42  ;;  %v901_v47 = vpack.c.bf16 %v559_v44, %v559_v44  ;;  %v324_v48 = vadd.f32 %v1201_v27, %v323_v45  ;;  %v960_v49 = vpop.f32.mrb[25].mxu0  ;;  %v412_v50 = vadd.f32 %v1201_v27, %v411_v46  ;;  %v1004_v51 = vpop.f32.mrb[25].mxu1 }
 0x10d   :  { %748 = vst.msk [vmem:[%s1416_s3 + $0x2c] sm:$0xf] %vm736_vm6, %v879_v43  ;;  %v326_v52 = vpop.f32.mrb[26].mxu0  ;;  %v414_v53 = vpop.f32.mrb[26].mxu1 }
 0x10e   :  { %770 = vst.msk [vmem:[%s1416_s3 + $0x84] sm:$0xf] %vm736_vm6, %v901_v47  ;;  %vm454_vm14 = vcmp.ge.f32.partialorder %v324_v48, 0.0  ;;  %v496_v54 = vmul.f32 0.1, %v324_v48  ;;  %v327_v55 = vadd.f32 %v1201_v27, %v326_v52  ;;  %v961_v56 = vpop.f32.mrb[27].mxu0  ;;  %v415_v59 = vadd.f32 %v1201_v27, %v414_v53 }
 0x10f   :  { %vm476_vm15 = vcmp.ge.f32.partialorder %v412_v50, 0.0  ;;  %v1005_v57 = vpop.f32.mrb[27].mxu1  ;;  %v518_v58 = vmul.f32 0.1, %v412_v50 }
 0x110   :  { %v538_v60 = vsel %vm454_vm14, %v324_v48, %v496_v54  ;;  %vm455_vm0 = vcmp.ge.f32.partialorder %v327_v55, 0.0  ;;  %v497_v61 = vmul.f32 0.1, %v327_v55  ;;  %vm477_vm1 = vcmp.ge.f32.partialorder %v415_v59, 0.0 }
 0x111   :  { %v880_v62 = vpack.c.bf16 %v538_v60, %v538_v60  ;;  %v560_v63 = vsel %vm476_vm15, %v412_v50, %v518_v58  ;;  %v519_v0 = vmul.f32 0.1, %v415_v59 }
 0x112   :  { %v539_v1 = vsel %vm455_vm0, %v327_v55, %v497_v61  ;;  %v902_v2 = vpack.c.bf16 %v560_v63, %v560_v63 }
 0x113   :  { %749 = vst.msk [vmem:[%s1416_s3 + $0x30] sm:$0xf] %vm736_vm6, %v880_v62  ;;  %v881_v3 = vpack.c.bf16 %v539_v1, %v539_v1  ;;  %v561_v4 = vsel %vm477_vm1, %v415_v59, %v519_v0  ;;  %v331_v5 = vpop.f32.mrb[28].mxu0  ;;  %v419_v6 = vpop.f32.mrb[28].mxu1 }
 0x114   :  { %771 = vst.msk [vmem:[%s1416_s3 + $0x88] sm:$0xf] %vm736_vm6, %v902_v2  ;;  %v903_v7 = vpack.c.bf16 %v561_v4, %v561_v4  ;;  %v332_v8 = vadd.f32 %v1201_v27, %v331_v5  ;;  %v964_v9 = vpop.f32.mrb[29].mxu0  ;;  %v420_v10 = vadd.f32 %v1201_v27, %v419_v6  ;;  %v1008_v11 = vpop.f32.mrb[29].mxu1 }
 0x115   :  { %750 = vst.msk [vmem:[%s1416_s3 + $0x34] sm:$0xf] %vm736_vm6, %v881_v3  ;;  %v334_v12 = vpop.f32.mrb[30].mxu0  ;;  %v422_v13 = vpop.f32.mrb[30].mxu1 }
 0x116   :  { %772 = vst.msk [vmem:[%s1416_s3 + $0x8c] sm:$0xf] %vm736_vm6, %v903_v7  ;;  %vm456_vm2 = vcmp.ge.f32.partialorder %v332_v8, 0.0  ;;  %v498_v14 = vmul.f32 0.1, %v332_v8  ;;  %v335_v15 = vadd.f32 %v1201_v27, %v334_v12  ;;  %v965_v16 = vpop.f32.mrb[31].mxu0  ;;  %v423_v19 = vadd.f32 %v1201_v27, %v422_v13 }
 0x117   :  { %vm478_vm3 = vcmp.ge.f32.partialorder %v420_v10, 0.0  ;;  %v1009_v17 = vpop.f32.mrb[31].mxu1  ;;  %v520_v18 = vmul.f32 0.1, %v420_v10 }
 0x118   :  { %v540_v20 = vsel %vm456_vm2, %v332_v8, %v498_v14  ;;  %vm457_vm4 = vcmp.ge.f32.partialorder %v335_v15, 0.0  ;;  %v499_v21 = vmul.f32 0.1, %v335_v15  ;;  %vm479_vm5 = vcmp.ge.f32.partialorder %v423_v19, 0.0 }
 0x119   :  { %v882_v22 = vpack.c.bf16 %v540_v20, %v540_v20  ;;  %v562_v23 = vsel %vm478_vm3, %v420_v10, %v520_v18  ;;  %v521_v24 = vmul.f32 0.1, %v423_v19 }
 0x11a   :  { %v541_v25 = vsel %vm457_vm4, %v335_v15, %v499_v21  ;;  %v904_v26 = vpack.c.bf16 %v562_v23, %v562_v23 }
 0x11b   :  { %751 = vst.msk [vmem:[%s1416_s3 + $0x38] sm:$0xf] %vm736_vm6, %v882_v22  ;;  %v883_v28 = vpack.c.bf16 %v541_v25, %v541_v25  ;;  %v563_v29 = vsel %vm479_vm5, %v423_v19, %v521_v24  ;;  %v339_v30 = vpop.f32.mrb[32].mxu0  ;;  %v427_v31 = vpop.f32.mrb[32].mxu1 }
 0x11c   :  { %773 = vst.msk [vmem:[%s1416_s3 + $0x90] sm:$0xf] %vm736_vm6, %v904_v26  ;;  %v905_v32 = vpack.c.bf16 %v563_v29, %v563_v29  ;;  %v340_v33 = vadd.f32 %v1201_v27, %v339_v30  ;;  %v968_v34 = vpop.f32.mrb[33].mxu0  ;;  %v428_v35 = vadd.f32 %v1201_v27, %v427_v31  ;;  %v1012_v36 = vpop.f32.mrb[33].mxu1 }
 0x11d   :  { %752 = vst.msk [vmem:[%s1416_s3 + $0x3c] sm:$0xf] %vm736_vm6, %v883_v28  ;;  %v342_v37 = vpop.f32.mrb[34].mxu0  ;;  %v430_v38 = vpop.f32.mrb[34].mxu1 }
 0x11e   :  { %774 = vst.msk [vmem:[%s1416_s3 + $0x94] sm:$0xf] %vm736_vm6, %v905_v32  ;;  %vm458_vm7 = vcmp.ge.f32.partialorder %v340_v33, 0.0  ;;  %v500_v39 = vmul.f32 0.1, %v340_v33  ;;  %v343_v40 = vadd.f32 %v1201_v27, %v342_v37  ;;  %v969_v41 = vpop.f32.mrb[35].mxu0  ;;  %v431_v44 = vadd.f32 %v1201_v27, %v430_v38 }
 0x11f   :  { %vm480_vm8 = vcmp.ge.f32.partialorder %v428_v35, 0.0  ;;  %v1013_v42 = vpop.f32.mrb[35].mxu1  ;;  %v522_v43 = vmul.f32 0.1, %v428_v35 }
 0x120   :  { %v542_v45 = vsel %vm458_vm7, %v340_v33, %v500_v39  ;;  %vm459_vm9 = vcmp.ge.f32.partialorder %v343_v40, 0.0  ;;  %v501_v46 = vmul.f32 0.1, %v343_v40  ;;  %vm481_vm10 = vcmp.ge.f32.partialorder %v431_v44, 0.0 }
 0x121   :  { %v884_v47 = vpack.c.bf16 %v542_v45, %v542_v45  ;;  %v564_v48 = vsel %vm480_vm8, %v428_v35, %v522_v43  ;;  %v523_v49 = vmul.f32 0.1, %v431_v44 }
 0x122   :  { %v543_v50 = vsel %vm459_vm9, %v343_v40, %v501_v46  ;;  %v906_v51 = vpack.c.bf16 %v564_v48, %v564_v48 }
 0x123   :  { %753 = vst.msk [vmem:[%s1416_s3 + $0x40] sm:$0xf] %vm736_vm6, %v884_v47  ;;  %v885_v52 = vpack.c.bf16 %v543_v50, %v543_v50  ;;  %v565_v53 = vsel %vm481_vm10, %v431_v44, %v523_v49  ;;  %v347_v54 = vpop.f32.mrb[36].mxu0  ;;  %v435_v55 = vpop.f32.mrb[36].mxu1 }
 0x124   :  { %775 = vst.msk [vmem:[%s1416_s3 + $0x98] sm:$0xf] %vm736_vm6, %v906_v51  ;;  %v907_v56 = vpack.c.bf16 %v565_v53, %v565_v53  ;;  %v348_v57 = vadd.f32 %v1201_v27, %v347_v54  ;;  %v972_v58 = vpop.f32.mrb[37].mxu0  ;;  %v436_v59 = vadd.f32 %v1201_v27, %v435_v55  ;;  %v1016_v60 = vpop.f32.mrb[37].mxu1 }
 0x125   :  { %754 = vst.msk [vmem:[%s1416_s3 + $0x44] sm:$0xf] %vm736_vm6, %v885_v52  ;;  %v350_v61 = vpop.f32.mrb[38].mxu0  ;;  %v438_v62 = vpop.f32.mrb[38].mxu1 }
 0x126   :  { %776 = vst.msk [vmem:[%s1416_s3 + $0x9c] sm:$0xf] %vm736_vm6, %v907_v56  ;;  %vm460_vm11 = vcmp.ge.f32.partialorder %v348_v57, 0.0  ;;  %v502_v63 = vmul.f32 0.1, %v348_v57  ;;  %v351_v0 = vadd.f32 %v1201_v27, %v350_v61  ;;  %v973_v1 = vpop.f32.mrb[39].mxu0  ;;  %v439_v4 = vadd.f32 %v1201_v27, %v438_v62 }
 0x127   :  { %vm482_vm12 = vcmp.ge.f32.partialorder %v436_v59, 0.0  ;;  %v1017_v2 = vpop.f32.mrb[39].mxu1  ;;  %v524_v3 = vmul.f32 0.1, %v436_v59 }
 0x128   :  { %v544_v5 = vsel %vm460_vm11, %v348_v57, %v502_v63  ;;  %vm461_vm13 = vcmp.ge.f32.partialorder %v351_v0, 0.0  ;;  %v503_v6 = vmul.f32 0.1, %v351_v0  ;;  %vm483_vm14 = vcmp.ge.f32.partialorder %v439_v4, 0.0 }
 0x129   :  { %v886_v7 = vpack.c.bf16 %v544_v5, %v544_v5  ;;  %v566_v8 = vsel %vm482_vm12, %v436_v59, %v524_v3  ;;  %v525_v9 = vmul.f32 0.1, %v439_v4 }
 0x12a   :  { %v545_v10 = vsel %vm461_vm13, %v351_v0, %v503_v6  ;;  %v908_v11 = vpack.c.bf16 %v566_v8, %v566_v8 }
 0x12b   :  { %755 = vst.msk [vmem:[%s1416_s3 + $0x48] sm:$0xf] %vm736_vm6, %v886_v7  ;;  %v887_v12 = vpack.c.bf16 %v545_v10, %v545_v10  ;;  %v567_v13 = vsel %vm483_vm14, %v439_v4, %v525_v9  ;;  %v355_v14 = vpop.f32.mrb[40].mxu0 }
 0x12c   :  { %777 = vst.msk [vmem:[%s1416_s3 + $0xa0] sm:$0xf] %vm736_vm6, %v908_v11  ;;  %v909_v15 = vpack.c.bf16 %v567_v13, %v567_v13  ;;  %v356_v16 = vadd.f32 %v1201_v27, %v355_v14  ;;  %v976_v17 = vpop.f32.mrb[41].mxu0 }
 0x12d   :  { %756 = vst.msk [vmem:[%s1416_s3 + $0x4c] sm:$0xf] %vm736_vm6, %v887_v12  ;;  %v358_v18 = vpop.f32.mrb[42].mxu0 }
 0x12e   :  { %778 = vst.msk [vmem:[%s1416_s3 + $0xa4] sm:$0xf] %vm736_vm6, %v909_v15  ;;  %vm462_vm15 = vcmp.ge.f32.partialorder %v356_v16, 0.0  ;;  %v504_v19 = vmul.f32 0.1, %v356_v16  ;;  %v359_v20 = vadd.f32 %v1201_v27, %v358_v18  ;;  %v977_v21 = vpop.f32.mrb[43].mxu0 }
 0x130   :  { %v546_v22 = vsel %vm462_vm15, %v356_v16, %v504_v19  ;;  %vm463_vm0 = vcmp.ge.f32.partialorder %v359_v20, 0.0  ;;  %v505_v23 = vmul.f32 0.1, %v359_v20 }
 0x131   :  { %v888_v24 = vpack.c.bf16 %v546_v22, %v546_v22 }
 0x132   :  { %v547_v25 = vsel %vm463_vm0, %v359_v20, %v505_v23 }
 0x133   :  { %757 = vst.msk [vmem:[%s1416_s3 + $0x50] sm:$0xf] %vm736_vm6, %v888_v24  ;;  %v889_v26 = vpack.c.bf16 %v547_v25, %v547_v25 }
 0x135   :  { %758 = vst.msk [vmem:[%s1416_s3 + $0x54] sm:$0xf] %vm736_vm6, %v889_v26 }

// kernel: multi_period_discriminator.43
= control target key start
LH: loop header
LB: loop body
LE: loop exit
PB: predicated region body
PF: predicated region fallthrough
CT: control target
= control target key end

     0   :  { %vm98_vm0 = vcmask 326656   ;;  %vm123_vm1 = vcmask 1043456   ;;  %vm336_vm2 = vcmask 125952   ;;  %s607_s1 = inlined_call_operand.vmem [shape: bf16[40,16], index: 1, kind: input, shape index: {}]   ;;  %s608_s0 = inlined_call_operand.vmem [shape: bf16[128,40], index: 0, kind: input, shape index: {}]   ;;  %s609_s2 = inlined_call_operand.vmem [shape: f32[1,16], index: 2, kind: input, shape index: {}]   ;;  %s610_s3 = inlined_call_operand.vmem [shape: bf16[128,16], index: 3, kind: output, shape index: {}]  }
   0x1   :  { %v450_v0 = vld [vmem:[%s607_s1] sm:$0xff]   ;;  %v451_v1 = vld [vmem:[%s607_s1 + $0x8] sm:$0xff]   ;;  %v452_v2 = vld [vmem:[%s607_s1 + $0x10] ss:$0 sps:$4 sm:$0xff]  }
   0x2   :  { %420 = vmatprep.subr.bf16.mxu0 %v450_v0  ;;  %442 = vmatprep.subr.bf16.mxu1 %v450_v0  ;;  %v453_v3 = vld [vmem:[%s608_s0] sm:$0xff]   ;;  %v125_v5 = vsel %vm123_vm1, %v452_v2, 0  ;;  %v455_v6 = vld [vmem:[%s608_s0 + $0x8] sm:$0xff]   ;;  %v457_v8 = vld [vmem:[%s608_s0 + $0x10] sm:$0xff]  }
   0x3   :  { %421 = vmatpush3.bf16.msra.mxu0 %v450_v0  ;;  %445 = vmatpush3.bf16.msra.mxu1 %v450_v0  ;;  %v454_v4 = vld [vmem:[%s608_s0 + $0x20] sm:$0xff]   ;;  %v456_v7 = vld [vmem:[%s608_s0 + $0x28] sm:$0xff]   ;;  %v458_v9 = vld [vmem:[%s608_s0 + $0x30] sm:$0xff]  }
   0x4   :  { %422 = vmatprep.subr.bf16.mxu0 %v451_v1  ;;  %443 = vmatprep.subr.bf16.mxu1 %v451_v1  ;;  %v459_v10 = vld [vmem:[%s608_s0 + $0x18] sm:$0xff]   ;;  %v525_v12 = vld [vmem:[%s609_s2] ss:$0 sm:$0xff] }
   0x5   :  { %426 = vmatprep.mubr.msk.bf16.mxu0 %vm98_vm0, %v453_v3  ;;  %434 = vmatprep.mubr.msk.bf16.mxu1 %vm98_vm0, %v454_v4  ;;  %v460_v11 = vld [vmem:[%s608_s0 + $0x38] sm:$0xff]  }
   0x7   :  { %423 = vmatpush3.bf16.msra.mxu0 %v451_v1  ;;  %446 = vmatpush3.bf16.msra.mxu1 %v451_v1 }
   0x8   :  { %448 = vmatprep.subr.msk.bf16.mxu0 %vm123_vm1, %v452_v2  ;;  %449 = vmatprep.subr.msk.bf16.mxu1 %vm123_vm1, %v452_v2 }
   0xb   :  { %425 = vmatpush3.bf16.msra.mxu0 %v125_v5  ;;  %447 = vmatpush3.bf16.msra.mxu1 %v125_v5 }
   0xe   :  { %427 = vmatmul.mubr.msk.bf16.vlgmr.msra.gmra.mrb[0].mxu0 %vm98_vm0, %v455_v6  ;;  %435 = vmatmul.mubr.msk.bf16.vlgmr.msra.gmra.mrb[0].mxu1 %vm98_vm0, %v456_v7 }
   0xf   :  { %430 = vmatprep.mubr.msk.bf16.mxu0 %vm98_vm0, %v457_v8  ;;  %438 = vmatprep.mubr.msk.bf16.mxu1 %vm98_vm0, %v458_v9 }
  0x16   :  { %431 = vmatmul.mubr.msk.bf16.gmra.mrb[4].mxu0 %vm98_vm0, %v459_v10  ;;  %439 = vmatmul.mubr.msk.bf16.gmra.mrb[4].mxu1 %vm98_vm0, %v460_v11 }
  0xe1   :  { %v428_v13 = vpop.f32.mrb[0].mxu0  ;;  %v436_v14 = vpop.f32.mrb[0].mxu1 }
  0xe2   :  { %v170_v15 = vadd.f32 %v428_v13, %v525_v12  ;;  %v202_v16 = vadd.f32 %v436_v14, %v525_v12  ;;  %v161_v17 = vpop.f32.mrb[1].mxu0  ;;  %v193_v18 = vpop.f32.mrb[1].mxu1 }
  0xe3   :  { %v162_v19 = vadd.f32 %v525_v12, %v161_v17  ;;  %v194_v20 = vadd.f32 %v525_v12, %v193_v18  ;;  %v429_v21 = vpop.f32.mrb[2].mxu0  ;;  %v437_v22 = vpop.f32.mrb[2].mxu1 }
  0xe4   :  { %vm226_vm3 = vcmp.ge.f32.partialorder %v170_v15, 0.0  ;;  %v242_v23 = vmul.f32 0.1, %v170_v15  ;;  %vm234_vm4 = vcmp.ge.f32.partialorder %v202_v16, 0.0  ;;  %v250_v24 = vmul.f32 0.1, %v202_v16 }
  0xe5   :  { %vm224_vm5 = vcmp.ge.f32.partialorder %v162_v19, 0.0  ;;  %v240_v25 = vmul.f32 0.1, %v162_v19  ;;  %vm232_vm6 = vcmp.ge.f32.partialorder %v194_v20, 0.0  ;;  %v248_v26 = vmul.f32 0.1, %v194_v20 }
  0xe6   :  { %v258_v27 = vsel %vm226_vm3, %v170_v15, %v242_v23  ;;  %v266_v28 = vsel %vm234_vm4, %v202_v16, %v250_v24  ;;  %v173_v29 = vadd.f32 %v429_v21, %v525_v12  ;;  %v205_v30 = vadd.f32 %v437_v22, %v525_v12  ;;  %v164_v31 = vpop.f32.mrb[3].mxu0  ;;  %v196_v32 = vpop.f32.mrb[3].mxu1 }
  0xe7   :  { %v395_v33 = vpack.c.bf16 %v258_v27, %v258_v27  ;;  %v403_v34 = vpack.c.bf16 %v266_v28, %v266_v28  ;;  %v256_v35 = vsel %vm224_vm5, %v162_v19, %v240_v25  ;;  %v264_v36 = vsel %vm232_vm6, %v194_v20, %v248_v26 }
  0xe8   :  { %v393_v37 = vpack.c.bf16 %v256_v35, %v256_v35  ;;  %v401_v38 = vpack.c.bf16 %v264_v36, %v264_v36  ;;  %vm227_vm7 = vcmp.ge.f32.partialorder %v173_v29, 0.0  ;;  %v243_v39 = vmul.f32 0.1, %v173_v29 }
  0xe9   :  { %339 = vst.msk [vmem:[%s610_s3 + $0x8] sm:$0xf] %vm336_vm2, %v395_v33  ;;  %347 = vst.msk [vmem:[%s610_s3 + $0x28] sm:$0xf] %vm336_vm2, %v403_v34  ;;  %vm235_vm8 = vcmp.ge.f32.partialorder %v205_v30, 0.0  ;;  %v165_v41 = vadd.f32 %v525_v12, %v164_v31  ;;  %v197_v42 = vadd.f32 %v525_v12, %v196_v32  ;;  %v432_v43 = vpop.f32.mrb[4].mxu0 }
  0xea   :  { %v251_v40 = vmul.f32 0.1, %v205_v30  ;;  %v440_v44 = vpop.f32.mrb[4].mxu1  ;;  %337 = vst.msk [vmem:[%s610_s3] sm:$0xf] %vm336_vm2, %v393_v37  ;;  %v259_v45 = vsel %vm227_vm7, %v173_v29, %v243_v39  ;;  %v186_v46 = vadd.f32 %v432_v43, %v525_v12  ;;  %v177_v48 = vpop.f32.mrb[5].mxu0 }
  0xeb   :  { %345 = vst.msk [vmem:[%s610_s3 + $0x20] sm:$0xf] %vm336_vm2, %v401_v38  ;;  %v218_v47 = vadd.f32 %v440_v44, %v525_v12  ;;  %v209_v49 = vpop.f32.mrb[5].mxu1  ;;  %v396_v50 = vpack.c.bf16 %v259_v45, %v259_v45  ;;  %vm225_vm9 = vcmp.ge.f32.partialorder %v165_v41, 0.0  ;;  %v241_v52 = vmul.f32 0.1, %v165_v41 }
  0xec   :  { %v267_v51 = vsel %vm235_vm8, %v205_v30, %v251_v40  ;;  %v433_v53 = vpop.f32.mrb[6].mxu0  ;;  %v441_v54 = vpop.f32.mrb[6].mxu1  ;;  %vm233_vm10 = vcmp.ge.f32.partialorder %v197_v42, 0.0  ;;  %v249_v56 = vmul.f32 0.1, %v197_v42  ;;  %vm230_vm11 = vcmp.ge.f32.partialorder %v186_v46, 0.0 }
  0xed   :  { %v404_v55 = vpack.c.bf16 %v267_v51, %v267_v51  ;;  %v180_v57 = vpop.f32.mrb[7].mxu0  ;;  %v212_v58 = vpop.f32.mrb[7].mxu1  ;;  %340 = vst.msk [vmem:[%s610_s3 + $0xc] sm:$0xf] %vm336_vm2, %v396_v50  ;;  %v257_v59 = vsel %vm225_vm9, %v165_v41, %v241_v52  ;;  %v246_v60 = vmul.f32 0.1, %v186_v46  ;;  %v178_v0 = vadd.f32 %v525_v12, %v177_v48 }
  0xee   :  { %vm238_vm12 = vcmp.ge.f32.partialorder %v218_v47, 0.0  ;;  %v254_v61 = vmul.f32 0.1, %v218_v47  ;;  %v394_v62 = vpack.c.bf16 %v257_v59, %v257_v59  ;;  %v265_v63 = vsel %vm233_vm10, %v197_v42, %v249_v56 }
  0xef   :  { %348 = vst.msk [vmem:[%s610_s3 + $0x2c] sm:$0xf] %vm336_vm2, %v404_v55  ;;  %v210_v1 = vadd.f32 %v525_v12, %v209_v49  ;;  %v402_v2 = vpack.c.bf16 %v265_v63, %v265_v63  ;;  %v262_v3 = vsel %vm230_vm11, %v186_v46, %v246_v60  ;;  %v189_v5 = vadd.f32 %v433_v53, %v525_v12 }
  0xf0   :  { %v270_v4 = vsel %vm238_vm12, %v218_v47, %v254_v61  ;;  %338 = vst.msk [vmem:[%s610_s3 + $0x4] sm:$0xf] %vm336_vm2, %v394_v62  ;;  %v399_v6 = vpack.c.bf16 %v262_v3, %v262_v3  ;;  %vm228_vm13 = vcmp.ge.f32.partialorder %v178_v0, 0.0  ;;  %v244_v8 = vmul.f32 0.1, %v178_v0 }
  0xf1   :  { %v407_v7 = vpack.c.bf16 %v270_v4, %v270_v4  ;;  %346 = vst.msk [vmem:[%s610_s3 + $0x24] sm:$0xf] %vm336_vm2, %v402_v2  ;;  %vm236_vm14 = vcmp.ge.f32.partialorder %v210_v1, 0.0  ;;  %v252_v9 = vmul.f32 0.1, %v210_v1  ;;  %vm231_vm15 = vcmp.ge.f32.partialorder %v189_v5, 0.0 }
  0xf2   :  { %v247_v10 = vmul.f32 0.1, %v189_v5  ;;  %343 = vst.msk [vmem:[%s610_s3 + $0x18] sm:$0xf] %vm336_vm2, %v399_v6  ;;  %v260_v11 = vsel %vm228_vm13, %v178_v0, %v244_v8  ;;  %v221_v13 = vadd.f32 %v441_v54, %v525_v12  ;;  %v181_v14 = vadd.f32 %v525_v12, %v180_v57 }
  0xf3   :  { %351 = vst.msk [vmem:[%s610_s3 + $0x38] sm:$0xf] %vm336_vm2, %v407_v7  ;;  %v213_v15 = vadd.f32 %v525_v12, %v212_v58  ;;  %v397_v16 = vpack.c.bf16 %v260_v11, %v260_v11  ;;  %v268_v17 = vsel %vm236_vm14, %v210_v1, %v252_v9 }
  0xf4   :  { %v263_v18 = vsel %vm231_vm15, %v189_v5, %v247_v10  ;;  %v405_v19 = vpack.c.bf16 %v268_v17, %v268_v17  ;;  %vm239_vm0 = vcmp.ge.f32.partialorder %v221_v13, 0.0  ;;  %v255_v21 = vmul.f32 0.1, %v221_v13 }
  0xf5   :  { %v400_v20 = vpack.c.bf16 %v263_v18, %v263_v18  ;;  %341 = vst.msk [vmem:[%s610_s3 + $0x10] sm:$0xf] %vm336_vm2, %v397_v16  ;;  %vm229_vm1 = vcmp.ge.f32.partialorder %v181_v14, 0.0  ;;  %v245_v22 = vmul.f32 0.1, %v181_v14  ;;  %vm237_vm3 = vcmp.ge.f32.partialorder %v213_v15, 0.0 }
  0xf6   :  { %v253_v23 = vmul.f32 0.1, %v213_v15  ;;  %349 = vst.msk [vmem:[%s610_s3 + $0x30] sm:$0xf] %vm336_vm2, %v405_v19  ;;  %v271_v12 = vsel %vm239_vm0, %v221_v13, %v255_v21 }
  0xf7   :  { %344 = vst.msk [vmem:[%s610_s3 + $0x1c] sm:$0xf] %vm336_vm2, %v400_v20  ;;  %v408_v24 = vpack.c.bf16 %v271_v12, %v271_v12  ;;  %v261_v25 = vsel %vm229_vm1, %v181_v14, %v245_v22 }
  0xf8   :  { %v269_v26 = vsel %vm237_vm3, %v213_v15, %v253_v23  ;;  %v398_v27 = vpack.c.bf16 %v261_v25, %v261_v25 }
  0xf9   :  { %v406_v28 = vpack.c.bf16 %v269_v26, %v269_v26  ;;  %352 = vst.msk [vmem:[%s610_s3 + $0x3c] sm:$0xf] %vm336_vm2, %v408_v24 }
  0xfa   :  { %342 = vst.msk [vmem:[%s610_s3 + $0x14] sm:$0xf] %vm336_vm2, %v398_v27 }
  0xfb   :  { %350 = vst.msk [vmem:[%s610_s3 + $0x34] sm:$0xf] %vm336_vm2, %v406_v28 }

// kernel: multi_period_discriminator.45
= control target key start
LH: loop header
LB: loop body
LE: loop exit
PB: predicated region body
PF: predicated region fallthrough
CT: control target
= control target key end

     0   :  { %v279_v0 = vmov 0   ;;  %vm124_vm0 = vcmask 261120   ;;  %vm208_vm3 = vcmask 519168   ;;  %s357_s1 = inlined_call_operand.vmem [shape: bf16[160,64], index: 1, kind: input, shape index: {}]   ;;  %s358_s0 = inlined_call_operand.vmem [shape: bf16[32,160], index: 0, kind: input, shape index: {}]   ;;  %s359_s2 = inlined_call_operand.vmem [shape: f32[1,64], index: 2, kind: input, shape index: {}]   ;;  %s360_s3 = inlined_call_operand.vmem [shape: bf16[32,64], index: 3, kind: output, shape index: {}]  }
   0x1   :  { %131 = vmatprep.subr.bf16.mxu0 %v279_v0  ;;  %242 = vmatprep.subr.bf16.mxu1 %v279_v0  ;;  %v263_v1 = vld [vmem:[%s357_s1] sm:$0xff]   ;;  %v264_v2 = vld [vmem:[%s357_s1 + $0x8] sm:$0xff]   ;;  %v265_v3 = vld [vmem:[%s357_s1 + $0x10] sm:$0xff]  }
   0x2   :  { %132 = vmatpush1.bf16.msra.mxu0 %v263_v1  ;;  %252 = vmatpush1.bf16.msra.mxu1 %v263_v1  ;;  %v266_v4 = vld [vmem:[%s357_s1 + $0x18] sm:$0xff]   ;;  %v275_v5 = vld [vmem:[%s358_s0 + $0x4] ss:$8 sps:$4 sm:$0xff]   ;;  %v269_v9 = vld [vmem:[%s357_s1 + $0x30] sm:$0xff]  }
   0x3   :  { %133 = vmatprep.subr.bf16.mxu0 %v279_v0  ;;  %243 = vmatprep.subr.bf16.mxu1 %v279_v0  ;;  %v278_v6 = vld [vmem:[%s358_s0 + $0x14] ss:$8 sps:$4 sm:$0xff]   ;;  %v267_v7 = vld [vmem:[%s357_s1 + $0x20] sm:$0xff]   ;;  %v268_v8 = vld [vmem:[%s357_s1 + $0x28] sm:$0xff]  }
   0x4   :  { %232 = vmatprep.mubr.msk.bf16.mxu0 %vm124_vm0, %v275_v5  ;;  %233 = vmatprep.mubr.msk.bf16.mxu1 %vm124_vm0, %v278_v6  ;;  %v270_v10 = vld [vmem:[%s357_s1 + $0x38] sm:$0xff]   ;;  %v271_v11 = vld [vmem:[%s357_s1 + $0x40] sm:$0xff]   ;;  %v272_v12 = vld [vmem:[%s357_s1 + $0x48] sm:$0xff]  }
   0x5   :  { %v273_v13 = vld [vmem:[%s358_s0] ss:$8 sps:$4 sm:$0xff]   ;;  %v276_v14 = vld [vmem:[%s358_s0 + $0x10] ss:$8 sps:$4 sm:$0xff]  }
   0x6   :  { %134 = vmatpush1.bf16.msra.mxu0 %v264_v2  ;;  %253 = vmatpush1.bf16.msra.mxu1 %v264_v2  ;;  %v217_v15 = vld [vmem:[%s359_s2] ss:$0 sm:$0xff] }
   0x7   :  { %135 = vmatprep.subr.bf16.mxu0 %v279_v0  ;;  %244 = vmatprep.subr.bf16.mxu1 %v279_v0 }
   0xa   :  { %136 = vmatpush1.bf16.msra.mxu0 %v265_v3  ;;  %254 = vmatpush1.bf16.msra.mxu1 %v265_v3 }
   0xb   :  { %137 = vmatprep.subr.bf16.mxu0 %v279_v0  ;;  %245 = vmatprep.subr.bf16.mxu1 %v279_v0 }
   0xe   :  { %138 = vmatpush1.bf16.msra.mxu0 %v266_v4  ;;  %255 = vmatpush1.bf16.msra.mxu1 %v266_v4 }
   0xf   :  { %139 = vmatprep.subr.bf16.mxu0 %v279_v0  ;;  %246 = vmatprep.subr.bf16.mxu1 %v279_v0 }
  0x12   :  { %140 = vmatpush1.bf16.msra.mxu0 %v267_v7  ;;  %256 = vmatpush1.bf16.msra.mxu1 %v267_v7 }
  0x13   :  { %141 = vmatprep.subr.bf16.mxu0 %v279_v0  ;;  %247 = vmatprep.subr.bf16.mxu1 %v279_v0 }
  0x16   :  { %142 = vmatpush1.bf16.msra.mxu0 %v268_v8  ;;  %257 = vmatpush1.bf16.msra.mxu1 %v268_v8 }
  0x17   :  { %143 = vmatprep.subr.bf16.mxu0 %v279_v0  ;;  %248 = vmatprep.subr.bf16.mxu1 %v279_v0 }
  0x1a   :  { %144 = vmatpush1.bf16.msra.mxu0 %v269_v9  ;;  %258 = vmatpush1.bf16.msra.mxu1 %v269_v9 }
  0x1b   :  { %145 = vmatprep.subr.bf16.mxu0 %v279_v0  ;;  %249 = vmatprep.subr.bf16.mxu1 %v279_v0 }
  0x1e   :  { %146 = vmatpush1.bf16.msra.mxu0 %v270_v10  ;;  %259 = vmatpush1.bf16.msra.mxu1 %v270_v10 }
  0x1f   :  { %147 = vmatprep.subr.bf16.mxu0 %v279_v0  ;;  %250 = vmatprep.subr.bf16.mxu1 %v279_v0 }
  0x22   :  { %148 = vmatpush1.bf16.msra.mxu0 %v271_v11  ;;  %260 = vmatpush1.bf16.msra.mxu1 %v271_v11 }
  0x23   :  { %149 = vmatprep.subr.bf16.mxu0 %v279_v0  ;;  %251 = vmatprep.subr.bf16.mxu1 %v279_v0 }
  0x26   :  { %150 = vmatpush1.bf16.msra.mxu0 %v272_v12  ;;  %261 = vmatpush1.bf16.msra.mxu1 %v272_v12 }
  0x29   :  { %164 = vmatmul.mubr.bf16.vlgmr.msra.gmra.mrb[0].mxu0 %v273_v13  ;;  %172 = vmatmul.mubr.bf16.vlgmr.msra.gmra.mrb[0].mxu1 %v276_v14 }
  0xfc   :  { %v165_v16 = vpop.f32.mrb[0].mxu0  ;;  %v173_v17 = vpop.f32.mrb[0].mxu1 }
  0xfd   :  { %v166_v18 = vadd.f32 %v217_v15, %v165_v16  ;;  %v174_v19 = vadd.f32 %v217_v15, %v173_v17  ;;  %v167_v20 = vpop.f32.mrb[1].mxu0  ;;  %v175_v21 = vpop.f32.mrb[1].mxu1 }
  0xfe   :  { %v168_v22 = vpop.f32.mrb[2].mxu0  ;;  %v176_v23 = vpop.f32.mrb[2].mxu1 }
  0xff   :  { %vm180_vm1 = vcmp.ge.f32.partialorder %v166_v18, 0.0  ;;  %v184_v24 = vmul.f32 0.1, %v166_v18  ;;  %vm182_vm2 = vcmp.ge.f32.partialorder %v174_v19, 0.0  ;;  %v186_v25 = vmul.f32 0.1, %v174_v19 }
 0x100   :  { %v169_v26 = vadd.f32 %v217_v15, %v168_v22  ;;  %v177_v27 = vadd.f32 %v217_v15, %v176_v23  ;;  %v170_v28 = vpop.f32.mrb[3].mxu0  ;;  %v178_v29 = vpop.f32.mrb[3].mxu1 }
 0x101   :  { %v188_v30 = vsel %vm180_vm1, %v166_v18, %v184_v24  ;;  %v190_v31 = vsel %vm182_vm2, %v174_v19, %v186_v25 }
 0x102   :  { %v238_v32 = vpack.c.bf16 %v188_v30, %v188_v30  ;;  %v240_v33 = vpack.c.bf16 %v190_v31, %v190_v31  ;;  %vm181_vm4 = vcmp.ge.f32.partialorder %v169_v26, 0.0  ;;  %v185_v34 = vmul.f32 0.1, %v169_v26 }
 0x103   :  { %vm183_vm5 = vcmp.ge.f32.partialorder %v177_v27, 0.0  ;;  %v187_v35 = vmul.f32 0.1, %v177_v27 }
 0x104   :  { %209 = vst.msk [vmem:[%s360_s3] sm:$0xf] %vm208_vm3, %v238_v32  ;;  %211 = vst.msk [vmem:[%s360_s3 + $0x8] sm:$0xf] %vm208_vm3, %v240_v33  ;;  %v189_v36 = vsel %vm181_vm4, %v169_v26, %v185_v34 }
 0x105   :  { %v239_v37 = vpack.c.bf16 %v189_v36, %v189_v36  ;;  %v191_v38 = vsel %vm183_vm5, %v177_v27, %v187_v35 }
 0x106   :  { %v241_v39 = vpack.c.bf16 %v191_v38, %v191_v38 }
 0x107   :  { %210 = vst.msk [vmem:[%s360_s3 + $0x4] sm:$0xf] %vm208_vm3, %v239_v37 }
 0x108   :  { %212 = vst.msk [vmem:[%s360_s3 + $0xc] sm:$0xf] %vm208_vm3, %v241_v39 }

// kernel: multi_period_discriminator.46
= control target key start
LH: loop header
LB: loop body
LE: loop exit
PB: predicated region body
PF: predicated region fallthrough
CT: control target
= control target key end

     0   :  { %vm220_vm0 = vcmask 523264   ;;  %vm353_vm2 = vcmask 519168   ;;  %s590_s1 = inlined_call_operand.vmem [shape: bf16[320,64], index: 1, kind: input, shape index: {}]   ;;  %s591_s0 = inlined_call_operand.vmem [shape: bf16[32,320], index: 0, kind: input, shape index: {}]   ;;  %s592_s2 = inlined_call_operand.vmem [shape: f32[1,64], index: 2, kind: input, shape index: {}]   ;;  %s593_s3 = inlined_call_operand.vmem [shape: bf16[32,64], index: 3, kind: output, shape index: {}]  }
   0x1   :  { %v445_v0 = vld [vmem:[%s590_s1 + $0x40] sm:$0xff]   ;;  %v447_v2 = vld [vmem:[%s590_s1 + $0x48] sm:$0xff]   ;;  %v449_v4 = vld [vmem:[%s590_s1 + $0x50] sm:$0xff]  }
   0x2   :  { %v446_v1 = vld [vmem:[%s590_s1] sm:$0xff]   ;;  %399 = vmatprep.subr.bf16.mxu0 %v445_v0  ;;  %v448_v3 = vld [vmem:[%s590_s1 + $0x8] sm:$0xff]   ;;  %v450_v5 = vld [vmem:[%s590_s1 + $0x10] sm:$0xff]  }
   0x3   :  { %400 = vmatpush3.bf16.msra.mxu0 %v446_v1  ;;  %v451_v6 = vld [vmem:[%s590_s1 + $0x58] sm:$0xff]   ;;  %v456_v8 = vld [vmem:[%s590_s1 + $0x80] sm:$0xff]   ;;  %v459_v10 = vld [vmem:[%s590_s1 + $0x88] sm:$0xff]  }
   0x4   :  { %401 = vmatprep.subr.bf16.mxu0 %v447_v2  ;;  %v452_v7 = vld [vmem:[%s590_s1 + $0x18] sm:$0xff]   ;;  %v453_v9 = vld [vmem:[%s590_s1 + $0x60] sm:$0xff]   ;;  %433 = vmatprep.subr.bf16.mxu1 %v456_v8  ;;  %v455_v12 = vld [vmem:[%s590_s1 + $0x68] sm:$0xff]  }
   0x5   :  { %434 = vmatpush3.bf16.msra.mxu1 %v456_v8  ;;  %v454_v11 = vld [vmem:[%s590_s1 + $0x20] sm:$0xff]   ;;  %v462_v13 = vld [vmem:[%s590_s1 + $0x90] sm:$0xff]   ;;  %v457_v14 = vld [vmem:[%s590_s1 + $0x28] sm:$0xff]  }
   0x6   :  { %435 = vmatprep.subr.bf16.mxu1 %v459_v10  ;;  %v458_v15 = vld [vmem:[%s590_s1 + $0x70] sm:$0xff]   ;;  %v467_v17 = vld [vmem:[%s590_s1 + $0x98] sm:$0xff]   ;;  %v469_v21 = vld [vmem:[%s591_s0 + $0x20] ss:$12 sps:$4 sm:$0xff]  }
   0x7   :  { %402 = vmatpush3.bf16.msra.mxu0 %v448_v3  ;;  %v466_v16 = vld [vmem:[%s591_s0 + $0x4] ss:$12 sps:$4 sm:$0xff]   ;;  %v468_v18 = vld [vmem:[%s591_s0 + $0x8] ss:$12 sps:$4 sm:$0xff]   ;;  %v461_v20 = vld [vmem:[%s590_s1 + $0x78] sm:$0xff]  }
   0x8   :  { %403 = vmatprep.subr.bf16.mxu0 %v449_v4  ;;  %259 = vmatprep.mubr.bf16.mxu0 %v466_v16  ;;  %v460_v19 = vld [vmem:[%s590_s1 + $0x30] sm:$0xff]   ;;  %v463_v22 = vld [vmem:[%s590_s1 + $0x38] sm:$0xff]   ;;  %v464_v23 = vld [vmem:[%s591_s0] ss:$12 sps:$4 sm:$0xff]  }
   0x9   :  { %436 = vmatpush3.bf16.msra.mxu1 %v459_v10  ;;  %441 = vmatprep.mubr.msk.bf16.mxu1 %vm220_vm0, %v468_v18  ;;  %v470_v24 = vld [vmem:[%s591_s0 + $0x1c] ss:$12 sps:$4 sm:$0xff]   ;;  %v472_v25 = vld [vmem:[%s591_s0 + $0x18] ss:$12 sps:$4 sm:$0xff]   ;;  %v362_v32 = vld [vmem:[%s592_s2] ss:$0 sm:$0xff] }
   0xa   :  { %437 = vmatprep.subr.bf16.mxu1 %v462_v13 }
   0xb   :  { %404 = vmatpush3.bf16.msra.mxu0 %v450_v5 }
   0xc   :  { %405 = vmatprep.subr.bf16.mxu0 %v451_v6 }
   0xd   :  { %438 = vmatpush3.bf16.msra.mxu1 %v462_v13 }
   0xe   :  { %439 = vmatprep.subr.bf16.mxu1 %v467_v17 }
   0xf   :  { %406 = vmatpush3.bf16.msra.mxu0 %v452_v7 }
  0x10   :  { %407 = vmatprep.subr.bf16.mxu0 %v453_v9 }
  0x11   :  { %440 = vmatpush3.bf16.msra.mxu1 %v467_v17 }
  0x13   :  { %408 = vmatpush3.bf16.msra.mxu0 %v454_v11 }
  0x14   :  { %409 = vmatprep.subr.bf16.mxu0 %v455_v12  ;;  %442 = vmatmul.mubr.msk.bf16.vlgmr.msra.gmra.mrb[0].mxu1 %vm220_vm0, %v469_v21 }
  0x17   :  { %410 = vmatpush3.bf16.msra.mxu0 %v457_v14 }
  0x18   :  { %411 = vmatprep.subr.bf16.mxu0 %v458_v15 }
  0x1b   :  { %412 = vmatpush3.bf16.msra.mxu0 %v460_v19 }
  0x1c   :  { %413 = vmatprep.subr.bf16.mxu0 %v461_v20 }
  0x1f   :  { %414 = vmatpush3.bf16.msra.mxu0 %v463_v22 }
  0x22   :  { %260 = vmatmul.mubr.bf16.vlgmr.msra.gmra.mrb[0].mxu0 %v464_v23 }
  0x23   :  { %267 = vmatprep.mubr.bf16.mxu0 %v470_v24 }
  0x2a   :  { %268 = vmatmul.mubr.bf16.gmra.mrb[4].mxu0 %v472_v25 }
  0xe7   :  { %v443_v26 = vpop.f32.mrb[0].mxu1 }
  0xe8   :  { %v310_v27 = vpop.f32.mrb[1].mxu1 }
  0xe9   :  { %v444_v28 = vpop.f32.mrb[2].mxu1 }
  0xea   :  { %v313_v29 = vpop.f32.mrb[3].mxu1 }
  0xf5   :  { %v415_v30 = vpop.f32.mrb[0].mxu0 }
  0xf6   :  { %v416_v31 = vpop.f32.mrb[1].mxu0 }
  0xf7   :  { %v417_v33 = vadd.f32 %v416_v31, %v415_v30  ;;  %v418_v34 = vpop.f32.mrb[2].mxu0 }
  0xf8   :  { %v419_v35 = vpop.f32.mrb[3].mxu0 }
  0xf9   :  { %v420_v36 = vadd.f32 %v419_v35, %v418_v34  ;;  %v262_v37 = vadd.f32 %v417_v33, %v362_v32 }
  0xfb   :  { %v311_v38 = vadd.f32 %v310_v27, %v262_v37  ;;  %v265_v39 = vadd.f32 %v420_v36, %v362_v32 }
  0xfd   :  { %vm325_vm1 = vcmp.ge.f32.partialorder %v311_v38, 0.0  ;;  %v329_v40 = vmul.f32 0.1, %v311_v38  ;;  %v314_v41 = vadd.f32 %v313_v29, %v265_v39  ;;  %v421_v42 = vpop.f32.mrb[4].mxu0 }
  0xfe   :  { %v422_v43 = vpop.f32.mrb[5].mxu0 }
  0xff   :  { %v333_v44 = vsel %vm325_vm1, %v311_v38, %v329_v40  ;;  %vm326_vm3 = vcmp.ge.f32.partialorder %v314_v41, 0.0  ;;  %v330_v45 = vmul.f32 0.1, %v314_v41  ;;  %v423_v46 = vadd.f32 %v422_v43, %v421_v42  ;;  %v424_v47 = vpop.f32.mrb[6].mxu0 }
 0x100   :  { %v395_v48 = vpack.c.bf16 %v333_v44, %v333_v44  ;;  %v425_v49 = vpop.f32.mrb[7].mxu0 }
 0x101   :  { %v334_v50 = vsel %vm326_vm3, %v314_v41, %v330_v45  ;;  %v270_v51 = vadd.f32 %v423_v46, %v362_v32  ;;  %v426_v52 = vadd.f32 %v425_v49, %v424_v47 }
 0x102   :  { %354 = vst.msk [vmem:[%s593_s3] sm:$0xf] %vm353_vm2, %v395_v48  ;;  %v396_v53 = vpack.c.bf16 %v334_v50, %v334_v50 }
 0x103   :  { %v319_v54 = vadd.f32 %v443_v26, %v270_v51  ;;  %v273_v55 = vadd.f32 %v426_v52, %v362_v32 }
 0x104   :  { %355 = vst.msk [vmem:[%s593_s3 + $0x4] sm:$0xf] %vm353_vm2, %v396_v53 }
 0x105   :  { %vm327_vm4 = vcmp.ge.f32.partialorder %v319_v54, 0.0  ;;  %v331_v56 = vmul.f32 0.1, %v319_v54  ;;  %v322_v57 = vadd.f32 %v444_v28, %v273_v55 }
 0x107   :  { %v335_v58 = vsel %vm327_vm4, %v319_v54, %v331_v56  ;;  %vm328_vm5 = vcmp.ge.f32.partialorder %v322_v57, 0.0  ;;  %v332_v59 = vmul.f32 0.1, %v322_v57 }
 0x108   :  { %v397_v60 = vpack.c.bf16 %v335_v58, %v335_v58 }
 0x109   :  { %v336_v61 = vsel %vm328_vm5, %v322_v57, %v332_v59 }
 0x10a   :  { %356 = vst.msk [vmem:[%s593_s3 + $0x8] sm:$0xf] %vm353_vm2, %v397_v60  ;;  %v398_v62 = vpack.c.bf16 %v336_v61, %v336_v61 }
 0x10c   :  { %357 = vst.msk [vmem:[%s593_s3 + $0xc] sm:$0xf] %vm353_vm2, %v398_v62 }

// kernel: multi_period_discriminator.47
= control target key start
LH: loop header
LB: loop body
LE: loop exit
PB: predicated region body
PF: predicated region fallthrough
CT: control target
= control target key end

     0   :  { %v291_v0 = vmov 0   ;;  %vm140_vm0 = vcmask 523264   ;;  %vm212_vm1 = vcmask 60416   ;;  %s399_s1 = inlined_call_operand.vmem [shape: bf16[192,8], index: 1, kind: input, shape index: {}]   ;;  %s400_s0 = inlined_call_operand.vmem [shape: bf16[32,192], index: 0, kind: input, shape index: {}]   ;;  %s401_s2 = inlined_call_operand.vmem [shape: f32[1,8], index: 2, kind: input, shape index: {}]   ;;  %s402_s3 = inlined_call_operand.vmem [shape: bf16[32,8], index: 3, kind: output, shape index: {}]  }
   0x1   :  { %147 = vmatprep.subr.bf16.mxu0 %v291_v0  ;;  %248 = vmatprep.subr.bf16.mxu1 %v291_v0  ;;  %v273_v1 = vld [vmem:[%s399_s1] sm:$0xff]   ;;  %v274_v2 = vld [vmem:[%s399_s1 + $0x8] sm:$0xff]   ;;  %v275_v3 = vld [vmem:[%s399_s1 + $0x10] sm:$0xff]  }
   0x2   :  { %148 = vmatpush1.bf16.msra.mxu0 %v273_v1  ;;  %260 = vmatpush1.bf16.msra.mxu1 %v273_v1  ;;  %v276_v4 = vld [vmem:[%s399_s1 + $0x18] sm:$0xff]   ;;  %v287_v5 = vld [vmem:[%s400_s0 + $0x4] ss:$8 sps:$4 sm:$0xff]   ;;  %v279_v9 = vld [vmem:[%s399_s1 + $0x30] sm:$0xff]  }
   0x3   :  { %149 = vmatprep.subr.bf16.mxu0 %v291_v0  ;;  %249 = vmatprep.subr.bf16.mxu1 %v291_v0  ;;  %v277_v6 = vld [vmem:[%s399_s1 + $0x20] sm:$0xff]   ;;  %v290_v7 = vld [vmem:[%s400_s0 + $0x14] ss:$8 sps:$4 sm:$0xff]   ;;  %v278_v8 = vld [vmem:[%s399_s1 + $0x28] sm:$0xff]  }
   0x4   :  { %238 = vmatprep.mubr.msk.bf16.mxu0 %vm140_vm0, %v287_v5  ;;  %239 = vmatprep.mubr.msk.bf16.mxu1 %vm140_vm0, %v290_v7  ;;  %v280_v10 = vld [vmem:[%s399_s1 + $0x38] sm:$0xff]   ;;  %v281_v11 = vld [vmem:[%s399_s1 + $0x40] sm:$0xff]   ;;  %v282_v12 = vld [vmem:[%s399_s1 + $0x48] sm:$0xff]  }
   0x5   :  { %v283_v13 = vld [vmem:[%s399_s1 + $0x50] sm:$0xff]   ;;  %v284_v14 = vld [vmem:[%s399_s1 + $0x58] sm:$0xff]   ;;  %v285_v15 = vld [vmem:[%s400_s0] ss:$8 sps:$4 sm:$0xff]  }
   0x6   :  { %150 = vmatpush1.bf16.msra.mxu0 %v274_v2  ;;  %261 = vmatpush1.bf16.msra.mxu1 %v274_v2  ;;  %v288_v16 = vld [vmem:[%s400_s0 + $0x10] ss:$8 sps:$4 sm:$0xff]   ;;  %v221_v17 = vld [vmem:[%s401_s2] ss:$0 sm:$0xff] }
   0x7   :  { %151 = vmatprep.subr.bf16.mxu0 %v291_v0  ;;  %250 = vmatprep.subr.bf16.mxu1 %v291_v0 }
   0xa   :  { %152 = vmatpush1.bf16.msra.mxu0 %v275_v3  ;;  %262 = vmatpush1.bf16.msra.mxu1 %v275_v3 }
   0xb   :  { %153 = vmatprep.subr.bf16.mxu0 %v291_v0  ;;  %251 = vmatprep.subr.bf16.mxu1 %v291_v0 }
   0xe   :  { %154 = vmatpush1.bf16.msra.mxu0 %v276_v4  ;;  %263 = vmatpush1.bf16.msra.mxu1 %v276_v4 }
   0xf   :  { %155 = vmatprep.subr.bf16.mxu0 %v291_v0  ;;  %252 = vmatprep.subr.bf16.mxu1 %v291_v0 }
  0x12   :  { %156 = vmatpush1.bf16.msra.mxu0 %v277_v6  ;;  %264 = vmatpush1.bf16.msra.mxu1 %v277_v6 }
  0x13   :  { %157 = vmatprep.subr.bf16.mxu0 %v291_v0  ;;  %253 = vmatprep.subr.bf16.mxu1 %v291_v0 }
  0x16   :  { %158 = vmatpush1.bf16.msra.mxu0 %v278_v8  ;;  %265 = vmatpush1.bf16.msra.mxu1 %v278_v8 }
  0x17   :  { %159 = vmatprep.subr.bf16.mxu0 %v291_v0  ;;  %254 = vmatprep.subr.bf16.mxu1 %v291_v0 }
  0x1a   :  { %160 = vmatpush1.bf16.msra.mxu0 %v279_v9  ;;  %266 = vmatpush1.bf16.msra.mxu1 %v279_v9 }
  0x1b   :  { %161 = vmatprep.subr.bf16.mxu0 %v291_v0  ;;  %255 = vmatprep.subr.bf16.mxu1 %v291_v0 }
  0x1e   :  { %162 = vmatpush1.bf16.msra.mxu0 %v280_v10  ;;  %267 = vmatpush1.bf16.msra.mxu1 %v280_v10 }
  0x1f   :  { %163 = vmatprep.subr.bf16.mxu0 %v291_v0  ;;  %256 = vmatprep.subr.bf16.mxu1 %v291_v0 }
  0x22   :  { %164 = vmatpush1.bf16.msra.mxu0 %v281_v11  ;;  %268 = vmatpush1.bf16.msra.mxu1 %v281_v11 }
  0x23   :  { %165 = vmatprep.subr.bf16.mxu0 %v291_v0  ;;  %257 = vmatprep.subr.bf16.mxu1 %v291_v0 }
  0x26   :  { %166 = vmatpush1.bf16.msra.mxu0 %v282_v12  ;;  %269 = vmatpush1.bf16.msra.mxu1 %v282_v12 }
  0x27   :  { %167 = vmatprep.subr.bf16.mxu0 %v291_v0  ;;  %258 = vmatprep.subr.bf16.mxu1 %v291_v0 }
  0x2a   :  { %168 = vmatpush1.bf16.msra.mxu0 %v283_v13  ;;  %270 = vmatpush1.bf16.msra.mxu1 %v283_v13 }
  0x2b   :  { %169 = vmatprep.subr.bf16.mxu0 %v291_v0  ;;  %259 = vmatprep.subr.bf16.mxu1 %v291_v0 }
  0x2e   :  { %170 = vmatpush1.bf16.msra.mxu0 %v284_v14  ;;  %271 = vmatpush1.bf16.msra.mxu1 %v284_v14 }
  0x31   :  { %180 = vmatmul.mubr.bf16.vlgmr.msra.gmra.mrb[0].mxu0 %v285_v15  ;;  %188 = vmatmul.mubr.bf16.vlgmr.msra.gmra.mrb[0].mxu1 %v288_v16 }
 0x104   :  { %v181_v18 = vpop.f32.mrb[0].mxu0  ;;  %v189_v19 = vpop.f32.mrb[0].mxu1 }
 0x105   :  { %v182_v20 = vadd.f32 %v221_v17, %v181_v18  ;;  %v190_v21 = vadd.f32 %v221_v17, %v189_v19  ;;  %v183_v22 = vpop.f32.mrb[1].mxu0  ;;  %v191_v23 = vpop.f32.mrb[1].mxu1 }
 0x106   :  { %v184_v24 = vpop.f32.mrb[2].mxu0  ;;  %v192_v25 = vpop.f32.mrb[2].mxu1 }
 0x107   :  { %v244_v26 = vpack.c.bf16 %v182_v20, %v182_v20  ;;  %v246_v27 = vpack.c.bf16 %v190_v21, %v190_v21  ;;  %v185_v28 = vadd.f32 %v221_v17, %v184_v24  ;;  %v193_v29 = vadd.f32 %v221_v17, %v192_v25  ;;  %v186_v30 = vpop.f32.mrb[3].mxu0  ;;  %v194_v31 = vpop.f32.mrb[3].mxu1 }
 0x109   :  { %213 = vst.msk [vmem:[%s402_s3] sm:$0xf] %vm212_vm1, %v244_v26  ;;  %215 = vst.msk [vmem:[%s402_s3 + $0x8] sm:$0xf] %vm212_vm1, %v246_v27  ;;  %v245_v32 = vpack.c.bf16 %v185_v28, %v185_v28  ;;  %v247_v33 = vpack.c.bf16 %v193_v29, %v193_v29 }
 0x10b   :  { %214 = vst.msk [vmem:[%s402_s3 + $0x4] sm:$0xf] %vm212_vm1, %v245_v32  ;;  %216 = vst.msk [vmem:[%s402_s3 + $0xc] sm:$0xf] %vm212_vm1, %v247_v33 }

// kernel: multi_period_discriminator.50
= control target key start
LH: loop header
LB: loop body
LE: loop exit
PB: predicated region body
PF: predicated region fallthrough
CT: control target
= control target key end

     0   :  { %vm90_vm0 = vcmask 654336   ;;  %vm224_vm1 = vcmask 257024   ;;  %s399_s1 = inlined_call_operand.vmem [shape: bf16[80,32], index: 1, kind: input, shape index: {}]   ;;  %s400_s0 = inlined_call_operand.vmem [shape: bf16[64,80], index: 0, kind: input, shape index: {}]   ;;  %s401_s2 = inlined_call_operand.vmem [shape: f32[1,32], index: 2, kind: input, shape index: {}]   ;;  %s402_s3 = inlined_call_operand.vmem [shape: bf16[64,32], index: 3, kind: output, shape index: {}]  }
   0x1   :  { %v304_v0 = vld [vmem:[%s399_s1] sm:$0xff]   ;;  %v305_v1 = vld [vmem:[%s399_s1 + $0x8] sm:$0xff]   ;;  %v306_v2 = vld [vmem:[%s399_s1 + $0x10] sm:$0xff]  }
   0x2   :  { %276 = vmatprep.subr.bf16.mxu0 %v304_v0  ;;  %294 = vmatprep.subr.bf16.mxu1 %v304_v0  ;;  %v309_v3 = vld [vmem:[%s400_s0] sm:$0xff]   ;;  %v310_v4 = vld [vmem:[%s400_s0 + $0x10] sm:$0xff]   ;;  %v307_v5 = vld [vmem:[%s399_s1 + $0x18] sm:$0xff]  }
   0x3   :  { %277 = vmatpush3.bf16.msra.mxu0 %v304_v0  ;;  %299 = vmatpush3.bf16.msra.mxu1 %v304_v0  ;;  %v308_v6 = vld [vmem:[%s399_s1 + $0x20] sm:$0xff]   ;;  %v311_v7 = vld [vmem:[%s400_s0 + $0x8] sm:$0xff]   ;;  %v312_v8 = vld [vmem:[%s400_s0 + $0x18] sm:$0xff]  }
   0x4   :  { %278 = vmatprep.subr.bf16.mxu0 %v305_v1  ;;  %295 = vmatprep.subr.bf16.mxu1 %v305_v1  ;;  %v237_v9 = vld [vmem:[%s401_s2] ss:$0 sm:$0xff] }
   0x5   :  { %286 = vmatprep.mubr.msk.bf16.mxu0 %vm90_vm0, %v309_v3  ;;  %290 = vmatprep.mubr.msk.bf16.mxu1 %vm90_vm0, %v310_v4 }
   0x7   :  { %279 = vmatpush3.bf16.msra.mxu0 %v305_v1  ;;  %300 = vmatpush3.bf16.msra.mxu1 %v305_v1 }
   0x8   :  { %280 = vmatprep.subr.bf16.mxu0 %v306_v2  ;;  %296 = vmatprep.subr.bf16.mxu1 %v306_v2 }
   0xb   :  { %281 = vmatpush3.bf16.msra.mxu0 %v306_v2  ;;  %301 = vmatpush3.bf16.msra.mxu1 %v306_v2 }
   0xc   :  { %282 = vmatprep.subr.bf16.mxu0 %v307_v5  ;;  %297 = vmatprep.subr.bf16.mxu1 %v307_v5 }
   0xf   :  { %283 = vmatpush3.bf16.msra.mxu0 %v307_v5  ;;  %302 = vmatpush3.bf16.msra.mxu1 %v307_v5 }
  0x10   :  { %284 = vmatprep.subr.bf16.mxu0 %v308_v6  ;;  %298 = vmatprep.subr.bf16.mxu1 %v308_v6 }
  0x13   :  { %285 = vmatpush3.bf16.msra.mxu0 %v308_v6  ;;  %303 = vmatpush3.bf16.msra.mxu1 %v308_v6 }
  0x16   :  { %287 = vmatmul.mubr.msk.bf16.vlgmr.msra.gmra.mrb[0].mxu0 %vm90_vm0, %v311_v7  ;;  %291 = vmatmul.mubr.msk.bf16.vlgmr.msra.gmra.mrb[0].mxu1 %vm90_vm0, %v312_v8 }
  0xe9   :  { %v288_v10 = vpop.f32.mrb[0].mxu0  ;;  %v292_v11 = vpop.f32.mrb[0].mxu1 }
  0xea   :  { %v146_v12 = vadd.f32 %v288_v10, %v237_v9  ;;  %v162_v13 = vadd.f32 %v292_v11, %v237_v9  ;;  %v137_v14 = vpop.f32.mrb[1].mxu0  ;;  %v153_v15 = vpop.f32.mrb[1].mxu1 }
  0xeb   :  { %v138_v16 = vadd.f32 %v237_v9, %v137_v14  ;;  %v154_v17 = vadd.f32 %v237_v9, %v153_v15  ;;  %v289_v18 = vpop.f32.mrb[2].mxu0  ;;  %v293_v19 = vpop.f32.mrb[2].mxu1 }
  0xec   :  { %vm170_vm2 = vcmp.ge.f32.partialorder %v146_v12, 0.0  ;;  %v178_v20 = vmul.f32 0.1, %v146_v12  ;;  %vm174_vm3 = vcmp.ge.f32.partialorder %v162_v13, 0.0  ;;  %v182_v21 = vmul.f32 0.1, %v162_v13 }
  0xed   :  { %vm168_vm4 = vcmp.ge.f32.partialorder %v138_v16, 0.0  ;;  %v176_v22 = vmul.f32 0.1, %v138_v16  ;;  %vm172_vm5 = vcmp.ge.f32.partialorder %v154_v17, 0.0  ;;  %v180_v23 = vmul.f32 0.1, %v154_v17 }
  0xee   :  { %v186_v24 = vsel %vm170_vm2, %v146_v12, %v178_v20  ;;  %v190_v25 = vsel %vm174_vm3, %v162_v13, %v182_v21  ;;  %v149_v26 = vadd.f32 %v289_v18, %v237_v9  ;;  %v165_v27 = vadd.f32 %v293_v19, %v237_v9  ;;  %v140_v28 = vpop.f32.mrb[3].mxu0  ;;  %v156_v29 = vpop.f32.mrb[3].mxu1 }
  0xef   :  { %v261_v30 = vpack.c.bf16 %v186_v24, %v186_v24  ;;  %v265_v31 = vpack.c.bf16 %v190_v25, %v190_v25  ;;  %v184_v32 = vsel %vm168_vm4, %v138_v16, %v176_v22  ;;  %v188_v33 = vsel %vm172_vm5, %v154_v17, %v180_v23 }
  0xf0   :  { %v259_v34 = vpack.c.bf16 %v184_v32, %v184_v32  ;;  %v263_v35 = vpack.c.bf16 %v188_v33, %v188_v33  ;;  %vm171_vm6 = vcmp.ge.f32.partialorder %v149_v26, 0.0  ;;  %v179_v36 = vmul.f32 0.1, %v149_v26 }
  0xf1   :  { %227 = vst.msk [vmem:[%s402_s3 + $0x8] sm:$0xf] %vm224_vm1, %v261_v30  ;;  %231 = vst.msk [vmem:[%s402_s3 + $0x18] sm:$0xf] %vm224_vm1, %v265_v31  ;;  %vm175_vm7 = vcmp.ge.f32.partialorder %v165_v27, 0.0  ;;  %v141_v38 = vadd.f32 %v237_v9, %v140_v28  ;;  %v157_v39 = vadd.f32 %v237_v9, %v156_v29 }
  0xf2   :  { %v183_v37 = vmul.f32 0.1, %v165_v27  ;;  %225 = vst.msk [vmem:[%s402_s3] sm:$0xf] %vm224_vm1, %v259_v34  ;;  %229 = vst.msk [vmem:[%s402_s3 + $0x10] sm:$0xf] %vm224_vm1, %v263_v35  ;;  %v187_v40 = vsel %vm171_vm6, %v149_v26, %v179_v36 }
  0xf3   :  { %v262_v41 = vpack.c.bf16 %v187_v40, %v187_v40  ;;  %vm169_vm8 = vcmp.ge.f32.partialorder %v141_v38, 0.0  ;;  %v177_v43 = vmul.f32 0.1, %v141_v38  ;;  %vm173_vm9 = vcmp.ge.f32.partialorder %v157_v39, 0.0 }
  0xf4   :  { %v191_v42 = vsel %vm175_vm7, %v165_v27, %v183_v37  ;;  %v181_v45 = vmul.f32 0.1, %v157_v39 }
  0xf5   :  { %v266_v44 = vpack.c.bf16 %v191_v42, %v191_v42  ;;  %228 = vst.msk [vmem:[%s402_s3 + $0xc] sm:$0xf] %vm224_vm1, %v262_v41  ;;  %v185_v46 = vsel %vm169_vm8, %v141_v38, %v177_v43 }
  0xf6   :  { %v260_v47 = vpack.c.bf16 %v185_v46, %v185_v46  ;;  %v189_v48 = vsel %vm173_vm9, %v157_v39, %v181_v45 }
  0xf7   :  { %232 = vst.msk [vmem:[%s402_s3 + $0x1c] sm:$0xf] %vm224_vm1, %v266_v44  ;;  %v264_v49 = vpack.c.bf16 %v189_v48, %v189_v48 }
  0xf8   :  { %226 = vst.msk [vmem:[%s402_s3 + $0x4] sm:$0xf] %vm224_vm1, %v260_v47 }
  0xf9   :  { %230 = vst.msk [vmem:[%s402_s3 + $0x14] sm:$0xf] %vm224_vm1, %v264_v49 }

// kernel: multi_period_discriminator.54
= control target key start
LH: loop header
LB: loop body
LE: loop exit
PB: predicated region body
PF: predicated region fallthrough
CT: control target
= control target key end

     0   :  { %vm244_vm0 = vcmask 1041408   ;;  %vm245_vm1 = vcmask 1042432   ;;  %vm177_vm2 = vcmask 39936   ;;  %v1044_v1 = vmov 65535   ;;  %s1387_s1 = inlined_call_operand.vmem [shape: bf16[5,8], index: 1, kind: input, shape index: {}]   ;;  %s1388_s0 = inlined_call_operand.vmem [shape: bf16[352,5], index: 0, kind: input, shape index: {}]   ;;  %s1389_s2 = inlined_call_operand.vmem [shape: f32[1,8], index: 2, kind: input, shape index: {}]   ;;  %s1390_s3 = inlined_call_operand.vmem [shape: bf16[352,8], index: 3, kind: output, shape index: {}]  }
   0x1   :  { %v59_v0 = vld [vmem:[%s1387_s1] sm:$0x7]  ;;  %v246_v2 = vsel %vm244_vm0, 4294967295, %v1044_v1  ;;  %v1023_v6 = vld [vmem:[%s1388_s0 + $0x8] sm:$0xff]   ;;  %v1026_v9 = vld [vmem:[%s1388_s0 + $0x10] sm:$0xff]   ;;  %vm768_vm3 = vcmask 60416  }
   0x2   :  { %v1022_v3 = vld [vmem:[%s1388_s0] sm:$0xff]   ;;  %v247_v4 = vsel %vm245_vm1, %v246_v2, 0  ;;  %v1025_v8 = vld [vmem:[%s1388_s0 + $0x68] sm:$0xff]   ;;  %v1028_v10 = vld [vmem:[%s1388_s0 + $0x70] sm:$0xff]  }
   0x3   :  { %v249_v5 = vand.u32 %v247_v4, %v59_v0  ;;  %975 = vmatprep.mubr.msk.bf16.mxu0 %vm177_vm2, %v1022_v3  ;;  %v1024_v7 = vld [vmem:[%s1388_s0 + $0x60] sm:$0xff]   ;;  %v1027_v11 = vld [vmem:[%s1388_s0 + $0x18] sm:$0xff]   ;;  %v1031_v15 = vld [vmem:[%s1388_s0 + $0x28] sm:$0xff]  }
   0x4   :  { %999 = vmatprep.mubr.msk.bf16.mxu1 %vm177_vm2, %v1024_v7  ;;  %v1029_v12 = vld [vmem:[%s1388_s0 + $0x78] sm:$0xff]   ;;  %v1030_v13 = vld [vmem:[%s1388_s0 + $0x20] sm:$0xff]   ;;  %v1033_v16 = vld [vmem:[%s1388_s0 + $0x88] sm:$0xff]  }
   0x5   :  { %973 = vmatprep.subr.bf16.mxu0 %v249_v5  ;;  %1019 = vmatprep.subr.bf16.mxu1 %v249_v5  ;;  %v1032_v14 = vld [vmem:[%s1388_s0 + $0x80] sm:$0xff]   ;;  %v1034_v17 = vld [vmem:[%s1388_s0 + $0x30] sm:$0xff]   ;;  %v1035_v19 = vld [vmem:[%s1388_s0 + $0x38] sm:$0xff]  }
   0x6   :  { %974 = vmatpush3.bf16.msra.mxu0 %v249_v5  ;;  %1020 = vmatpush3.bf16.msra.mxu1 %v249_v5  ;;  %v1036_v18 = vld [vmem:[%s1388_s0 + $0x90] sm:$0xff]   ;;  %v1037_v20 = vld [vmem:[%s1388_s0 + $0x98] sm:$0xff]   ;;  %v1038_v21 = vld [vmem:[%s1388_s0 + $0x40] sm:$0xff]  }
   0x7   :  { %v1040_v22 = vld [vmem:[%s1388_s0 + $0xa0] sm:$0xff]   ;;  %v1039_v23 = vld [vmem:[%s1388_s0 + $0x48] sm:$0xff]   ;;  %v1042_v25 = vld [vmem:[%s1388_s0 + $0x50] sm:$0xff]  }
   0x8   :  { %v1041_v24 = vld [vmem:[%s1388_s0 + $0xa8] sm:$0xff]   ;;  %v1043_v26 = vld [vmem:[%s1388_s0 + $0x58] sm:$0xff]   ;;  %v1159_v27 = vld [vmem:[%s1389_s2] ss:$0 sm:$0xff] }
   0x9   :  { %976 = vmatmul.mubr.msk.bf16.vlgmr.msra.gmra.mrb[0].mxu0 %vm177_vm2, %v1023_v6  ;;  %1000 = vmatmul.mubr.msk.bf16.vlgmr.msra.gmra.mrb[0].mxu1 %vm177_vm2, %v1025_v8 }
   0xa   :  { %979 = vmatprep.mubr.msk.bf16.mxu0 %vm177_vm2, %v1026_v9  ;;  %1003 = vmatprep.mubr.msk.bf16.mxu1 %vm177_vm2, %v1028_v10 }
  0x11   :  { %980 = vmatmul.mubr.msk.bf16.gmra.mrb[4].mxu0 %vm177_vm2, %v1027_v11  ;;  %1004 = vmatmul.mubr.msk.bf16.gmra.mrb[4].mxu1 %vm177_vm2, %v1029_v12 }
  0x12   :  { %983 = vmatprep.mubr.msk.bf16.mxu0 %vm177_vm2, %v1030_v13  ;;  %1007 = vmatprep.mubr.msk.bf16.mxu1 %vm177_vm2, %v1032_v14 }
  0x19   :  { %984 = vmatmul.mubr.msk.bf16.gmra.mrb[8].mxu0 %vm177_vm2, %v1031_v15  ;;  %1008 = vmatmul.mubr.msk.bf16.gmra.mrb[8].mxu1 %vm177_vm2, %v1033_v16 }
  0x1a   :  { %987 = vmatprep.mubr.msk.bf16.mxu0 %vm177_vm2, %v1034_v17  ;;  %1011 = vmatprep.mubr.msk.bf16.mxu1 %vm177_vm2, %v1036_v18 }
  0x21   :  { %988 = vmatmul.mubr.msk.bf16.gmra.mrb[12].mxu0 %vm177_vm2, %v1035_v19  ;;  %1012 = vmatmul.mubr.msk.bf16.gmra.mrb[12].mxu1 %vm177_vm2, %v1037_v20 }
  0x22   :  { %991 = vmatprep.mubr.msk.bf16.mxu0 %vm177_vm2, %v1038_v21  ;;  %1015 = vmatprep.mubr.msk.bf16.mxu1 %vm177_vm2, %v1040_v22 }
  0x29   :  { %992 = vmatmul.mubr.msk.bf16.gmra.mrb[16].mxu0 %vm177_vm2, %v1039_v23  ;;  %1016 = vmatmul.mubr.msk.bf16.gmra.mrb[16].mxu1 %vm177_vm2, %v1041_v24 }
  0x2a   :  { %995 = vmatprep.mubr.msk.bf16.mxu0 %vm177_vm2, %v1042_v25 }
  0x31   :  { %996 = vmatmul.mubr.msk.bf16.gmra.mrb[20].mxu0 %vm177_vm2, %v1043_v26 }
  0xdc   :  { %v977_v28 = vpop.f32.mrb[0].mxu0  ;;  %v1001_v29 = vpop.f32.mrb[0].mxu1 }
  0xdd   :  { %v294_v30 = vadd.f32 %v977_v28, %v1159_v27  ;;  %v285_v31 = vpop.f32.mrb[1].mxu0  ;;  %v390_v32 = vadd.f32 %v1001_v29, %v1159_v27  ;;  %v381_v33 = vpop.f32.mrb[1].mxu1 }
  0xde   :  { %v286_v34 = vadd.f32 %v1159_v27, %v285_v31  ;;  %v978_v35 = vpop.f32.mrb[2].mxu0  ;;  %v382_v36 = vadd.f32 %v1159_v27, %v381_v33  ;;  %v1002_v37 = vpop.f32.mrb[2].mxu1 }
  0xdf   :  { %vm462_vm4 = vcmp.ge.f32.partialorder %v294_v30, 0.0  ;;  %v506_v38 = vmul.f32 0.1, %v294_v30  ;;  %v297_v39 = vadd.f32 %v978_v35, %v1159_v27  ;;  %v288_v40 = vpop.f32.mrb[3].mxu0  ;;  %vm486_vm5 = vcmp.ge.f32.partialorder %v390_v32, 0.0  ;;  %v384_v41 = vpop.f32.mrb[3].mxu1 }
  0xe0   :  { %vm460_vm6 = vcmp.ge.f32.partialorder %v286_v34, 0.0  ;;  %v504_v42 = vmul.f32 0.1, %v286_v34  ;;  %v289_v43 = vadd.f32 %v1159_v27, %v288_v40  ;;  %v530_v44 = vmul.f32 0.1, %v390_v32 }
  0xe1   :  { %v550_v45 = vsel %vm462_vm4, %v294_v30, %v506_v38  ;;  %vm463_vm7 = vcmp.ge.f32.partialorder %v297_v39, 0.0  ;;  %v507_v46 = vmul.f32 0.1, %v297_v39  ;;  %vm484_vm8 = vcmp.ge.f32.partialorder %v382_v36, 0.0 }
  0xe2   :  { %v908_v47 = vpack.c.bf16 %v550_v45, %v550_v45  ;;  %v548_v48 = vsel %vm460_vm6, %v286_v34, %v504_v42  ;;  %vm461_vm9 = vcmp.ge.f32.partialorder %v289_v43, 0.0  ;;  %v505_v49 = vmul.f32 0.1, %v289_v43 }
  0xe3   :  { %v906_v50 = vpack.c.bf16 %v548_v48, %v548_v48  ;;  %v551_v51 = vsel %vm463_vm7, %v297_v39, %v507_v46  ;;  %v574_v52 = vsel %vm486_vm5, %v390_v32, %v530_v44  ;;  %v528_v53 = vmul.f32 0.1, %v382_v36 }
  0xe4   :  { %771 = vst.msk [vmem:[%s1390_s3 + $0x8] sm:$0xf] %vm768_vm3, %v908_v47  ;;  %v909_v54 = vpack.c.bf16 %v551_v51, %v551_v51  ;;  %v549_v55 = vsel %vm461_vm9, %v289_v43, %v505_v49  ;;  %v932_v56 = vpack.c.bf16 %v574_v52, %v574_v52  ;;  %v393_v57 = vadd.f32 %v1002_v37, %v1159_v27  ;;  %v981_v58 = vpop.f32.mrb[4].mxu0  ;;  %v1005_v59 = vpop.f32.mrb[4].mxu1 }
  0xe5   :  { %769 = vst.msk [vmem:[%s1390_s3] sm:$0xf] %vm768_vm3, %v906_v50  ;;  %v907_v60 = vpack.c.bf16 %v549_v55, %v549_v55  ;;  %v572_v61 = vsel %vm484_vm8, %v382_v36, %v528_v53  ;;  %v385_v62 = vadd.f32 %v1159_v27, %v384_v41  ;;  %v310_v63 = vadd.f32 %v981_v58, %v1159_v27  ;;  %v301_v0 = vpop.f32.mrb[5].mxu0  ;;  %v397_v1 = vpop.f32.mrb[5].mxu1 }
  0xe6   :  { %772 = vst.msk [vmem:[%s1390_s3 + $0xc] sm:$0xf] %vm768_vm3, %v909_v54  ;;  %795 = vst.msk [vmem:[%s1390_s3 + $0x68] sm:$0xf] %vm768_vm3, %v932_v56  ;;  %v930_v2 = vpack.c.bf16 %v572_v61, %v572_v61  ;;  %vm487_vm10 = vcmp.ge.f32.partialorder %v393_v57, 0.0  ;;  %v302_v4 = vadd.f32 %v1159_v27, %v301_v0  ;;  %v982_v5 = vpop.f32.mrb[6].mxu0  ;;  %v406_v24 = vadd.f32 %v1005_v59, %v1159_v27 }
  0xe7   :  { %v531_v3 = vmul.f32 0.1, %v393_v57  ;;  %v1006_v6 = vpop.f32.mrb[6].mxu1  ;;  %770 = vst.msk [vmem:[%s1390_s3 + $0x4] sm:$0xf] %vm768_vm3, %v907_v60  ;;  %vm485_vm11 = vcmp.ge.f32.partialorder %v385_v62, 0.0  ;;  %v313_v11 = vadd.f32 %v982_v5, %v1159_v27  ;;  %v398_v25 = vadd.f32 %v1159_v27, %v397_v1 }
  0xe8   :  { %v529_v7 = vmul.f32 0.1, %v385_v62  ;;  %vm466_vm12 = vcmp.ge.f32.partialorder %v310_v63, 0.0  ;;  %v510_v8 = vmul.f32 0.1, %v310_v63  ;;  %vm464_vm13 = vcmp.ge.f32.partialorder %v302_v4, 0.0 }
  0xe9   :  { %793 = vst.msk [vmem:[%s1390_s3 + $0x60] sm:$0xf] %vm768_vm3, %v930_v2  ;;  %v575_v9 = vsel %vm487_vm10, %v393_v57, %v531_v3  ;;  %v508_v10 = vmul.f32 0.1, %v302_v4  ;;  %v304_v12 = vpop.f32.mrb[7].mxu0  ;;  %v400_v13 = vpop.f32.mrb[7].mxu1  ;;  %v409_v26 = vadd.f32 %v1006_v6, %v1159_v27 }
  0xea   :  { %v933_v14 = vpack.c.bf16 %v575_v9, %v575_v9  ;;  %v573_v15 = vsel %vm485_vm11, %v385_v62, %v529_v7  ;;  %v554_v16 = vsel %vm466_vm12, %v310_v63, %v510_v8  ;;  %v305_v17 = vadd.f32 %v1159_v27, %v304_v12 }
  0xeb   :  { %v931_v18 = vpack.c.bf16 %v573_v15, %v573_v15  ;;  %v912_v19 = vpack.c.bf16 %v554_v16, %v554_v16  ;;  %v552_v20 = vsel %vm464_vm13, %v302_v4, %v508_v10  ;;  %vm467_vm14 = vcmp.ge.f32.partialorder %v313_v11, 0.0 }
  0xec   :  { %796 = vst.msk [vmem:[%s1390_s3 + $0x6c] sm:$0xf] %vm768_vm3, %v933_v14  ;;  %v910_v21 = vpack.c.bf16 %v552_v20, %v552_v20  ;;  %v511_v22 = vmul.f32 0.1, %v313_v11  ;;  %vm465_vm15 = vcmp.ge.f32.partialorder %v305_v17, 0.0  ;;  %v401_v28 = vadd.f32 %v1159_v27, %v400_v13  ;;  %v985_v29 = vpop.f32.mrb[8].mxu0 }
  0xed   :  { %v509_v23 = vmul.f32 0.1, %v305_v17  ;;  %794 = vst.msk [vmem:[%s1390_s3 + $0x64] sm:$0xf] %vm768_vm3, %v931_v18  ;;  %775 = vst.msk [vmem:[%s1390_s3 + $0x18] sm:$0xf] %vm768_vm3, %v912_v19  ;;  %v326_v33 = vadd.f32 %v985_v29, %v1159_v27 }
  0xee   :  { %v1009_v30 = vpop.f32.mrb[8].mxu1  ;;  %773 = vst.msk [vmem:[%s1390_s3 + $0x10] sm:$0xf] %vm768_vm3, %v910_v21  ;;  %v555_v31 = vsel %vm467_vm14, %v313_v11, %v511_v22  ;;  %v317_v34 = vpop.f32.mrb[9].mxu0  ;;  %vm490_vm0 = vcmp.ge.f32.partialorder %v406_v24, 0.0  ;;  %vm488_vm1 = vcmp.ge.f32.partialorder %v398_v25, 0.0 }
  0xef   :  { %v553_v32 = vsel %vm465_vm15, %v305_v17, %v509_v23  ;;  %v422_v35 = vadd.f32 %v1009_v30, %v1159_v27  ;;  %v413_v36 = vpop.f32.mrb[9].mxu1  ;;  %v913_v37 = vpack.c.bf16 %v555_v31, %v555_v31  ;;  %v534_v39 = vmul.f32 0.1, %v406_v24  ;;  %v986_v40 = vpop.f32.mrb[10].mxu0 }
  0xf0   :  { %v911_v38 = vpack.c.bf16 %v553_v32, %v553_v32  ;;  %v1010_v41 = vpop.f32.mrb[10].mxu1  ;;  %v532_v42 = vmul.f32 0.1, %v398_v25  ;;  %vm491_vm2 = vcmp.ge.f32.partialorder %v409_v26, 0.0  ;;  %v535_v43 = vmul.f32 0.1, %v409_v26 }
  0xf1   :  { %776 = vst.msk [vmem:[%s1390_s3 + $0x1c] sm:$0xf] %vm768_vm3, %v913_v37  ;;  %v578_v44 = vsel %vm490_vm0, %v406_v24, %v534_v39  ;;  %vm489_vm4 = vcmp.ge.f32.partialorder %v401_v28, 0.0  ;;  %v533_v45 = vmul.f32 0.1, %v401_v28  ;;  %vm470_vm5 = vcmp.ge.f32.partialorder %v326_v33, 0.0 }
  0xf2   :  { %774 = vst.msk [vmem:[%s1390_s3 + $0x14] sm:$0xf] %vm768_vm3, %v911_v38  ;;  %v320_v46 = vpop.f32.mrb[11].mxu0  ;;  %v416_v47 = vpop.f32.mrb[11].mxu1  ;;  %v936_v48 = vpack.c.bf16 %v578_v44, %v578_v44  ;;  %v576_v49 = vsel %vm488_vm1, %v398_v25, %v532_v42  ;;  %v579_v50 = vsel %vm491_vm2, %v409_v26, %v535_v43  ;;  %v514_v51 = vmul.f32 0.1, %v326_v33 }
  0xf3   :  { %v934_v52 = vpack.c.bf16 %v576_v49, %v576_v49  ;;  %v937_v53 = vpack.c.bf16 %v579_v50, %v579_v50  ;;  %v577_v54 = vsel %vm489_vm4, %v401_v28, %v533_v45  ;;  %v318_v55 = vadd.f32 %v1159_v27, %v317_v34 }
  0xf4   :  { %799 = vst.msk [vmem:[%s1390_s3 + $0x78] sm:$0xf] %vm768_vm3, %v936_v48  ;;  %v935_v56 = vpack.c.bf16 %v577_v54, %v577_v54  ;;  %v558_v57 = vsel %vm470_vm5, %v326_v33, %v514_v51  ;;  %v329_v58 = vadd.f32 %v986_v40, %v1159_v27  ;;  %v321_v59 = vadd.f32 %v1159_v27, %v320_v46  ;;  %v989_v62 = vpop.f32.mrb[12].mxu0  ;;  %v1013_v63 = vpop.f32.mrb[12].mxu1 }
  0xf5   :  { %797 = vst.msk [vmem:[%s1390_s3 + $0x70] sm:$0xf] %vm768_vm3, %v934_v52  ;;  %800 = vst.msk [vmem:[%s1390_s3 + $0x7c] sm:$0xf] %vm768_vm3, %v937_v53  ;;  %v916_v60 = vpack.c.bf16 %v558_v57, %v558_v57  ;;  %vm468_vm6 = vcmp.ge.f32.partialorder %v318_v55, 0.0  ;;  %vm494_vm7 = vcmp.ge.f32.partialorder %v422_v35, 0.0  ;;  %v414_v4 = vadd.f32 %v1159_v27, %v413_v36 }
  0xf6   :  { %v512_v61 = vmul.f32 0.1, %v318_v55  ;;  %798 = vst.msk [vmem:[%s1390_s3 + $0x74] sm:$0xf] %vm768_vm3, %v935_v56  ;;  %vm471_vm8 = vcmp.ge.f32.partialorder %v329_v58, 0.0  ;;  %vm469_vm9 = vcmp.ge.f32.partialorder %v321_v59, 0.0  ;;  %v425_v5 = vadd.f32 %v1010_v41, %v1159_v27 }
  0xf7   :  { %v515_v0 = vmul.f32 0.1, %v329_v58  ;;  %v513_v1 = vmul.f32 0.1, %v321_v59  ;;  %779 = vst.msk [vmem:[%s1390_s3 + $0x28] sm:$0xf] %vm768_vm3, %v916_v60  ;;  %v417_v11 = vadd.f32 %v1159_v27, %v416_v47  ;;  %v342_v23 = vadd.f32 %v989_v62, %v1159_v27 }
  0xf8   :  { %v556_v2 = vsel %vm468_vm6, %v318_v55, %v512_v61  ;;  %v538_v3 = vmul.f32 0.1, %v422_v35  ;;  %v333_v6 = vpop.f32.mrb[13].mxu0  ;;  %v429_v7 = vpop.f32.mrb[13].mxu1  ;;  %vm492_vm10 = vcmp.ge.f32.partialorder %v414_v4, 0.0  ;;  %vm495_vm11 = vcmp.ge.f32.partialorder %v425_v5, 0.0 }
  0xf9   :  { %v914_v8 = vpack.c.bf16 %v556_v2, %v556_v2  ;;  %v559_v9 = vsel %vm471_vm8, %v329_v58, %v515_v0  ;;  %v557_v10 = vsel %vm469_vm9, %v321_v59, %v513_v1  ;;  %v990_v12 = vpop.f32.mrb[14].mxu0  ;;  %v1014_v13 = vpop.f32.mrb[14].mxu1  ;;  %v536_v20 = vmul.f32 0.1, %v414_v4 }
  0xfa   :  { %v917_v14 = vpack.c.bf16 %v559_v9, %v559_v9  ;;  %v915_v15 = vpack.c.bf16 %v557_v10, %v557_v10  ;;  %v582_v16 = vsel %vm494_vm7, %v422_v35, %v538_v3  ;;  %v336_v17 = vpop.f32.mrb[15].mxu0  ;;  %v432_v18 = vpop.f32.mrb[15].mxu1  ;;  %v539_v21 = vmul.f32 0.1, %v425_v5 }
  0xfb   :  { %777 = vst.msk [vmem:[%s1390_s3 + $0x20] sm:$0xf] %vm768_vm3, %v914_v8  ;;  %v940_v19 = vpack.c.bf16 %v582_v16, %v582_v16  ;;  %vm493_vm12 = vcmp.ge.f32.partialorder %v417_v11, 0.0  ;;  %v537_v22 = vmul.f32 0.1, %v417_v11  ;;  %v334_v24 = vadd.f32 %v1159_v27, %v333_v6 }
  0xfc   :  { %780 = vst.msk [vmem:[%s1390_s3 + $0x2c] sm:$0xf] %vm768_vm3, %v917_v14  ;;  %778 = vst.msk [vmem:[%s1390_s3 + $0x24] sm:$0xf] %vm768_vm3, %v915_v15  ;;  %v580_v25 = vsel %vm492_vm10, %v414_v4, %v536_v20  ;;  %v583_v26 = vsel %vm495_vm11, %v425_v5, %v539_v21  ;;  %v345_v28 = vadd.f32 %v990_v12, %v1159_v27  ;;  %vm474_vm13 = vcmp.ge.f32.partialorder %v342_v23, 0.0  ;;  %v993_v33 = vpop.f32.mrb[16].mxu0 }
  0xfd   :  { %803 = vst.msk [vmem:[%s1390_s3 + $0x88] sm:$0xf] %vm768_vm3, %v940_v19  ;;  %v337_v29 = vadd.f32 %v1159_v27, %v336_v17  ;;  %v938_v30 = vpack.c.bf16 %v580_v25, %v580_v25  ;;  %v941_v31 = vpack.c.bf16 %v583_v26, %v583_v26  ;;  %v581_v32 = vsel %vm493_vm12, %v417_v11, %v537_v22  ;;  %v1276_v34 = vpop.f32.mrb[16].mxu1  ;;  %v349_v38 = vpop.f32.mrb[17].mxu0 }
  0xfe   :  { %v939_v35 = vpack.c.bf16 %v581_v32, %v581_v32  ;;  %v518_v36 = vmul.f32 0.1, %v342_v23  ;;  %vm472_vm14 = vcmp.ge.f32.partialorder %v334_v24, 0.0  ;;  %v516_v37 = vmul.f32 0.1, %v334_v24  ;;  %v994_v45 = vpop.f32.mrb[18].mxu0 }
  0xff   :  { %801 = vst.msk [vmem:[%s1390_s3 + $0x80] sm:$0xf] %vm768_vm3, %v938_v30  ;;  %804 = vst.msk [vmem:[%s1390_s3 + $0x8c] sm:$0xf] %vm768_vm3, %v941_v31  ;;  %vm475_vm15 = vcmp.ge.f32.partialorder %v345_v28, 0.0  ;;  %vm473_vm0 = vcmp.ge.f32.partialorder %v337_v29, 0.0  ;;  %v438_v43 = vadd.f32 %v1013_v63, %v1159_v27  ;;  %v430_v44 = vadd.f32 %v1159_v27, %v429_v7 }
 0x100   :  { %v519_v39 = vmul.f32 0.1, %v345_v28  ;;  %v517_v40 = vmul.f32 0.1, %v337_v29  ;;  %802 = vst.msk [vmem:[%s1390_s3 + $0x84] sm:$0xf] %vm768_vm3, %v939_v35  ;;  %v562_v41 = vsel %vm474_vm13, %v342_v23, %v518_v36  ;;  %v560_v42 = vsel %vm472_vm14, %v334_v24, %v516_v37 }
 0x101   :  { %v445_v46 = vpop.f32.mrb[17].mxu1  ;;  %v920_v47 = vpack.c.bf16 %v562_v41, %v562_v41  ;;  %v918_v48 = vpack.c.bf16 %v560_v42, %v560_v42  ;;  %v352_v51 = vpop.f32.mrb[19].mxu0  ;;  %vm498_vm1 = vcmp.ge.f32.partialorder %v438_v43, 0.0  ;;  %v542_v55 = vmul.f32 0.1, %v438_v43 }
 0x102   :  { %v563_v49 = vsel %vm475_vm15, %v345_v28, %v519_v39  ;;  %v561_v50 = vsel %vm473_vm0, %v337_v29, %v517_v40  ;;  %v1018_v52 = vpop.f32.mrb[18].mxu1  ;;  %vm496_vm2 = vcmp.ge.f32.partialorder %v430_v44, 0.0  ;;  %v540_v57 = vmul.f32 0.1, %v430_v44 }
 0x103   :  { %v921_v53 = vpack.c.bf16 %v563_v49, %v563_v49  ;;  %v919_v54 = vpack.c.bf16 %v561_v50, %v561_v50  ;;  %v448_v56 = vpop.f32.mrb[19].mxu1  ;;  %783 = vst.msk [vmem:[%s1390_s3 + $0x38] sm:$0xf] %vm768_vm3, %v920_v47  ;;  %781 = vst.msk [vmem:[%s1390_s3 + $0x30] sm:$0xf] %vm768_vm3, %v918_v48  ;;  %v441_v58 = vadd.f32 %v1014_v13, %v1159_v27 }
 0x104   :  { %v433_v59 = vadd.f32 %v1159_v27, %v432_v18  ;;  %v586_v60 = vsel %vm498_vm1, %v438_v43, %v542_v55  ;;  %v358_v61 = vadd.f32 %v993_v33, %v1159_v27  ;;  %v350_v62 = vadd.f32 %v1159_v27, %v349_v38  ;;  %v997_v3 = vpop.f32.mrb[20].mxu0 }
 0x105   :  { %784 = vst.msk [vmem:[%s1390_s3 + $0x3c] sm:$0xf] %vm768_vm3, %v921_v53  ;;  %782 = vst.msk [vmem:[%s1390_s3 + $0x34] sm:$0xf] %vm768_vm3, %v919_v54  ;;  %v361_v63 = vadd.f32 %v994_v45, %v1159_v27  ;;  %v944_v0 = vpack.c.bf16 %v586_v60, %v586_v60  ;;  %v584_v1 = vsel %vm496_vm2, %v430_v44, %v540_v57  ;;  %vm499_vm4 = vcmp.ge.f32.partialorder %v441_v58, 0.0  ;;  %v365_v6 = vpop.f32.mrb[21].mxu0 }
 0x106   :  { %v543_v2 = vmul.f32 0.1, %v441_v58  ;;  %v942_v4 = vpack.c.bf16 %v584_v1, %v584_v1  ;;  %vm497_vm5 = vcmp.ge.f32.partialorder %v433_v59, 0.0  ;;  %v541_v5 = vmul.f32 0.1, %v433_v59  ;;  %v998_v10 = vpop.f32.mrb[22].mxu0 }
 0x107   :  { %vm478_vm6 = vcmp.ge.f32.partialorder %v358_v61, 0.0  ;;  %807 = vst.msk [vmem:[%s1390_s3 + $0x98] sm:$0xf] %vm768_vm3, %v944_v0  ;;  %v522_v8 = vmul.f32 0.1, %v358_v61  ;;  %vm476_vm7 = vcmp.ge.f32.partialorder %v350_v62, 0.0  ;;  %v353_v18 = vadd.f32 %v1159_v27, %v352_v51 }
 0x108   :  { %v587_v7 = vsel %vm499_vm4, %v441_v58, %v543_v2  ;;  %v520_v9 = vmul.f32 0.1, %v350_v62  ;;  %805 = vst.msk [vmem:[%s1390_s3 + $0x90] sm:$0xf] %vm768_vm3, %v942_v4  ;;  %v585_v12 = vsel %vm497_vm5, %v433_v59, %v541_v5  ;;  %vm479_vm8 = vcmp.ge.f32.partialorder %v361_v63, 0.0  ;;  %v368_v14 = vpop.f32.mrb[23].mxu0 }
 0x109   :  { %v945_v11 = vpack.c.bf16 %v587_v7, %v587_v7  ;;  %v523_v13 = vmul.f32 0.1, %v361_v63  ;;  %v943_v15 = vpack.c.bf16 %v585_v12, %v585_v12  ;;  %v566_v16 = vsel %vm478_vm6, %v358_v61, %v522_v8 }
 0x10a   :  { %v564_v17 = vsel %vm476_vm7, %v350_v62, %v520_v9  ;;  %v924_v19 = vpack.c.bf16 %v566_v16, %v566_v16  ;;  %v454_v22 = vadd.f32 %v1276_v34, %v1159_v27  ;;  %vm477_vm9 = vcmp.ge.f32.partialorder %v353_v18, 0.0 }
 0x10b   :  { %808 = vst.msk [vmem:[%s1390_s3 + $0x9c] sm:$0xf] %vm768_vm3, %v945_v11  ;;  %v922_v20 = vpack.c.bf16 %v564_v17, %v564_v17  ;;  %v567_v21 = vsel %vm479_vm8, %v361_v63, %v523_v13  ;;  %806 = vst.msk [vmem:[%s1390_s3 + $0x94] sm:$0xf] %vm768_vm3, %v943_v15  ;;  %v521_v24 = vmul.f32 0.1, %v353_v18  ;;  %v446_v25 = vadd.f32 %v1159_v27, %v445_v46 }
 0x10c   :  { %v925_v23 = vpack.c.bf16 %v567_v21, %v567_v21  ;;  %787 = vst.msk [vmem:[%s1390_s3 + $0x48] sm:$0xf] %vm768_vm3, %v924_v19  ;;  %vm502_vm10 = vcmp.ge.f32.partialorder %v454_v22, 0.0  ;;  %v546_v26 = vmul.f32 0.1, %v454_v22  ;;  %v457_v28 = vadd.f32 %v1018_v52, %v1159_v27 }
 0x10d   :  { %785 = vst.msk [vmem:[%s1390_s3 + $0x40] sm:$0xf] %vm768_vm3, %v922_v20  ;;  %v449_v29 = vadd.f32 %v1159_v27, %v448_v56  ;;  %v565_v30 = vsel %vm477_vm9, %v353_v18, %v521_v24  ;;  %vm500_vm11 = vcmp.ge.f32.partialorder %v446_v25, 0.0  ;;  %v544_v31 = vmul.f32 0.1, %v446_v25 }
 0x10e   :  { %788 = vst.msk [vmem:[%s1390_s3 + $0x4c] sm:$0xf] %vm768_vm3, %v925_v23  ;;  %v374_v32 = vadd.f32 %v997_v3, %v1159_v27  ;;  %v923_v33 = vpack.c.bf16 %v565_v30, %v565_v30  ;;  %v590_v34 = vsel %vm502_vm10, %v454_v22, %v546_v26  ;;  %vm503_vm12 = vcmp.ge.f32.partialorder %v457_v28, 0.0 }
 0x10f   :  { %v547_v35 = vmul.f32 0.1, %v457_v28  ;;  %v948_v36 = vpack.c.bf16 %v590_v34, %v590_v34  ;;  %v588_v37 = vsel %vm500_vm11, %v446_v25, %v544_v31  ;;  %vm501_vm13 = vcmp.ge.f32.partialorder %v449_v29, 0.0 }
 0x110   :  { %v545_v38 = vmul.f32 0.1, %v449_v29  ;;  %786 = vst.msk [vmem:[%s1390_s3 + $0x44] sm:$0xf] %vm768_vm3, %v923_v33  ;;  %v946_v39 = vpack.c.bf16 %v588_v37, %v588_v37  ;;  %vm482_vm14 = vcmp.ge.f32.partialorder %v374_v32, 0.0  ;;  %v366_v44 = vadd.f32 %v1159_v27, %v365_v6 }
 0x111   :  { %v591_v40 = vsel %vm503_vm12, %v457_v28, %v547_v35  ;;  %v526_v41 = vmul.f32 0.1, %v374_v32  ;;  %811 = vst.msk [vmem:[%s1390_s3 + $0xa8] sm:$0xf] %vm768_vm3, %v948_v36  ;;  %v377_v45 = vadd.f32 %v998_v10, %v1159_v27  ;;  %v369_v48 = vadd.f32 %v1159_v27, %v368_v14 }
 0x112   :  { %v949_v42 = vpack.c.bf16 %v591_v40, %v591_v40  ;;  %v589_v43 = vsel %vm501_vm13, %v449_v29, %v545_v38  ;;  %809 = vst.msk [vmem:[%s1390_s3 + $0xa0] sm:$0xf] %vm768_vm3, %v946_v39  ;;  %vm480_vm15 = vcmp.ge.f32.partialorder %v366_v44, 0.0  ;;  %v524_v50 = vmul.f32 0.1, %v366_v44 }
 0x113   :  { %v947_v46 = vpack.c.bf16 %v589_v43, %v589_v43  ;;  %v570_v47 = vsel %vm482_vm14, %v374_v32, %v526_v41  ;;  %vm483_vm0 = vcmp.ge.f32.partialorder %v377_v45, 0.0  ;;  %v527_v51 = vmul.f32 0.1, %v377_v45 }
 0x114   :  { %812 = vst.msk [vmem:[%s1390_s3 + $0xac] sm:$0xf] %vm768_vm3, %v949_v42  ;;  %v928_v49 = vpack.c.bf16 %v570_v47, %v570_v47  ;;  %vm481_vm1 = vcmp.ge.f32.partialorder %v369_v48, 0.0  ;;  %v525_v52 = vmul.f32 0.1, %v369_v48  ;;  %v568_v27 = vsel %vm480_vm15, %v366_v44, %v524_v50 }
 0x115   :  { %810 = vst.msk [vmem:[%s1390_s3 + $0xa4] sm:$0xf] %vm768_vm3, %v947_v46  ;;  %v926_v53 = vpack.c.bf16 %v568_v27, %v568_v27  ;;  %v571_v54 = vsel %vm483_vm0, %v377_v45, %v527_v51 }
 0x116   :  { %791 = vst.msk [vmem:[%s1390_s3 + $0x58] sm:$0xf] %vm768_vm3, %v928_v49  ;;  %v569_v55 = vsel %vm481_vm1, %v369_v48, %v525_v52  ;;  %v929_v56 = vpack.c.bf16 %v571_v54, %v571_v54 }
 0x117   :  { %v927_v57 = vpack.c.bf16 %v569_v55, %v569_v55  ;;  %789 = vst.msk [vmem:[%s1390_s3 + $0x50] sm:$0xf] %vm768_vm3, %v926_v53 }
 0x118   :  { %792 = vst.msk [vmem:[%s1390_s3 + $0x5c] sm:$0xf] %vm768_vm3, %v929_v56 }
 0x119   :  { %790 = vst.msk [vmem:[%s1390_s3 + $0x54] sm:$0xf] %vm768_vm3, %v927_v57 }

// kernel: multi_period_discriminator.55
= control target key start
LH: loop header
LB: loop body
LE: loop exit
PB: predicated region body
PF: predicated region fallthrough
CT: control target
= control target key end

     0   :  { %v523_v0 = vmov 0.0   ;;  %vm524_vm0 = vmmov 0   ;;  %vm133_vm1 = vcmask 1043456   ;;  %vm105_vm2 = vcmask 326656   ;;  %s694_s1 = inlined_call_operand.vmem [shape: bf16[40,16], index: 1, kind: input, shape index: {}]   ;;  %s695_s0 = inlined_call_operand.vmem [shape: bf16[144,40], index: 0, kind: input, shape index: {}]   ;;  %s696_s2 = inlined_call_operand.vmem [shape: f32[1,16], index: 2, kind: input, shape index: {}]   ;;  %s697_s3 = inlined_call_operand.vmem [shape: bf16[144,16], index: 3, kind: output, shape index: {}]  }
   0x1   :  { %461 = vmatprep.subr.bf16.mxu0 %v523_v0  ;;  %v511_v1 = vld [vmem:[%s694_s1] sm:$0xff]   ;;  %503 = vmatprep.subr.bf16.mxu1 %v523_v0  ;;  %v512_v2 = vld [vmem:[%s694_s1 + $0x8] sm:$0xff]   ;;  %v513_v3 = vld [vmem:[%s694_s1 + $0x10] ss:$0 sps:$4 sm:$0xff]   ;;  %vm368_vm5 = vcmask 125952  }
   0x2   :  { %467 = vmatprep.mubr.msk.bf16.mxu0 %vm524_vm0, %v523_v0  ;;  %487 = vmatprep.mubr.msk.bf16.mxu1 %vm524_vm0, %v523_v0  ;;  %v135_v4 = vsel %vm133_vm1, %v513_v3, 0  ;;  %v514_v5 = vld [vmem:[%s695_s0] sm:$0xff]   ;;  %v515_v6 = vld [vmem:[%s695_s0 + $0x28] sm:$0xff]   ;;  %v517_v8 = vld [vmem:[%s695_s0 + $0x30] sm:$0xff]  }
   0x3   :  { %462 = vmatpush3.bf16.msra.mxu0 %v511_v1  ;;  %506 = vmatpush3.bf16.msra.mxu1 %v511_v1  ;;  %v516_v7 = vld [vmem:[%s695_s0 + $0x8] sm:$0xff]   ;;  %v518_v9 = vld [vmem:[%s695_s0 + $0x10] sm:$0xff]   ;;  %v519_v10 = vld [vmem:[%s695_s0 + $0x38] sm:$0xff]  }
   0x4   :  { %463 = vmatprep.subr.bf16.mxu0 %v523_v0  ;;  %504 = vmatprep.subr.bf16.mxu1 %v523_v0  ;;  %v520_v11 = vld [vmem:[%s695_s0 + $0x18] sm:$0xff]   ;;  %v521_v12 = vld [vmem:[%s695_s0 + $0x40] sm:$0xff]  }
   0x5   :  { %v522_v13 = vld [vmem:[%s695_s0 + $0x20] sm:$0xff]  }
   0x6   :  { %v602_v14 = vld [vmem:[%s696_s2] ss:$0 sm:$0xff] }
   0x7   :  { %464 = vmatpush3.bf16.msra.mxu0 %v512_v2  ;;  %507 = vmatpush3.bf16.msra.mxu1 %v512_v2 }
   0x8   :  { %465 = vmatprep.subr.bf16.mxu0 %v523_v0  ;;  %505 = vmatprep.subr.bf16.mxu1 %v523_v0 }
   0xb   :  { %466 = vmatpush3.bf16.msra.mxu0 %v135_v4  ;;  %508 = vmatpush3.bf16.msra.mxu1 %v135_v4 }
   0xe   :  { %468 = vmatmul.mubr.msk.bf16.vlgmr.msra.gmra.mrb[0].mxu0 %vm105_vm2, %v514_v5  ;;  %488 = vmatmul.mubr.msk.bf16.vlgmr.msra.gmra.mrb[0].mxu1 %vm105_vm2, %v515_v6 }
   0xf   :  { %471 = vmatprep.mubr.msk.bf16.mxu0 %vm524_vm0, %v523_v0  ;;  %491 = vmatprep.mubr.msk.bf16.mxu1 %vm524_vm0, %v523_v0 }
  0x16   :  { %472 = vmatmul.mubr.msk.bf16.gmra.mrb[4].mxu0 %vm105_vm2, %v516_v7  ;;  %492 = vmatmul.mubr.msk.bf16.gmra.mrb[4].mxu1 %vm105_vm2, %v517_v8 }
  0x17   :  { %475 = vmatprep.mubr.msk.bf16.mxu0 %vm524_vm0, %v523_v0  ;;  %495 = vmatprep.mubr.msk.bf16.mxu1 %vm524_vm0, %v523_v0 }
  0x1e   :  { %476 = vmatmul.mubr.msk.bf16.gmra.mrb[8].mxu0 %vm105_vm2, %v518_v9  ;;  %496 = vmatmul.mubr.msk.bf16.gmra.mrb[8].mxu1 %vm105_vm2, %v519_v10 }
  0x1f   :  { %479 = vmatprep.mubr.msk.bf16.mxu0 %vm524_vm0, %v523_v0  ;;  %499 = vmatprep.mubr.msk.bf16.mxu1 %vm524_vm0, %v523_v0 }
  0x26   :  { %480 = vmatmul.mubr.msk.bf16.gmra.mrb[12].mxu0 %vm105_vm2, %v520_v11  ;;  %500 = vmatmul.mubr.msk.bf16.gmra.mrb[12].mxu1 %vm105_vm2, %v521_v12 }
  0x27   :  { %483 = vmatprep.mubr.msk.bf16.mxu0 %vm524_vm0, %v523_v0 }
  0x2e   :  { %484 = vmatmul.mubr.msk.bf16.gmra.mrb[16].mxu0 %vm105_vm2, %v522_v13 }
  0xe1   :  { %v171_v15 = vpop.f32.mrb[0].mxu0  ;;  %v211_v16 = vpop.f32.mrb[0].mxu1 }
  0xe2   :  { %v172_v17 = vadd.f32 %v602_v14, %v171_v15  ;;  %v469_v18 = vpop.f32.mrb[1].mxu0  ;;  %v212_v19 = vadd.f32 %v602_v14, %v211_v16  ;;  %v489_v20 = vpop.f32.mrb[1].mxu1 }
  0xe3   :  { %v174_v21 = vpop.f32.mrb[2].mxu0  ;;  %v214_v22 = vpop.f32.mrb[2].mxu1 }
  0xe4   :  { %vm242_vm3 = vcmp.ge.f32.partialorder %v172_v17, 0.0  ;;  %v260_v23 = vmul.f32 0.1, %v172_v17  ;;  %v175_v24 = vadd.f32 %v602_v14, %v174_v21  ;;  %v470_v25 = vpop.f32.mrb[3].mxu0  ;;  %vm252_vm4 = vcmp.ge.f32.partialorder %v212_v19, 0.0  ;;  %v490_v26 = vpop.f32.mrb[3].mxu1 }
  0xe5   :  { %v270_v27 = vmul.f32 0.1, %v212_v19  ;;  %v215_v28 = vadd.f32 %v602_v14, %v214_v22 }
  0xe6   :  { %v278_v29 = vsel %vm242_vm3, %v172_v17, %v260_v23  ;;  %vm243_vm6 = vcmp.ge.f32.partialorder %v175_v24, 0.0  ;;  %v261_v30 = vmul.f32 0.1, %v175_v24 }
  0xe7   :  { %v431_v31 = vpack.c.bf16 %v278_v29, %v278_v29  ;;  %v288_v32 = vsel %vm252_vm4, %v212_v19, %v270_v27  ;;  %vm253_vm7 = vcmp.ge.f32.partialorder %v215_v28, 0.0  ;;  %v271_v33 = vmul.f32 0.1, %v215_v28 }
  0xe8   :  { %v279_v34 = vsel %vm243_vm6, %v175_v24, %v261_v30  ;;  %v441_v35 = vpack.c.bf16 %v288_v32, %v288_v32 }
  0xe9   :  { %369 = vst.msk [vmem:[%s697_s3] sm:$0xf] %vm368_vm5, %v431_v31  ;;  %v432_v36 = vpack.c.bf16 %v279_v34, %v279_v34  ;;  %v289_v37 = vsel %vm253_vm7, %v215_v28, %v271_v33  ;;  %v179_v38 = vpop.f32.mrb[4].mxu0  ;;  %v219_v39 = vpop.f32.mrb[4].mxu1 }
  0xea   :  { %379 = vst.msk [vmem:[%s697_s3 + $0x28] sm:$0xf] %vm368_vm5, %v441_v35  ;;  %v442_v40 = vpack.c.bf16 %v289_v37, %v289_v37  ;;  %v180_v41 = vadd.f32 %v602_v14, %v179_v38  ;;  %v473_v42 = vpop.f32.mrb[5].mxu0  ;;  %v220_v43 = vadd.f32 %v602_v14, %v219_v39  ;;  %v493_v44 = vpop.f32.mrb[5].mxu1 }
  0xeb   :  { %370 = vst.msk [vmem:[%s697_s3 + $0x4] sm:$0xf] %vm368_vm5, %v432_v36  ;;  %v182_v45 = vpop.f32.mrb[6].mxu0  ;;  %v222_v46 = vpop.f32.mrb[6].mxu1 }
  0xec   :  { %380 = vst.msk [vmem:[%s697_s3 + $0x2c] sm:$0xf] %vm368_vm5, %v442_v40  ;;  %vm244_vm8 = vcmp.ge.f32.partialorder %v180_v41, 0.0  ;;  %v262_v47 = vmul.f32 0.1, %v180_v41  ;;  %v183_v48 = vadd.f32 %v602_v14, %v182_v45  ;;  %v474_v49 = vpop.f32.mrb[7].mxu0  ;;  %v223_v52 = vadd.f32 %v602_v14, %v222_v46 }
  0xed   :  { %vm254_vm9 = vcmp.ge.f32.partialorder %v220_v43, 0.0  ;;  %v494_v50 = vpop.f32.mrb[7].mxu1  ;;  %v272_v51 = vmul.f32 0.1, %v220_v43 }
  0xee   :  { %v280_v53 = vsel %vm244_vm8, %v180_v41, %v262_v47  ;;  %vm245_vm10 = vcmp.ge.f32.partialorder %v183_v48, 0.0  ;;  %v263_v54 = vmul.f32 0.1, %v183_v48  ;;  %vm255_vm11 = vcmp.ge.f32.partialorder %v223_v52, 0.0 }
  0xef   :  { %v433_v55 = vpack.c.bf16 %v280_v53, %v280_v53  ;;  %v290_v56 = vsel %vm254_vm9, %v220_v43, %v272_v51  ;;  %v273_v57 = vmul.f32 0.1, %v223_v52 }
  0xf0   :  { %v281_v58 = vsel %vm245_vm10, %v183_v48, %v263_v54  ;;  %v443_v59 = vpack.c.bf16 %v290_v56, %v290_v56 }
  0xf1   :  { %371 = vst.msk [vmem:[%s697_s3 + $0x8] sm:$0xf] %vm368_vm5, %v433_v55  ;;  %v434_v60 = vpack.c.bf16 %v281_v58, %v281_v58  ;;  %v291_v61 = vsel %vm255_vm11, %v223_v52, %v273_v57  ;;  %v187_v62 = vpop.f32.mrb[8].mxu0  ;;  %v227_v63 = vpop.f32.mrb[8].mxu1 }
  0xf2   :  { %381 = vst.msk [vmem:[%s697_s3 + $0x30] sm:$0xf] %vm368_vm5, %v443_v59  ;;  %v444_v0 = vpack.c.bf16 %v291_v61, %v291_v61  ;;  %v188_v1 = vadd.f32 %v602_v14, %v187_v62  ;;  %v477_v2 = vpop.f32.mrb[9].mxu0  ;;  %v228_v3 = vadd.f32 %v602_v14, %v227_v63  ;;  %v497_v4 = vpop.f32.mrb[9].mxu1 }
  0xf3   :  { %372 = vst.msk [vmem:[%s697_s3 + $0xc] sm:$0xf] %vm368_vm5, %v434_v60  ;;  %v190_v5 = vpop.f32.mrb[10].mxu0  ;;  %v230_v6 = vpop.f32.mrb[10].mxu1 }
  0xf4   :  { %382 = vst.msk [vmem:[%s697_s3 + $0x34] sm:$0xf] %vm368_vm5, %v444_v0  ;;  %vm246_vm12 = vcmp.ge.f32.partialorder %v188_v1, 0.0  ;;  %v264_v7 = vmul.f32 0.1, %v188_v1  ;;  %v191_v8 = vadd.f32 %v602_v14, %v190_v5  ;;  %v478_v9 = vpop.f32.mrb[11].mxu0  ;;  %v231_v12 = vadd.f32 %v602_v14, %v230_v6 }
  0xf5   :  { %vm256_vm13 = vcmp.ge.f32.partialorder %v228_v3, 0.0  ;;  %v498_v10 = vpop.f32.mrb[11].mxu1  ;;  %v274_v11 = vmul.f32 0.1, %v228_v3 }
  0xf6   :  { %v282_v13 = vsel %vm246_vm12, %v188_v1, %v264_v7  ;;  %vm247_vm14 = vcmp.ge.f32.partialorder %v191_v8, 0.0  ;;  %v265_v15 = vmul.f32 0.1, %v191_v8  ;;  %vm257_vm15 = vcmp.ge.f32.partialorder %v231_v12, 0.0 }
  0xf7   :  { %v435_v16 = vpack.c.bf16 %v282_v13, %v282_v13  ;;  %v292_v17 = vsel %vm256_vm13, %v228_v3, %v274_v11  ;;  %v275_v18 = vmul.f32 0.1, %v231_v12 }
  0xf8   :  { %v283_v19 = vsel %vm247_vm14, %v191_v8, %v265_v15  ;;  %v445_v20 = vpack.c.bf16 %v292_v17, %v292_v17 }
  0xf9   :  { %373 = vst.msk [vmem:[%s697_s3 + $0x10] sm:$0xf] %vm368_vm5, %v435_v16  ;;  %v436_v21 = vpack.c.bf16 %v283_v19, %v283_v19  ;;  %v293_v22 = vsel %vm257_vm15, %v231_v12, %v275_v18  ;;  %v195_v23 = vpop.f32.mrb[12].mxu0  ;;  %v235_v24 = vpop.f32.mrb[12].mxu1 }
  0xfa   :  { %383 = vst.msk [vmem:[%s697_s3 + $0x38] sm:$0xf] %vm368_vm5, %v445_v20  ;;  %v446_v25 = vpack.c.bf16 %v293_v22, %v293_v22  ;;  %v196_v26 = vadd.f32 %v602_v14, %v195_v23  ;;  %v481_v27 = vpop.f32.mrb[13].mxu0  ;;  %v236_v28 = vadd.f32 %v602_v14, %v235_v24  ;;  %v501_v29 = vpop.f32.mrb[13].mxu1 }
  0xfb   :  { %374 = vst.msk [vmem:[%s697_s3 + $0x14] sm:$0xf] %vm368_vm5, %v436_v21  ;;  %v198_v30 = vpop.f32.mrb[14].mxu0  ;;  %v238_v31 = vpop.f32.mrb[14].mxu1 }
  0xfc   :  { %384 = vst.msk [vmem:[%s697_s3 + $0x3c] sm:$0xf] %vm368_vm5, %v446_v25  ;;  %vm248_vm0 = vcmp.ge.f32.partialorder %v196_v26, 0.0  ;;  %v266_v32 = vmul.f32 0.1, %v196_v26  ;;  %v199_v33 = vadd.f32 %v602_v14, %v198_v30  ;;  %v482_v34 = vpop.f32.mrb[15].mxu0  ;;  %v239_v37 = vadd.f32 %v602_v14, %v238_v31 }
  0xfd   :  { %vm258_vm1 = vcmp.ge.f32.partialorder %v236_v28, 0.0  ;;  %v502_v35 = vpop.f32.mrb[15].mxu1  ;;  %v276_v36 = vmul.f32 0.1, %v236_v28 }
  0xfe   :  { %v284_v38 = vsel %vm248_vm0, %v196_v26, %v266_v32  ;;  %vm249_vm2 = vcmp.ge.f32.partialorder %v199_v33, 0.0  ;;  %v267_v39 = vmul.f32 0.1, %v199_v33  ;;  %vm259_vm3 = vcmp.ge.f32.partialorder %v239_v37, 0.0 }
  0xff   :  { %v437_v40 = vpack.c.bf16 %v284_v38, %v284_v38  ;;  %v294_v41 = vsel %vm258_vm1, %v236_v28, %v276_v36  ;;  %v277_v42 = vmul.f32 0.1, %v239_v37 }
 0x100   :  { %v285_v43 = vsel %vm249_vm2, %v199_v33, %v267_v39  ;;  %v447_v44 = vpack.c.bf16 %v294_v41, %v294_v41 }
 0x101   :  { %375 = vst.msk [vmem:[%s697_s3 + $0x18] sm:$0xf] %vm368_vm5, %v437_v40  ;;  %v438_v45 = vpack.c.bf16 %v285_v43, %v285_v43  ;;  %v295_v46 = vsel %vm259_vm3, %v239_v37, %v277_v42  ;;  %v203_v47 = vpop.f32.mrb[16].mxu0 }
 0x102   :  { %385 = vst.msk [vmem:[%s697_s3 + $0x40] sm:$0xf] %vm368_vm5, %v447_v44  ;;  %v448_v48 = vpack.c.bf16 %v295_v46, %v295_v46  ;;  %v204_v49 = vadd.f32 %v602_v14, %v203_v47  ;;  %v485_v50 = vpop.f32.mrb[17].mxu0 }
 0x103   :  { %376 = vst.msk [vmem:[%s697_s3 + $0x1c] sm:$0xf] %vm368_vm5, %v438_v45  ;;  %v206_v51 = vpop.f32.mrb[18].mxu0 }
 0x104   :  { %386 = vst.msk [vmem:[%s697_s3 + $0x44] sm:$0xf] %vm368_vm5, %v448_v48  ;;  %vm250_vm4 = vcmp.ge.f32.partialorder %v204_v49, 0.0  ;;  %v268_v52 = vmul.f32 0.1, %v204_v49  ;;  %v207_v53 = vadd.f32 %v602_v14, %v206_v51  ;;  %v486_v54 = vpop.f32.mrb[19].mxu0 }
 0x106   :  { %v286_v55 = vsel %vm250_vm4, %v204_v49, %v268_v52  ;;  %vm251_vm6 = vcmp.ge.f32.partialorder %v207_v53, 0.0  ;;  %v269_v56 = vmul.f32 0.1, %v207_v53 }
 0x107   :  { %v439_v57 = vpack.c.bf16 %v286_v55, %v286_v55 }
 0x108   :  { %v287_v58 = vsel %vm251_vm6, %v207_v53, %v269_v56 }
 0x109   :  { %377 = vst.msk [vmem:[%s697_s3 + $0x20] sm:$0xf] %vm368_vm5, %v439_v57  ;;  %v440_v59 = vpack.c.bf16 %v287_v58, %v287_v58 }
 0x10b   :  { %378 = vst.msk [vmem:[%s697_s3 + $0x24] sm:$0xf] %vm368_vm5, %v440_v59 }

// kernel: multi_period_discriminator.57
= control target key start
LH: loop header
LB: loop body
LE: loop exit
PB: predicated region body
PF: predicated region fallthrough
CT: control target
= control target key end

     0   :  { %v327_v0 = vmov 0   ;;  %vm135_vm0 = vcmask 261120   ;;  %vm244_vm3 = vcmask 519168   ;;  %s426_s1 = inlined_call_operand.vmem [shape: bf16[160,64], index: 1, kind: input, shape index: {}]   ;;  %s427_s0 = inlined_call_operand.vmem [shape: bf16[48,160], index: 0, kind: input, shape index: {}]   ;;  %s428_s2 = inlined_call_operand.vmem [shape: f32[1,64], index: 2, kind: input, shape index: {}]   ;;  %s429_s3 = inlined_call_operand.vmem [shape: bf16[48,64], index: 3, kind: output, shape index: {}]  }
   0x1   :  { %287 = vmatprep.subr.bf16.mxu1 %v327_v0  ;;  %v308_v1 = vld [vmem:[%s426_s1] sm:$0xff]   ;;  %145 = vmatprep.subr.bf16.mxu0 %v327_v0  ;;  %v309_v2 = vld [vmem:[%s426_s1 + $0x8] sm:$0xff]   ;;  %v310_v3 = vld [vmem:[%s426_s1 + $0x10] sm:$0xff]  }
   0x2   :  { %297 = vmatpush1.bf16.msra.mxu1 %v308_v1  ;;  %146 = vmatpush1.bf16.msra.mxu0 %v308_v1  ;;  %v311_v4 = vld [vmem:[%s426_s1 + $0x18] sm:$0xff]   ;;  %v323_v6 = vld [vmem:[%s427_s0 + $0x4] ss:$8 sps:$4 sm:$0xff]   ;;  %v314_v9 = vld [vmem:[%s426_s1 + $0x30] sm:$0xff]  }
   0x3   :  { %288 = vmatprep.subr.bf16.mxu1 %v327_v0  ;;  %147 = vmatprep.subr.bf16.mxu0 %v327_v0  ;;  %v320_v5 = vld [vmem:[%s427_s0 + $0x14] ss:$8 sps:$4 sm:$0xff]   ;;  %v312_v7 = vld [vmem:[%s426_s1 + $0x20] sm:$0xff]   ;;  %v313_v8 = vld [vmem:[%s426_s1 + $0x28] sm:$0xff]  }
   0x4   :  { %273 = vmatprep.mubr.msk.bf16.mxu1 %vm135_vm0, %v320_v5  ;;  %272 = vmatprep.mubr.msk.bf16.mxu0 %vm135_vm0, %v323_v6  ;;  %v315_v10 = vld [vmem:[%s426_s1 + $0x38] sm:$0xff]   ;;  %v316_v11 = vld [vmem:[%s426_s1 + $0x40] sm:$0xff]   ;;  %v317_v12 = vld [vmem:[%s426_s1 + $0x48] sm:$0xff]  }
   0x5   :  { %v318_v13 = vld [vmem:[%s427_s0 + $0x10] ss:$8 sps:$4 sm:$0xff]   ;;  %v321_v14 = vld [vmem:[%s427_s0] ss:$8 sps:$4 sm:$0xff]   ;;  %v324_v15 = vld [vmem:[%s427_s0 + $0x24] ss:$8 sps:$4 sm:$0xff]  }
   0x6   :  { %298 = vmatpush1.bf16.msra.mxu1 %v309_v2  ;;  %148 = vmatpush1.bf16.msra.mxu0 %v309_v2  ;;  %v326_v16 = vld [vmem:[%s427_s0 + $0x20] ss:$8 sps:$4 sm:$0xff]  }
   0x7   :  { %289 = vmatprep.subr.bf16.mxu1 %v327_v0  ;;  %149 = vmatprep.subr.bf16.mxu0 %v327_v0  ;;  %v255_v17 = vld [vmem:[%s428_s2] ss:$0 sm:$0xff] }
   0xa   :  { %299 = vmatpush1.bf16.msra.mxu1 %v310_v3  ;;  %150 = vmatpush1.bf16.msra.mxu0 %v310_v3 }
   0xb   :  { %290 = vmatprep.subr.bf16.mxu1 %v327_v0  ;;  %151 = vmatprep.subr.bf16.mxu0 %v327_v0 }
   0xe   :  { %300 = vmatpush1.bf16.msra.mxu1 %v311_v4  ;;  %152 = vmatpush1.bf16.msra.mxu0 %v311_v4 }
   0xf   :  { %291 = vmatprep.subr.bf16.mxu1 %v327_v0  ;;  %153 = vmatprep.subr.bf16.mxu0 %v327_v0 }
  0x12   :  { %301 = vmatpush1.bf16.msra.mxu1 %v312_v7  ;;  %154 = vmatpush1.bf16.msra.mxu0 %v312_v7 }
  0x13   :  { %292 = vmatprep.subr.bf16.mxu1 %v327_v0  ;;  %155 = vmatprep.subr.bf16.mxu0 %v327_v0 }
  0x16   :  { %302 = vmatpush1.bf16.msra.mxu1 %v313_v8  ;;  %156 = vmatpush1.bf16.msra.mxu0 %v313_v8 }
  0x17   :  { %293 = vmatprep.subr.bf16.mxu1 %v327_v0  ;;  %157 = vmatprep.subr.bf16.mxu0 %v327_v0 }
  0x1a   :  { %303 = vmatpush1.bf16.msra.mxu1 %v314_v9  ;;  %158 = vmatpush1.bf16.msra.mxu0 %v314_v9 }
  0x1b   :  { %294 = vmatprep.subr.bf16.mxu1 %v327_v0  ;;  %159 = vmatprep.subr.bf16.mxu0 %v327_v0 }
  0x1e   :  { %304 = vmatpush1.bf16.msra.mxu1 %v315_v10  ;;  %160 = vmatpush1.bf16.msra.mxu0 %v315_v10 }
  0x1f   :  { %295 = vmatprep.subr.bf16.mxu1 %v327_v0  ;;  %161 = vmatprep.subr.bf16.mxu0 %v327_v0 }
  0x22   :  { %305 = vmatpush1.bf16.msra.mxu1 %v316_v11  ;;  %162 = vmatpush1.bf16.msra.mxu0 %v316_v11 }
  0x23   :  { %296 = vmatprep.subr.bf16.mxu1 %v327_v0  ;;  %163 = vmatprep.subr.bf16.mxu0 %v327_v0 }
  0x26   :  { %306 = vmatpush1.bf16.msra.mxu1 %v317_v12  ;;  %164 = vmatpush1.bf16.msra.mxu0 %v317_v12 }
  0x29   :  { %186 = vmatmul.mubr.bf16.vlgmr.msra.gmra.mrb[0].mxu1 %v318_v13  ;;  %178 = vmatmul.mubr.bf16.vlgmr.msra.gmra.mrb[0].mxu0 %v321_v14 }
  0x2a   :  { %274 = vmatprep.mubr.msk.bf16.mxu1 %vm135_vm0, %v324_v15 }
  0x31   :  { %194 = vmatmul.mubr.bf16.gmra.mrb[4].mxu1 %v326_v16 }
  0xfc   :  { %v187_v18 = vpop.f32.mrb[0].mxu1  ;;  %v179_v19 = vpop.f32.mrb[0].mxu0 }
  0xfd   :  { %v188_v20 = vadd.f32 %v255_v17, %v187_v18  ;;  %v189_v21 = vpop.f32.mrb[1].mxu1  ;;  %v180_v22 = vadd.f32 %v255_v17, %v179_v19  ;;  %v181_v23 = vpop.f32.mrb[1].mxu0 }
  0xfe   :  { %v190_v24 = vpop.f32.mrb[2].mxu1  ;;  %v182_v25 = vpop.f32.mrb[2].mxu0 }
  0xff   :  { %vm204_vm1 = vcmp.ge.f32.partialorder %v188_v20, 0.0  ;;  %v210_v26 = vmul.f32 0.1, %v188_v20  ;;  %v191_v27 = vadd.f32 %v255_v17, %v190_v24  ;;  %v192_v28 = vpop.f32.mrb[3].mxu1  ;;  %vm202_vm2 = vcmp.ge.f32.partialorder %v180_v22, 0.0  ;;  %v184_v29 = vpop.f32.mrb[3].mxu0 }
 0x100   :  { %v208_v30 = vmul.f32 0.1, %v180_v22  ;;  %v183_v31 = vadd.f32 %v255_v17, %v182_v25 }
 0x101   :  { %v216_v32 = vsel %vm204_vm1, %v188_v20, %v210_v26  ;;  %vm205_vm4 = vcmp.ge.f32.partialorder %v191_v27, 0.0  ;;  %v211_v33 = vmul.f32 0.1, %v191_v27 }
 0x102   :  { %v283_v34 = vpack.c.bf16 %v216_v32, %v216_v32  ;;  %v214_v35 = vsel %vm202_vm2, %v180_v22, %v208_v30  ;;  %vm203_vm5 = vcmp.ge.f32.partialorder %v183_v31, 0.0  ;;  %v209_v36 = vmul.f32 0.1, %v183_v31 }
 0x103   :  { %v217_v37 = vsel %vm205_vm4, %v191_v27, %v211_v33  ;;  %v281_v38 = vpack.c.bf16 %v214_v35, %v214_v35 }
 0x104   :  { %247 = vst.msk [vmem:[%s429_s3 + $0x8] sm:$0xf] %vm244_vm3, %v283_v34  ;;  %v284_v39 = vpack.c.bf16 %v217_v37, %v217_v37  ;;  %v215_v40 = vsel %vm203_vm5, %v183_v31, %v209_v36  ;;  %v195_v41 = vpop.f32.mrb[4].mxu1 }
 0x105   :  { %245 = vst.msk [vmem:[%s429_s3] sm:$0xf] %vm244_vm3, %v281_v38  ;;  %v282_v42 = vpack.c.bf16 %v215_v40, %v215_v40  ;;  %v196_v43 = vadd.f32 %v255_v17, %v195_v41  ;;  %v197_v44 = vpop.f32.mrb[5].mxu1 }
 0x106   :  { %248 = vst.msk [vmem:[%s429_s3 + $0xc] sm:$0xf] %vm244_vm3, %v284_v39  ;;  %v198_v45 = vpop.f32.mrb[6].mxu1 }
 0x107   :  { %246 = vst.msk [vmem:[%s429_s3 + $0x4] sm:$0xf] %vm244_vm3, %v282_v42  ;;  %vm206_vm6 = vcmp.ge.f32.partialorder %v196_v43, 0.0  ;;  %v212_v46 = vmul.f32 0.1, %v196_v43  ;;  %v199_v47 = vadd.f32 %v255_v17, %v198_v45  ;;  %v200_v48 = vpop.f32.mrb[7].mxu1 }
 0x109   :  { %v218_v49 = vsel %vm206_vm6, %v196_v43, %v212_v46  ;;  %vm207_vm7 = vcmp.ge.f32.partialorder %v199_v47, 0.0  ;;  %v213_v50 = vmul.f32 0.1, %v199_v47 }
 0x10a   :  { %v285_v51 = vpack.c.bf16 %v218_v49, %v218_v49 }
 0x10b   :  { %v219_v52 = vsel %vm207_vm7, %v199_v47, %v213_v50 }
 0x10c   :  { %249 = vst.msk [vmem:[%s429_s3 + $0x10] sm:$0xf] %vm244_vm3, %v285_v51  ;;  %v286_v53 = vpack.c.bf16 %v219_v52, %v219_v52 }
 0x10e   :  { %250 = vst.msk [vmem:[%s429_s3 + $0x14] sm:$0xf] %vm244_vm3, %v286_v53 }

// kernel: multi_period_discriminator.58
= control target key start
LH: loop header
LB: loop body
LE: loop exit
PB: predicated region body
PF: predicated region fallthrough
CT: control target
= control target key end

     0   :  { %v556_v1 = vmov 0.0   ;;  %vm557_vm0 = vmmov 0   ;;  %vm239_vm1 = vcmask 523264   ;;  %vm405_vm3 = vcmask 519168   ;;  %s698_s1 = inlined_call_operand.vmem [shape: bf16[320,64], index: 1, kind: input, shape index: {}]   ;;  %s699_s0 = inlined_call_operand.vmem [shape: bf16[48,320], index: 0, kind: input, shape index: {}]   ;;  %s700_s2 = inlined_call_operand.vmem [shape: f32[1,64], index: 2, kind: input, shape index: {}]   ;;  %s701_s3 = inlined_call_operand.vmem [shape: bf16[48,64], index: 3, kind: output, shape index: {}]  }
   0x1   :  { %v524_v0 = vld [vmem:[%s698_s1 + $0x40] sm:$0xff]   ;;  %502 = vmatprep.subr.bf16.mxu1 %v556_v1  ;;  %510 = vmatprep.mubr.msk.bf16.mxu1 %vm557_vm0, %v556_v1  ;;  %v526_v3 = vld [vmem:[%s698_s1 + $0x48] sm:$0xff]   ;;  %v528_v5 = vld [vmem:[%s698_s1 + $0x50] sm:$0xff]  }
   0x2   :  { %v525_v2 = vld [vmem:[%s698_s1] sm:$0xff]   ;;  %461 = vmatprep.subr.bf16.mxu0 %v524_v0  ;;  %v527_v4 = vld [vmem:[%s698_s1 + $0x8] sm:$0xff]   ;;  %v529_v6 = vld [vmem:[%s698_s1 + $0x10] sm:$0xff]  }
   0x3   :  { %462 = vmatpush3.bf16.msra.mxu0 %v525_v2  ;;  %v530_v7 = vld [vmem:[%s698_s1 + $0x58] sm:$0xff]   ;;  %v534_v8 = vld [vmem:[%s698_s1 + $0x80] sm:$0xff]   ;;  %v537_v11 = vld [vmem:[%s698_s1 + $0x88] sm:$0xff]  }
   0x4   :  { %463 = vmatprep.subr.bf16.mxu0 %v526_v3  ;;  %v531_v9 = vld [vmem:[%s698_s1 + $0x18] sm:$0xff]   ;;  %v532_v10 = vld [vmem:[%s698_s1 + $0x60] sm:$0xff]   ;;  %503 = vmatpush3.bf16.msra.mxu1 %v534_v8  ;;  %v535_v13 = vld [vmem:[%s698_s1 + $0x68] sm:$0xff]  }
   0x5   :  { %504 = vmatprep.subr.bf16.mxu1 %v556_v1  ;;  %v533_v12 = vld [vmem:[%s698_s1 + $0x20] sm:$0xff]   ;;  %v540_v14 = vld [vmem:[%s698_s1 + $0x90] sm:$0xff]   ;;  %v536_v15 = vld [vmem:[%s698_s1 + $0x28] sm:$0xff]  }
   0x6   :  { %v538_v16 = vld [vmem:[%s698_s1 + $0x70] sm:$0xff]   ;;  %v546_v18 = vld [vmem:[%s698_s1 + $0x98] sm:$0xff]   ;;  %v543_v23 = vld [vmem:[%s699_s0] ss:$12 sps:$4 sm:$0xff]  }
   0x7   :  { %464 = vmatpush3.bf16.msra.mxu0 %v527_v4  ;;  %v545_v17 = vld [vmem:[%s699_s0 + $0x4] ss:$12 sps:$4 sm:$0xff]   ;;  %v547_v20 = vld [vmem:[%s699_s0 + $0x8] ss:$12 sps:$4 sm:$0xff]   ;;  %v541_v21 = vld [vmem:[%s698_s1 + $0x78] sm:$0xff]  }
   0x8   :  { %465 = vmatprep.subr.bf16.mxu0 %v528_v5  ;;  %505 = vmatpush3.bf16.msra.mxu1 %v537_v11  ;;  %v539_v19 = vld [vmem:[%s698_s1 + $0x30] sm:$0xff]   ;;  %v542_v22 = vld [vmem:[%s698_s1 + $0x38] sm:$0xff]   ;;  %v551_v25 = vld [vmem:[%s699_s0 + $0x20] ss:$12 sps:$4 sm:$0xff]  }
   0x9   :  { %506 = vmatprep.subr.bf16.mxu1 %v556_v1  ;;  %281 = vmatprep.mubr.bf16.mxu0 %v545_v17  ;;  %v548_v24 = vld [vmem:[%s699_s0 + $0x1c] ss:$12 sps:$4 sm:$0xff]   ;;  %v550_v26 = vld [vmem:[%s699_s0 + $0x18] ss:$12 sps:$4 sm:$0xff]   ;;  %v552_v27 = vld [vmem:[%s699_s0 + $0x34] ss:$12 sps:$4 sm:$0xff]  }
   0xa   :  { %v555_v28 = vld [vmem:[%s699_s0 + $0x38] ss:$12 sps:$4 sm:$0xff]   ;;  %v554_v29 = vld [vmem:[%s699_s0 + $0x30] ss:$12 sps:$4 sm:$0xff]   ;;  %v416_v36 = vld [vmem:[%s700_s2] ss:$0 sm:$0xff] }
   0xb   :  { %466 = vmatpush3.bf16.msra.mxu0 %v529_v6 }
   0xc   :  { %467 = vmatprep.subr.bf16.mxu0 %v530_v7  ;;  %507 = vmatpush3.bf16.msra.mxu1 %v540_v14 }
   0xd   :  { %508 = vmatprep.subr.bf16.mxu1 %v556_v1 }
   0xf   :  { %468 = vmatpush3.bf16.msra.mxu0 %v531_v9 }
  0x10   :  { %469 = vmatprep.subr.bf16.mxu0 %v532_v10  ;;  %509 = vmatpush3.bf16.msra.mxu1 %v546_v18 }
  0x13   :  { %470 = vmatpush3.bf16.msra.mxu0 %v533_v12  ;;  %511 = vmatmul.mubr.msk.bf16.vlgmr.msra.gmra.mrb[0].mxu1 %vm239_vm1, %v547_v20 }
  0x14   :  { %471 = vmatprep.subr.bf16.mxu0 %v535_v13  ;;  %514 = vmatprep.mubr.msk.bf16.mxu1 %vm557_vm0, %v556_v1 }
  0x17   :  { %472 = vmatpush3.bf16.msra.mxu0 %v536_v15 }
  0x18   :  { %473 = vmatprep.subr.bf16.mxu0 %v538_v16 }
  0x1b   :  { %474 = vmatpush3.bf16.msra.mxu0 %v539_v19  ;;  %515 = vmatmul.mubr.msk.bf16.gmra.mrb[4].mxu1 %vm239_vm1, %v551_v25 }
  0x1c   :  { %475 = vmatprep.subr.bf16.mxu0 %v541_v21  ;;  %518 = vmatprep.mubr.msk.bf16.mxu1 %vm557_vm0, %v556_v1 }
  0x1f   :  { %476 = vmatpush3.bf16.msra.mxu0 %v542_v22 }
  0x22   :  { %282 = vmatmul.mubr.bf16.vlgmr.msra.gmra.mrb[0].mxu0 %v543_v23 }
  0x23   :  { %289 = vmatprep.mubr.bf16.mxu0 %v548_v24  ;;  %519 = vmatmul.mubr.msk.bf16.gmra.mrb[8].mxu1 %vm239_vm1, %v555_v28 }
  0x2a   :  { %290 = vmatmul.mubr.bf16.gmra.mrb[4].mxu0 %v550_v26 }
  0x2b   :  { %297 = vmatprep.mubr.bf16.mxu0 %v552_v27 }
  0x32   :  { %298 = vmatmul.mubr.bf16.gmra.mrb[8].mxu0 %v554_v29 }
  0xe6   :  { %v340_v30 = vpop.f32.mrb[0].mxu1 }
  0xe7   :  { %v512_v31 = vpop.f32.mrb[1].mxu1 }
  0xe8   :  { %v343_v32 = vpop.f32.mrb[2].mxu1 }
  0xe9   :  { %v513_v33 = vpop.f32.mrb[3].mxu1 }
  0xee   :  { %v348_v37 = vpop.f32.mrb[4].mxu1 }
  0xef   :  { %v516_v40 = vpop.f32.mrb[5].mxu1 }
  0xf0   :  { %v351_v42 = vpop.f32.mrb[6].mxu1 }
  0xf1   :  { %v517_v45 = vpop.f32.mrb[7].mxu1 }
  0xf5   :  { %v477_v34 = vpop.f32.mrb[0].mxu0 }
  0xf6   :  { %v478_v35 = vpop.f32.mrb[1].mxu0  ;;  %v356_v52 = vpop.f32.mrb[8].mxu1 }
  0xf7   :  { %v479_v38 = vadd.f32 %v478_v35, %v477_v34  ;;  %v480_v39 = vpop.f32.mrb[2].mxu0  ;;  %v520_v57 = vpop.f32.mrb[9].mxu1 }
  0xf8   :  { %v481_v41 = vpop.f32.mrb[3].mxu0  ;;  %v359_v60 = vpop.f32.mrb[10].mxu1 }
  0xf9   :  { %v284_v43 = vadd.f32 %v479_v38, %v416_v36  ;;  %v482_v44 = vadd.f32 %v481_v41, %v480_v39  ;;  %v521_v0 = vpop.f32.mrb[11].mxu1 }
  0xfb   :  { %v341_v46 = vadd.f32 %v340_v30, %v284_v43  ;;  %v287_v47 = vadd.f32 %v482_v44, %v416_v36 }
  0xfd   :  { %vm363_vm2 = vcmp.ge.f32.partialorder %v341_v46, 0.0  ;;  %v369_v48 = vmul.f32 0.1, %v341_v46  ;;  %v344_v49 = vadd.f32 %v343_v32, %v287_v47  ;;  %v483_v50 = vpop.f32.mrb[4].mxu0 }
  0xfe   :  { %v484_v51 = vpop.f32.mrb[5].mxu0 }
  0xff   :  { %v375_v53 = vsel %vm363_vm2, %v341_v46, %v369_v48  ;;  %vm364_vm4 = vcmp.ge.f32.partialorder %v344_v49, 0.0  ;;  %v370_v54 = vmul.f32 0.1, %v344_v49  ;;  %v485_v55 = vadd.f32 %v484_v51, %v483_v50  ;;  %v486_v56 = vpop.f32.mrb[6].mxu0 }
 0x100   :  { %v455_v58 = vpack.c.bf16 %v375_v53, %v375_v53  ;;  %v487_v59 = vpop.f32.mrb[7].mxu0 }
 0x101   :  { %v376_v61 = vsel %vm364_vm4, %v344_v49, %v370_v54  ;;  %v292_v62 = vadd.f32 %v485_v55, %v416_v36  ;;  %v488_v63 = vadd.f32 %v487_v59, %v486_v56 }
 0x102   :  { %406 = vst.msk [vmem:[%s701_s3] sm:$0xf] %vm405_vm3, %v455_v58  ;;  %v456_v1 = vpack.c.bf16 %v376_v61, %v376_v61 }
 0x103   :  { %v349_v2 = vadd.f32 %v348_v37, %v292_v62  ;;  %v295_v3 = vadd.f32 %v488_v63, %v416_v36 }
 0x104   :  { %407 = vst.msk [vmem:[%s701_s3 + $0x4] sm:$0xf] %vm405_vm3, %v456_v1 }
 0x105   :  { %vm365_vm5 = vcmp.ge.f32.partialorder %v349_v2, 0.0  ;;  %v371_v4 = vmul.f32 0.1, %v349_v2  ;;  %v352_v5 = vadd.f32 %v351_v42, %v295_v3  ;;  %v489_v6 = vpop.f32.mrb[8].mxu0 }
 0x106   :  { %v490_v7 = vpop.f32.mrb[9].mxu0 }
 0x107   :  { %v377_v8 = vsel %vm365_vm5, %v349_v2, %v371_v4  ;;  %vm366_vm6 = vcmp.ge.f32.partialorder %v352_v5, 0.0  ;;  %v372_v9 = vmul.f32 0.1, %v352_v5  ;;  %v491_v10 = vadd.f32 %v490_v7, %v489_v6  ;;  %v492_v11 = vpop.f32.mrb[10].mxu0 }
 0x108   :  { %v457_v12 = vpack.c.bf16 %v377_v8, %v377_v8  ;;  %v493_v13 = vpop.f32.mrb[11].mxu0 }
 0x109   :  { %v378_v14 = vsel %vm366_vm6, %v352_v5, %v372_v9  ;;  %v300_v15 = vadd.f32 %v491_v10, %v416_v36  ;;  %v494_v16 = vadd.f32 %v493_v13, %v492_v11 }
 0x10a   :  { %408 = vst.msk [vmem:[%s701_s3 + $0x8] sm:$0xf] %vm405_vm3, %v457_v12  ;;  %v458_v17 = vpack.c.bf16 %v378_v14, %v378_v14 }
 0x10b   :  { %v357_v18 = vadd.f32 %v356_v52, %v300_v15  ;;  %v303_v19 = vadd.f32 %v494_v16, %v416_v36 }
 0x10c   :  { %409 = vst.msk [vmem:[%s701_s3 + $0xc] sm:$0xf] %vm405_vm3, %v458_v17 }
 0x10d   :  { %vm367_vm7 = vcmp.ge.f32.partialorder %v357_v18, 0.0  ;;  %v373_v20 = vmul.f32 0.1, %v357_v18  ;;  %v360_v21 = vadd.f32 %v359_v60, %v303_v19 }
 0x10f   :  { %v379_v22 = vsel %vm367_vm7, %v357_v18, %v373_v20  ;;  %vm368_vm8 = vcmp.ge.f32.partialorder %v360_v21, 0.0  ;;  %v374_v23 = vmul.f32 0.1, %v360_v21 }
 0x110   :  { %v459_v24 = vpack.c.bf16 %v379_v22, %v379_v22 }
 0x111   :  { %v380_v25 = vsel %vm368_vm8, %v360_v21, %v374_v23 }
 0x112   :  { %410 = vst.msk [vmem:[%s701_s3 + $0x10] sm:$0xf] %vm405_vm3, %v459_v24  ;;  %v460_v26 = vpack.c.bf16 %v380_v25, %v380_v25 }
 0x114   :  { %411 = vst.msk [vmem:[%s701_s3 + $0x14] sm:$0xf] %vm405_vm3, %v460_v26 }

// kernel: multi_period_discriminator.59
= control target key start
LH: loop header
LB: loop body
LE: loop exit
PB: predicated region body
PF: predicated region fallthrough
CT: control target
= control target key end

     0   :  { %v333_v0 = vmov 0   ;;  %vm151_vm0 = vcmask 523264   ;;  %vm242_vm1 = vcmask 60416   ;;  %s462_s1 = inlined_call_operand.vmem [shape: bf16[192,8], index: 1, kind: input, shape index: {}]   ;;  %s463_s0 = inlined_call_operand.vmem [shape: bf16[48,192], index: 0, kind: input, shape index: {}]   ;;  %s464_s2 = inlined_call_operand.vmem [shape: f32[1,8], index: 2, kind: input, shape index: {}]   ;;  %s465_s3 = inlined_call_operand.vmem [shape: bf16[48,8], index: 3, kind: output, shape index: {}]  }
   0x1   :  { %287 = vmatprep.subr.bf16.mxu1 %v333_v0  ;;  %v312_v1 = vld [vmem:[%s462_s1] sm:$0xff]   ;;  %161 = vmatprep.subr.bf16.mxu0 %v333_v0  ;;  %v313_v2 = vld [vmem:[%s462_s1 + $0x8] sm:$0xff]   ;;  %v314_v3 = vld [vmem:[%s462_s1 + $0x10] sm:$0xff]  }
   0x2   :  { %299 = vmatpush1.bf16.msra.mxu1 %v312_v1  ;;  %162 = vmatpush1.bf16.msra.mxu0 %v312_v1  ;;  %v315_v4 = vld [vmem:[%s462_s1 + $0x18] sm:$0xff]   ;;  %v316_v6 = vld [vmem:[%s462_s1 + $0x20] sm:$0xff]   ;;  %v317_v8 = vld [vmem:[%s462_s1 + $0x28] sm:$0xff]  }
   0x3   :  { %288 = vmatprep.subr.bf16.mxu1 %v333_v0  ;;  %163 = vmatprep.subr.bf16.mxu0 %v333_v0  ;;  %v326_v5 = vld [vmem:[%s463_s0 + $0x14] ss:$8 sps:$4 sm:$0xff]   ;;  %v329_v7 = vld [vmem:[%s463_s0 + $0x4] ss:$8 sps:$4 sm:$0xff]   ;;  %v324_v15 = vld [vmem:[%s463_s0 + $0x10] ss:$8 sps:$4 sm:$0xff]  }
   0x4   :  { %273 = vmatprep.mubr.msk.bf16.mxu1 %vm151_vm0, %v326_v5  ;;  %272 = vmatprep.mubr.msk.bf16.mxu0 %vm151_vm0, %v329_v7  ;;  %v318_v9 = vld [vmem:[%s462_s1 + $0x30] sm:$0xff]   ;;  %v319_v10 = vld [vmem:[%s462_s1 + $0x38] sm:$0xff]   ;;  %v320_v11 = vld [vmem:[%s462_s1 + $0x40] sm:$0xff]  }
   0x5   :  { %v321_v12 = vld [vmem:[%s462_s1 + $0x48] sm:$0xff]   ;;  %v322_v13 = vld [vmem:[%s462_s1 + $0x50] sm:$0xff]   ;;  %v323_v14 = vld [vmem:[%s462_s1 + $0x58] sm:$0xff]  }
   0x6   :  { %300 = vmatpush1.bf16.msra.mxu1 %v313_v2  ;;  %164 = vmatpush1.bf16.msra.mxu0 %v313_v2  ;;  %v327_v16 = vld [vmem:[%s463_s0] ss:$8 sps:$4 sm:$0xff]   ;;  %v330_v17 = vld [vmem:[%s463_s0 + $0x24] ss:$8 sps:$4 sm:$0xff]  }
   0x7   :  { %289 = vmatprep.subr.bf16.mxu1 %v333_v0  ;;  %165 = vmatprep.subr.bf16.mxu0 %v333_v0  ;;  %v332_v18 = vld [vmem:[%s463_s0 + $0x20] ss:$8 sps:$4 sm:$0xff]  }
   0x8   :  { %v253_v19 = vld [vmem:[%s464_s2] ss:$0 sm:$0xff] }
   0xa   :  { %301 = vmatpush1.bf16.msra.mxu1 %v314_v3  ;;  %166 = vmatpush1.bf16.msra.mxu0 %v314_v3 }
   0xb   :  { %290 = vmatprep.subr.bf16.mxu1 %v333_v0  ;;  %167 = vmatprep.subr.bf16.mxu0 %v333_v0 }
   0xe   :  { %302 = vmatpush1.bf16.msra.mxu1 %v315_v4  ;;  %168 = vmatpush1.bf16.msra.mxu0 %v315_v4 }
   0xf   :  { %291 = vmatprep.subr.bf16.mxu1 %v333_v0  ;;  %169 = vmatprep.subr.bf16.mxu0 %v333_v0 }
  0x12   :  { %303 = vmatpush1.bf16.msra.mxu1 %v316_v6  ;;  %170 = vmatpush1.bf16.msra.mxu0 %v316_v6 }
  0x13   :  { %292 = vmatprep.subr.bf16.mxu1 %v333_v0  ;;  %171 = vmatprep.subr.bf16.mxu0 %v333_v0 }
  0x16   :  { %304 = vmatpush1.bf16.msra.mxu1 %v317_v8  ;;  %172 = vmatpush1.bf16.msra.mxu0 %v317_v8 }
  0x17   :  { %293 = vmatprep.subr.bf16.mxu1 %v333_v0  ;;  %173 = vmatprep.subr.bf16.mxu0 %v333_v0 }
  0x1a   :  { %305 = vmatpush1.bf16.msra.mxu1 %v318_v9  ;;  %174 = vmatpush1.bf16.msra.mxu0 %v318_v9 }
  0x1b   :  { %294 = vmatprep.subr.bf16.mxu1 %v333_v0  ;;  %175 = vmatprep.subr.bf16.mxu0 %v333_v0 }
  0x1e   :  { %306 = vmatpush1.bf16.msra.mxu1 %v319_v10  ;;  %176 = vmatpush1.bf16.msra.mxu0 %v319_v10 }
  0x1f   :  { %295 = vmatprep.subr.bf16.mxu1 %v333_v0  ;;  %177 = vmatprep.subr.bf16.mxu0 %v333_v0 }
  0x22   :  { %307 = vmatpush1.bf16.msra.mxu1 %v320_v11  ;;  %178 = vmatpush1.bf16.msra.mxu0 %v320_v11 }
  0x23   :  { %296 = vmatprep.subr.bf16.mxu1 %v333_v0  ;;  %179 = vmatprep.subr.bf16.mxu0 %v333_v0 }
  0x26   :  { %308 = vmatpush1.bf16.msra.mxu1 %v321_v12  ;;  %180 = vmatpush1.bf16.msra.mxu0 %v321_v12 }
  0x27   :  { %297 = vmatprep.subr.bf16.mxu1 %v333_v0  ;;  %181 = vmatprep.subr.bf16.mxu0 %v333_v0 }
  0x2a   :  { %309 = vmatpush1.bf16.msra.mxu1 %v322_v13  ;;  %182 = vmatpush1.bf16.msra.mxu0 %v322_v13 }
  0x2b   :  { %298 = vmatprep.subr.bf16.mxu1 %v333_v0  ;;  %183 = vmatprep.subr.bf16.mxu0 %v333_v0 }
  0x2e   :  { %310 = vmatpush1.bf16.msra.mxu1 %v323_v14  ;;  %184 = vmatpush1.bf16.msra.mxu0 %v323_v14 }
  0x31   :  { %202 = vmatmul.mubr.bf16.vlgmr.msra.gmra.mrb[0].mxu1 %v324_v15  ;;  %194 = vmatmul.mubr.bf16.vlgmr.msra.gmra.mrb[0].mxu0 %v327_v16 }
  0x32   :  { %274 = vmatprep.mubr.msk.bf16.mxu1 %vm151_vm0, %v330_v17 }
  0x39   :  { %210 = vmatmul.mubr.bf16.gmra.mrb[4].mxu1 %v332_v18 }
 0x104   :  { %v203_v20 = vpop.f32.mrb[0].mxu1  ;;  %v195_v21 = vpop.f32.mrb[0].mxu0 }
 0x105   :  { %v204_v22 = vadd.f32 %v253_v19, %v203_v20  ;;  %v205_v23 = vpop.f32.mrb[1].mxu1  ;;  %v196_v24 = vadd.f32 %v253_v19, %v195_v21  ;;  %v197_v25 = vpop.f32.mrb[1].mxu0 }
 0x106   :  { %v206_v26 = vpop.f32.mrb[2].mxu1  ;;  %v198_v27 = vpop.f32.mrb[2].mxu0 }
 0x107   :  { %v283_v28 = vpack.c.bf16 %v204_v22, %v204_v22  ;;  %v207_v29 = vadd.f32 %v253_v19, %v206_v26  ;;  %v208_v30 = vpop.f32.mrb[3].mxu1  ;;  %v281_v31 = vpack.c.bf16 %v196_v24, %v196_v24  ;;  %v199_v32 = vadd.f32 %v253_v19, %v198_v27  ;;  %v200_v33 = vpop.f32.mrb[3].mxu0 }
 0x109   :  { %245 = vst.msk [vmem:[%s465_s3 + $0x8] sm:$0xf] %vm242_vm1, %v283_v28  ;;  %v284_v34 = vpack.c.bf16 %v207_v29, %v207_v29  ;;  %243 = vst.msk [vmem:[%s465_s3] sm:$0xf] %vm242_vm1, %v281_v31  ;;  %v282_v35 = vpack.c.bf16 %v199_v32, %v199_v32 }
 0x10b   :  { %246 = vst.msk [vmem:[%s465_s3 + $0xc] sm:$0xf] %vm242_vm1, %v284_v34  ;;  %244 = vst.msk [vmem:[%s465_s3 + $0x4] sm:$0xf] %vm242_vm1, %v282_v35 }
 0x10c   :  { %v211_v36 = vpop.f32.mrb[4].mxu1 }
 0x10d   :  { %v212_v37 = vadd.f32 %v253_v19, %v211_v36  ;;  %v213_v38 = vpop.f32.mrb[5].mxu1 }
 0x10e   :  { %v214_v39 = vpop.f32.mrb[6].mxu1 }
 0x10f   :  { %v285_v40 = vpack.c.bf16 %v212_v37, %v212_v37  ;;  %v215_v41 = vadd.f32 %v253_v19, %v214_v39  ;;  %v216_v42 = vpop.f32.mrb[7].mxu1 }
 0x111   :  { %247 = vst.msk [vmem:[%s465_s3 + $0x10] sm:$0xf] %vm242_vm1, %v285_v40  ;;  %v286_v43 = vpack.c.bf16 %v215_v41, %v215_v41 }
 0x113   :  { %248 = vst.msk [vmem:[%s465_s3 + $0x14] sm:$0xf] %vm242_vm1, %v286_v43 }

</bundles_post_ra>
